<compile_context>
chip_gen: v7x
topology: tpu7x:2x2x1
jax: 0.10.0
libtpu: 0.0.40
codegen_flags: <defaults>
</compile_context>

<pallas_src>
import jax
import jax.numpy as jnp
from jax.experimental import pallas as pl
from jax.experimental.pallas import tpu as pltpu

HIDDEN = 128     # hidden_dim (module hard-codes 128 for h_0 / c_0)
IN_DIM = 1       # input_dim
OUT_DIM = 2      # output_dim
OUT_PAD = 128    # lane-dense padded output width (sliced back to OUT_DIM outside)


def _lstm_dqn_kernel(x_ref,      # (B_pad, T)    f32  batch on sublanes, time on lanes
                     wih0_ref,   # (1, 4H)       f32  (w_ih0.T, D_in == 1)
                     b0_ref,     # (1, 4H)       f32  (b_ih0 + b_hh0)
                     whh0_ref,   # (H, 4H)       bf16 (w_hh0.T)
                     wih1_ref,   # (H, 4H)       bf16 (w_ih1.T)
                     whh1_ref,   # (H, 4H)       bf16 (w_hh1.T)
                     b1_ref,     # (1, 4H)       f32  (b_ih1 + b_hh1)
                     wfc_ref,    # (H, OUT_PAD)  bf16
                     bfc_ref,    # (1, OUT_PAD)  f32
                     out_ref):   # (B_pad, OUT_PAD) f32
    H = HIDDEN
    B, T = x_ref.shape

    # One tiny tile; load once.
    xv = x_ref[...]                                              # (B, T)

    # Hoist broadcasts out of the recurrence (JAX does not CSE broadcast_in_dim).
    wih0b = jnp.broadcast_to(wih0_ref[...], (B, 4 * H))          # (B, 4H)
    b0b = jnp.broadcast_to(b0_ref[...], (B, 4 * H))
    b1b = jnp.broadcast_to(b1_ref[...], (B, 4 * H))

    def gates(pre):
        # PyTorch gate order: [i | f | g | o], each of width H (128-lane aligned slices).
        i = jax.nn.sigmoid(pre[:, 0 * H:1 * H])
        f = jax.nn.sigmoid(pre[:, 1 * H:2 * H])
        g = jnp.tanh(pre[:, 2 * H:3 * H])
        o = jax.nn.sigmoid(pre[:, 3 * H:4 * H])
        return i, f, g, o

    # torch.zeros h_0 / c_0.  h carried in bf16 (only feeds MXU dots); c stays f32.
    h0 = jnp.zeros((B, H), jnp.bfloat16)
    h1 = jnp.zeros((B, H), jnp.bfloat16)
    c0 = jnp.zeros((B, H), jnp.float32)
    c1 = jnp.zeros((B, H), jnp.float32)

    # NOTE: the big weight refs are read at the dot sites (not hoisted into values):
    # whh0 + wih1 + whh1 together exceed the 64-vreg file.
    for t in range(T):                                           # static full unroll
        # ---- layer 0 ----
        # Input projection: static lane slice of xv, pure VPU, off the serial chain.
        x_t = xv[:, t:t + 1]                                     # (B, 1)
        g0 = (x_t * wih0b + b0b
              + jnp.dot(h0, whh0_ref[...], preferred_element_type=jnp.float32))

        # Layer-1 recurrent dot depends only on step t-1 state -> overlaps layer-0.
        g1r = jnp.dot(h1, whh1_ref[...], preferred_element_type=jnp.float32)

        i0, f0, gg0, o0 = gates(g0)
        c0 = f0 * c0 + i0 * gg0
        h0 = (o0 * jnp.tanh(c0)).astype(jnp.bfloat16)

        # ---- layer 1 ----
        g1 = g1r + jnp.dot(h0, wih1_ref[...],
                           preferred_element_type=jnp.float32) + b1b
        i1, f1, gg1, o1 = gates(g1)
        c1 = f1 * c1 + i1 * gg1
        h1 = (o1 * jnp.tanh(c1)).astype(jnp.bfloat16)

    # fc on the last-timestep hidden state of the top layer (lane-dense store).
    out_ref[...] = (jnp.dot(h1, wfc_ref[...], preferred_element_type=jnp.float32)
                    + bfc_ref[...]).astype(out_ref.dtype)


def init_params(key, input_dim=IN_DIM, hidden_dim=HIDDEN, output_dim=OUT_DIM):
    """Deterministic synthetic parameters with PyTorch LSTM/Linear shapes."""
    ks = jax.random.split(key, 10)
    bound = 1.0 / jnp.sqrt(hidden_dim)
    u = lambda k, shape: jax.random.uniform(k, shape, jnp.float32, -bound, bound)
    H4 = 4 * hidden_dim
    return {
        "w_ih0": u(ks[0], (H4, input_dim)),
        "w_hh0": u(ks[1], (H4, hidden_dim)),
        "b_ih0": u(ks[2], (H4,)),
        "b_hh0": u(ks[3], (H4,)),
        "w_ih1": u(ks[4], (H4, hidden_dim)),
        "w_hh1": u(ks[5], (H4, hidden_dim)),
        "b_ih1": u(ks[6], (H4,)),
        "b_hh1": u(ks[7], (H4,)),
        "w_fc": u(ks[8], (output_dim, hidden_dim)),
        "b_fc": u(ks[9], (output_dim,)),
    }


def pack_params(params):
    """One-time weight repacking (hoisted out of the inference path)."""
    H = HIDDEN
    return {
        "wih0": params["w_ih0"].T.astype(jnp.float32),                           # (1, 4H)
        "b0": (params["b_ih0"] + params["b_hh0"]).reshape(1, 4 * H).astype(jnp.float32),
        "whh0": params["w_hh0"].T.astype(jnp.bfloat16),                          # (H, 4H)
        "wih1": params["w_ih1"].T.astype(jnp.bfloat16),                          # (H, 4H)
        "whh1": params["w_hh1"].T.astype(jnp.bfloat16),                          # (H, 4H)
        "b1": (params["b_ih1"] + params["b_hh1"]).reshape(1, 4 * H).astype(jnp.float32),
        "wfc": jnp.pad(params["w_fc"].T,
                       ((0, 0), (0, OUT_PAD - OUT_DIM))).astype(jnp.bfloat16),   # (H, 128)
        "bfc": jnp.pad(params["b_fc"].reshape(1, OUT_DIM),
                       ((0, 0), (0, OUT_PAD - OUT_DIM))).astype(jnp.float32),    # (1, 128)
    }


@jax.jit
def lstm_dqn_forward(x, packed):
    """x: (B, T, D_in) float32, batch_first (PyTorch layout). Returns (B, OUT_DIM)."""
    B, T, D_in = x.shape
    assert D_in == IN_DIM, "layer-0 input projection is specialised to input_dim == 1"

    # Compact input layout: (B_pad, T) f32 — batch on sublanes, time on lanes.
    # Pad B to a full sublane tile so all vector ops / stores run unmasked.
    B_pad = max(8, ((B + 7) // 8) * 8)
    x2 = jnp.pad(x[..., 0].astype(jnp.float32), ((0, B_pad - B), (0, 0)))       # (B_pad, T)

    vmem = pl.BlockSpec(memory_space=pltpu.MemorySpace.VMEM)
    out_pad = pl.pallas_call(
        _lstm_dqn_kernel,
        out_shape=jax.ShapeDtypeStruct((B_pad, OUT_PAD), jnp.float32),
        in_specs=[vmem] * 9,
        out_specs=vmem,
    )(x2, packed["wih0"], packed["b0"], packed["whh0"], packed["wih1"],
      packed["whh1"], packed["b1"], packed["wfc"], packed["bfc"])
    return out_pad[:B, :OUT_DIM]


def lstm_dqn_reference(x, params):
    """Pure-JAX f32 reference implementing the PyTorch semantics exactly."""
    B, T, _ = x.shape
    H = HIDDEN

    def cell(x_t, h, c, wih, whh, bih, bhh):
        g = x_t @ wih.T + bih + h @ whh.T + bhh
        i = jax.nn.sigmoid(g[:, 0 * H:1 * H])
        f = jax.nn.sigmoid(g[:, 1 * H:2 * H])
        gg = jnp.tanh(g[:, 2 * H:3 * H])
        o = jax.nn.sigmoid(g[:, 3 * H:4 * H])
        c = f * c + i * gg
        h = o * jnp.tanh(c)
        return h, c

    h0 = c0 = h1 = c1 = jnp.zeros((B, H), jnp.float32)
    for t in range(T):
        x_t = x[:, t, :]
        h0, c0 = cell(x_t, h0, c0, params["w_ih0"], params["w_hh0"],
                      params["b_ih0"], params["b_hh0"])
        h1, c1 = cell(h0, h1, c1, params["w_ih1"], params["w_hh1"],
                      params["b_ih1"], params["b_hh1"])
    return h1 @ params["w_fc"].T + params["b_fc"]


if __name__ == "__main__":
    key = jax.random.PRNGKey(0)
    k_x, k_p = jax.random.split(key)

    B, T = 2, 8
    x = jax.random.normal(k_x, (B, T, IN_DIM), jnp.float32)   # (batch, seq, input_dim)
    params = init_params(k_p)
    packed = pack_params(params)                               # one-time repack

    out = lstm_dqn_forward(x, packed)
    jax.block_until_ready(out)

    ref = lstm_dqn_reference(x, params)
    assert out.shape == (B, OUT_DIM), out.shape
    # bf16 MXU operands (f32 accumulate / gates / c-state) -> relaxed tolerance.
    assert jnp.allclose(out, ref, rtol=2e-2, atol=2e-2), (out, ref)

    print("KERNEL_OK")
</pallas_src>

<mosaic_0001>
module attributes {stable_mosaic.version = 11 : i64} {
  func.func @_lstm_dqn_kernel(%arg0: memref<8x8xf32, #tpu.memory_space<vmem>>, %arg1: memref<1x512xf32, #tpu.memory_space<vmem>>, %arg2: memref<1x512xf32, #tpu.memory_space<vmem>>, %arg3: memref<128x512xbf16, #tpu.memory_space<vmem>>, %arg4: memref<128x512xbf16, #tpu.memory_space<vmem>>, %arg5: memref<128x512xbf16, #tpu.memory_space<vmem>>, %arg6: memref<1x512xf32, #tpu.memory_space<vmem>>, %arg7: memref<128x128xbf16, #tpu.memory_space<vmem>>, %arg8: memref<1x128xf32, #tpu.memory_space<vmem>>, %arg9: memref<8x128xf32, #tpu.memory_space<vmem>>) attributes {dimension_semantics = [], scalar_prefetch = 0 : i64, scratch_operands = 0 : i64, tpu.core_type = #tpu.core_type<tc>} {
    %c0 = arith.constant 0 : index
    %c0_0 = arith.constant 0 : index
    %0 = vector.load %arg0[%c0, %c0_0] : memref<8x8xf32, #tpu.memory_space<vmem>>, vector<8x8xf32>
    %c0_1 = arith.constant 0 : index
    %c0_2 = arith.constant 0 : index
    %1 = vector.load %arg1[%c0_1, %c0_2] : memref<1x512xf32, #tpu.memory_space<vmem>>, vector<1x512xf32>
    %2 = vector.shape_cast %1 : vector<1x512xf32> to vector<1x512xf32>
    %3 = vector.broadcast %2 : vector<1x512xf32> to vector<8x512xf32>
    %c0_3 = arith.constant 0 : index
    %c0_4 = arith.constant 0 : index
    %4 = vector.load %arg2[%c0_3, %c0_4] : memref<1x512xf32, #tpu.memory_space<vmem>>, vector<1x512xf32>
    %5 = vector.shape_cast %4 : vector<1x512xf32> to vector<1x512xf32>
    %6 = vector.broadcast %5 : vector<1x512xf32> to vector<8x512xf32>
    %c0_5 = arith.constant 0 : index
    %c0_6 = arith.constant 0 : index
    %7 = vector.load %arg6[%c0_5, %c0_6] : memref<1x512xf32, #tpu.memory_space<vmem>>, vector<1x512xf32>
    %8 = vector.shape_cast %7 : vector<1x512xf32> to vector<1x512xf32>
    %9 = vector.broadcast %8 : vector<1x512xf32> to vector<8x512xf32>
    %cst = arith.constant 0.000000e+00 : bf16
    %10 = vector.broadcast %cst : bf16 to vector<8x128xbf16>
    %cst_7 = arith.constant 0.000000e+00 : bf16
    %11 = vector.broadcast %cst_7 : bf16 to vector<8x128xbf16>
    %cst_8 = arith.constant 0.000000e+00 : f32
    %12 = vector.broadcast %cst_8 : f32 to vector<8x128xf32>
    %cst_9 = arith.constant 0.000000e+00 : f32
    %13 = vector.broadcast %cst_9 : f32 to vector<8x128xf32>
    %14 = vector.extract_strided_slice %0 {offsets = [0, 0], sizes = [8, 1], strides = [1, 1]} : vector<8x8xf32> to vector<8x1xf32>
    %15 = vector.broadcast %14 : vector<8x1xf32> to vector<8x512xf32>
    %16 = arith.mulf %15, %3 : vector<8x512xf32>
    %17 = arith.addf %16, %6 : vector<8x512xf32>
    %c0_10 = arith.constant 0 : index
    %c0_11 = arith.constant 0 : index
    %18 = vector.load %arg3[%c0_10, %c0_11] : memref<128x512xbf16, #tpu.memory_space<vmem>>, vector<128x512xbf16>
    %cst_12 = arith.constant dense<0.000000e+00> : vector<8x512xf32>
    %19 = tpu.matmul %10, %18, %cst_12 {dimension_numbers = #tpu.dot_dimension_numbers<[1], [0], [0], [1], [0, 0, 1, 1], [], []>} : vector<8x128xbf16>, vector<128x512xbf16>, vector<8x512xf32> -> vector<8x512xf32>
    %20 = arith.addf %17, %19 : vector<8x512xf32>
    %c0_13 = arith.constant 0 : index
    %c0_14 = arith.constant 0 : index
    %21 = vector.load %arg5[%c0_13, %c0_14] : memref<128x512xbf16, #tpu.memory_space<vmem>>, vector<128x512xbf16>
    %cst_15 = arith.constant dense<0.000000e+00> : vector<8x512xf32>
    %22 = tpu.matmul %11, %21, %cst_15 {dimension_numbers = #tpu.dot_dimension_numbers<[1], [0], [0], [1], [0, 0, 1, 1], [], []>} : vector<8x128xbf16>, vector<128x512xbf16>, vector<8x512xf32> -> vector<8x512xf32>
    %23 = vector.extract_strided_slice %20 {offsets = [0, 0], sizes = [8, 128], strides = [1, 1]} : vector<8x512xf32> to vector<8x128xf32>
    %24 = arith.negf %23 : vector<8x128xf32>
    %25 = math.exp %24 : vector<8x128xf32>
    %cst_16 = arith.constant 1.000000e+00 : f32
    %26 = vector.broadcast %cst_16 : f32 to vector<8x128xf32>
    %27 = arith.addf %26, %25 : vector<8x128xf32>
    %28 = arith.divf %26, %27 : vector<8x128xf32>
    %29 = vector.extract_strided_slice %20 {offsets = [0, 128], sizes = [8, 128], strides = [1, 1]} : vector<8x512xf32> to vector<8x128xf32>
    %30 = arith.negf %29 : vector<8x128xf32>
    %31 = math.exp %30 : vector<8x128xf32>
    %cst_17 = arith.constant 1.000000e+00 : f32
    %32 = vector.broadcast %cst_17 : f32 to vector<8x128xf32>
    %33 = arith.addf %32, %31 : vector<8x128xf32>
    %34 = arith.divf %32, %33 : vector<8x128xf32>
    %35 = vector.extract_strided_slice %20 {offsets = [0, 256], sizes = [8, 128], strides = [1, 1]} : vector<8x512xf32> to vector<8x128xf32>
    %36 = math.tanh %35 : vector<8x128xf32>
    %37 = vector.extract_strided_slice %20 {offsets = [0, 384], sizes = [8, 128], strides = [1, 1]} : vector<8x512xf32> to vector<8x128xf32>
    %38 = arith.negf %37 : vector<8x128xf32>
    %39 = math.exp %38 : vector<8x128xf32>
    %cst_18 = arith.constant 1.000000e+00 : f32
    %40 = vector.broadcast %cst_18 : f32 to vector<8x128xf32>
    %41 = arith.addf %40, %39 : vector<8x128xf32>
    %42 = arith.divf %40, %41 : vector<8x128xf32>
    %43 = arith.mulf %34, %12 : vector<8x128xf32>
    %44 = arith.mulf %28, %36 : vector<8x128xf32>
    %45 = arith.addf %43, %44 : vector<8x128xf32>
    %46 = math.tanh %45 : vector<8x128xf32>
    %47 = arith.mulf %42, %46 : vector<8x128xf32>
    %48 = arith.truncf %47 : vector<8x128xf32> to vector<8x128xbf16>
    %c0_19 = arith.constant 0 : index
    %c0_20 = arith.constant 0 : index
    %49 = vector.load %arg4[%c0_19, %c0_20] : memref<128x512xbf16, #tpu.memory_space<vmem>>, vector<128x512xbf16>
    %cst_21 = arith.constant dense<0.000000e+00> : vector<8x512xf32>
    %50 = tpu.matmul %48, %49, %cst_21 {dimension_numbers = #tpu.dot_dimension_numbers<[1], [0], [0], [1], [0, 0, 1, 1], [], []>} : vector<8x128xbf16>, vector<128x512xbf16>, vector<8x512xf32> -> vector<8x512xf32>
    %51 = arith.addf %22, %50 : vector<8x512xf32>
    %52 = arith.addf %51, %9 : vector<8x512xf32>
    %53 = vector.extract_strided_slice %52 {offsets = [0, 0], sizes = [8, 128], strides = [1, 1]} : vector<8x512xf32> to vector<8x128xf32>
    %54 = arith.negf %53 : vector<8x128xf32>
    %55 = math.exp %54 : vector<8x128xf32>
    %cst_22 = arith.constant 1.000000e+00 : f32
    %56 = vector.broadcast %cst_22 : f32 to vector<8x128xf32>
    %57 = arith.addf %56, %55 : vector<8x128xf32>
    %58 = arith.divf %56, %57 : vector<8x128xf32>
    %59 = vector.extract_strided_slice %52 {offsets = [0, 128], sizes = [8, 128], strides = [1, 1]} : vector<8x512xf32> to vector<8x128xf32>
    %60 = arith.negf %59 : vector<8x128xf32>
    %61 = math.exp %60 : vector<8x128xf32>
    %cst_23 = arith.constant 1.000000e+00 : f32
    %62 = vector.broadcast %cst_23 : f32 to vector<8x128xf32>
    %63 = arith.addf %62, %61 : vector<8x128xf32>
    %64 = arith.divf %62, %63 : vector<8x128xf32>
    %65 = vector.extract_strided_slice %52 {offsets = [0, 256], sizes = [8, 128], strides = [1, 1]} : vector<8x512xf32> to vector<8x128xf32>
    %66 = math.tanh %65 : vector<8x128xf32>
    %67 = vector.extract_strided_slice %52 {offsets = [0, 384], sizes = [8, 128], strides = [1, 1]} : vector<8x512xf32> to vector<8x128xf32>
    %68 = arith.negf %67 : vector<8x128xf32>
    %69 = math.exp %68 : vector<8x128xf32>
    %cst_24 = arith.constant 1.000000e+00 : f32
    %70 = vector.broadcast %cst_24 : f32 to vector<8x128xf32>
    %71 = arith.addf %70, %69 : vector<8x128xf32>
    %72 = arith.divf %70, %71 : vector<8x128xf32>
    %73 = arith.mulf %64, %13 : vector<8x128xf32>
    %74 = arith.mulf %58, %66 : vector<8x128xf32>
    %75 = arith.addf %73, %74 : vector<8x128xf32>
    %76 = math.tanh %75 : vector<8x128xf32>
    %77 = arith.mulf %72, %76 : vector<8x128xf32>
    %78 = arith.truncf %77 : vector<8x128xf32> to vector<8x128xbf16>
    %79 = vector.extract_strided_slice %0 {offsets = [0, 1], sizes = [8, 1], strides = [1, 1]} : vector<8x8xf32> to vector<8x1xf32>
    %80 = vector.broadcast %79 : vector<8x1xf32> to vector<8x512xf32>
    %81 = arith.mulf %80, %3 : vector<8x512xf32>
    %82 = arith.addf %81, %6 : vector<8x512xf32>
    %c0_25 = arith.constant 0 : index
    %c0_26 = arith.constant 0 : index
    %83 = vector.load %arg3[%c0_25, %c0_26] : memref<128x512xbf16, #tpu.memory_space<vmem>>, vector<128x512xbf16>
    %cst_27 = arith.constant dense<0.000000e+00> : vector<8x512xf32>
    %84 = tpu.matmul %48, %83, %cst_27 {dimension_numbers = #tpu.dot_dimension_numbers<[1], [0], [0], [1], [0, 0, 1, 1], [], []>} : vector<8x128xbf16>, vector<128x512xbf16>, vector<8x512xf32> -> vector<8x512xf32>
    %85 = arith.addf %82, %84 : vector<8x512xf32>
    %c0_28 = arith.constant 0 : index
    %c0_29 = arith.constant 0 : index
    %86 = vector.load %arg5[%c0_28, %c0_29] : memref<128x512xbf16, #tpu.memory_space<vmem>>, vector<128x512xbf16>
    %cst_30 = arith.constant dense<0.000000e+00> : vector<8x512xf32>
    %87 = tpu.matmul %78, %86, %cst_30 {dimension_numbers = #tpu.dot_dimension_numbers<[1], [0], [0], [1], [0, 0, 1, 1], [], []>} : vector<8x128xbf16>, vector<128x512xbf16>, vector<8x512xf32> -> vector<8x512xf32>
    %88 = vector.extract_strided_slice %85 {offsets = [0, 0], sizes = [8, 128], strides = [1, 1]} : vector<8x512xf32> to vector<8x128xf32>
    %89 = arith.negf %88 : vector<8x128xf32>
    %90 = math.exp %89 : vector<8x128xf32>
    %cst_31 = arith.constant 1.000000e+00 : f32
    %91 = vector.broadcast %cst_31 : f32 to vector<8x128xf32>
    %92 = arith.addf %91, %90 : vector<8x128xf32>
    %93 = arith.divf %91, %92 : vector<8x128xf32>
    %94 = vector.extract_strided_slice %85 {offsets = [0, 128], sizes = [8, 128], strides = [1, 1]} : vector<8x512xf32> to vector<8x128xf32>
    %95 = arith.negf %94 : vector<8x128xf32>
    %96 = math.exp %95 : vector<8x128xf32>
    %cst_32 = arith.constant 1.000000e+00 : f32
    %97 = vector.broadcast %cst_32 : f32 to vector<8x128xf32>
    %98 = arith.addf %97, %96 : vector<8x128xf32>
    %99 = arith.divf %97, %98 : vector<8x128xf32>
    %100 = vector.extract_strided_slice %85 {offsets = [0, 256], sizes = [8, 128], strides = [1, 1]} : vector<8x512xf32> to vector<8x128xf32>
    %101 = math.tanh %100 : vector<8x128xf32>
    %102 = vector.extract_strided_slice %85 {offsets = [0, 384], sizes = [8, 128], strides = [1, 1]} : vector<8x512xf32> to vector<8x128xf32>
    %103 = arith.negf %102 : vector<8x128xf32>
    %104 = math.exp %103 : vector<8x128xf32>
    %cst_33 = arith.constant 1.000000e+00 : f32
    %105 = vector.broadcast %cst_33 : f32 to vector<8x128xf32>
    %106 = arith.addf %105, %104 : vector<8x128xf32>
    %107 = arith.divf %105, %106 : vector<8x128xf32>
    %108 = arith.mulf %99, %45 : vector<8x128xf32>
    %109 = arith.mulf %93, %101 : vector<8x128xf32>
    %110 = arith.addf %108, %109 : vector<8x128xf32>
    %111 = math.tanh %110 : vector<8x128xf32>
    %112 = arith.mulf %107, %111 : vector<8x128xf32>
    %113 = arith.truncf %112 : vector<8x128xf32> to vector<8x128xbf16>
    %c0_34 = arith.constant 0 : index
    %c0_35 = arith.constant 0 : index
    %114 = vector.load %arg4[%c0_34, %c0_35] : memref<128x512xbf16, #tpu.memory_space<vmem>>, vector<128x512xbf16>
    %cst_36 = arith.constant dense<0.000000e+00> : vector<8x512xf32>
    %115 = tpu.matmul %113, %114, %cst_36 {dimension_numbers = #tpu.dot_dimension_numbers<[1], [0], [0], [1], [0, 0, 1, 1], [], []>} : vector<8x128xbf16>, vector<128x512xbf16>, vector<8x512xf32> -> vector<8x512xf32>
    %116 = arith.addf %87, %115 : vector<8x512xf32>
    %117 = arith.addf %116, %9 : vector<8x512xf32>
    %118 = vector.extract_strided_slice %117 {offsets = [0, 0], sizes = [8, 128], strides = [1, 1]} : vector<8x512xf32> to vector<8x128xf32>
    %119 = arith.negf %118 : vector<8x128xf32>
    %120 = math.exp %119 : vector<8x128xf32>
    %cst_37 = arith.constant 1.000000e+00 : f32
    %121 = vector.broadcast %cst_37 : f32 to vector<8x128xf32>
    %122 = arith.addf %121, %120 : vector<8x128xf32>
    %123 = arith.divf %121, %122 : vector<8x128xf32>
    %124 = vector.extract_strided_slice %117 {offsets = [0, 128], sizes = [8, 128], strides = [1, 1]} : vector<8x512xf32> to vector<8x128xf32>
    %125 = arith.negf %124 : vector<8x128xf32>
    %126 = math.exp %125 : vector<8x128xf32>
    %cst_38 = arith.constant 1.000000e+00 : f32
    %127 = vector.broadcast %cst_38 : f32 to vector<8x128xf32>
    %128 = arith.addf %127, %126 : vector<8x128xf32>
    %129 = arith.divf %127, %128 : vector<8x128xf32>
    %130 = vector.extract_strided_slice %117 {offsets = [0, 256], sizes = [8, 128], strides = [1, 1]} : vector<8x512xf32> to vector<8x128xf32>
    %131 = math.tanh %130 : vector<8x128xf32>
    %132 = vector.extract_strided_slice %117 {offsets = [0, 384], sizes = [8, 128], strides = [1, 1]} : vector<8x512xf32> to vector<8x128xf32>
    %133 = arith.negf %132 : vector<8x128xf32>
    %134 = math.exp %133 : vector<8x128xf32>
    %cst_39 = arith.constant 1.000000e+00 : f32
    %135 = vector.broadcast %cst_39 : f32 to vector<8x128xf32>
    %136 = arith.addf %135, %134 : vector<8x128xf32>
    %137 = arith.divf %135, %136 : vector<8x128xf32>
    %138 = arith.mulf %129, %75 : vector<8x128xf32>
    %139 = arith.mulf %123, %131 : vector<8x128xf32>
    %140 = arith.addf %138, %139 : vector<8x128xf32>
    %141 = math.tanh %140 : vector<8x128xf32>
    %142 = arith.mulf %137, %141 : vector<8x128xf32>
    %143 = arith.truncf %142 : vector<8x128xf32> to vector<8x128xbf16>
    %144 = vector.extract_strided_slice %0 {offsets = [0, 2], sizes = [8, 1], strides = [1, 1]} : vector<8x8xf32> to vector<8x1xf32>
    %145 = vector.broadcast %144 : vector<8x1xf32> to vector<8x512xf32>
    %146 = arith.mulf %145, %3 : vector<8x512xf32>
    %147 = arith.addf %146, %6 : vector<8x512xf32>
    %c0_40 = arith.constant 0 : index
    %c0_41 = arith.constant 0 : index
    %148 = vector.load %arg3[%c0_40, %c0_41] : memref<128x512xbf16, #tpu.memory_space<vmem>>, vector<128x512xbf16>
    %cst_42 = arith.constant dense<0.000000e+00> : vector<8x512xf32>
    %149 = tpu.matmul %113, %148, %cst_42 {dimension_numbers = #tpu.dot_dimension_numbers<[1], [0], [0], [1], [0, 0, 1, 1], [], []>} : vector<8x128xbf16>, vector<128x512xbf16>, vector<8x512xf32> -> vector<8x512xf32>
    %150 = arith.addf %147, %149 : vector<8x512xf32>
    %c0_43 = arith.constant 0 : index
    %c0_44 = arith.constant 0 : index
    %151 = vector.load %arg5[%c0_43, %c0_44] : memref<128x512xbf16, #tpu.memory_space<vmem>>, vector<128x512xbf16>
    %cst_45 = arith.constant dense<0.000000e+00> : vector<8x512xf32>
    %152 = tpu.matmul %143, %151, %cst_45 {dimension_numbers = #tpu.dot_dimension_numbers<[1], [0], [0], [1], [0, 0, 1, 1], [], []>} : vector<8x128xbf16>, vector<128x512xbf16>, vector<8x512xf32> -> vector<8x512xf32>
    %153 = vector.extract_strided_slice %150 {offsets = [0, 0], sizes = [8, 128], strides = [1, 1]} : vector<8x512xf32> to vector<8x128xf32>
    %154 = arith.negf %153 : vector<8x128xf32>
    %155 = math.exp %154 : vector<8x128xf32>
    %cst_46 = arith.constant 1.000000e+00 : f32
    %156 = vector.broadcast %cst_46 : f32 to vector<8x128xf32>
    %157 = arith.addf %156, %155 : vector<8x128xf32>
    %158 = arith.divf %156, %157 : vector<8x128xf32>
    %159 = vector.extract_strided_slice %150 {offsets = [0, 128], sizes = [8, 128], strides = [1, 1]} : vector<8x512xf32> to vector<8x128xf32>
    %160 = arith.negf %159 : vector<8x128xf32>
    %161 = math.exp %160 : vector<8x128xf32>
    %cst_47 = arith.constant 1.000000e+00 : f32
    %162 = vector.broadcast %cst_47 : f32 to vector<8x128xf32>
    %163 = arith.addf %162, %161 : vector<8x128xf32>
    %164 = arith.divf %162, %163 : vector<8x128xf32>
    %165 = vector.extract_strided_slice %150 {offsets = [0, 256], sizes = [8, 128], strides = [1, 1]} : vector<8x512xf32> to vector<8x128xf32>
    %166 = math.tanh %165 : vector<8x128xf32>
    %167 = vector.extract_strided_slice %150 {offsets = [0, 384], sizes = [8, 128], strides = [1, 1]} : vector<8x512xf32> to vector<8x128xf32>
    %168 = arith.negf %167 : vector<8x128xf32>
    %169 = math.exp %168 : vector<8x128xf32>
    %cst_48 = arith.constant 1.000000e+00 : f32
    %170 = vector.broadcast %cst_48 : f32 to vector<8x128xf32>
    %171 = arith.addf %170, %169 : vector<8x128xf32>
    %172 = arith.divf %170, %171 : vector<8x128xf32>
    %173 = arith.mulf %164, %110 : vector<8x128xf32>
    %174 = arith.mulf %158, %166 : vector<8x128xf32>
    %175 = arith.addf %173, %174 : vector<8x128xf32>
    %176 = math.tanh %175 : vector<8x128xf32>
    %177 = arith.mulf %172, %176 : vector<8x128xf32>
    %178 = arith.truncf %177 : vector<8x128xf32> to vector<8x128xbf16>
    %c0_49 = arith.constant 0 : index
    %c0_50 = arith.constant 0 : index
    %179 = vector.load %arg4[%c0_49, %c0_50] : memref<128x512xbf16, #tpu.memory_space<vmem>>, vector<128x512xbf16>
    %cst_51 = arith.constant dense<0.000000e+00> : vector<8x512xf32>
    %180 = tpu.matmul %178, %179, %cst_51 {dimension_numbers = #tpu.dot_dimension_numbers<[1], [0], [0], [1], [0, 0, 1, 1], [], []>} : vector<8x128xbf16>, vector<128x512xbf16>, vector<8x512xf32> -> vector<8x512xf32>
    %181 = arith.addf %152, %180 : vector<8x512xf32>
    %182 = arith.addf %181, %9 : vector<8x512xf32>
    %183 = vector.extract_strided_slice %182 {offsets = [0, 0], sizes = [8, 128], strides = [1, 1]} : vector<8x512xf32> to vector<8x128xf32>
    %184 = arith.negf %183 : vector<8x128xf32>
    %185 = math.exp %184 : vector<8x128xf32>
    %cst_52 = arith.constant 1.000000e+00 : f32
    %186 = vector.broadcast %cst_52 : f32 to vector<8x128xf32>
    %187 = arith.addf %186, %185 : vector<8x128xf32>
    %188 = arith.divf %186, %187 : vector<8x128xf32>
    %189 = vector.extract_strided_slice %182 {offsets = [0, 128], sizes = [8, 128], strides = [1, 1]} : vector<8x512xf32> to vector<8x128xf32>
    %190 = arith.negf %189 : vector<8x128xf32>
    %191 = math.exp %190 : vector<8x128xf32>
    %cst_53 = arith.constant 1.000000e+00 : f32
    %192 = vector.broadcast %cst_53 : f32 to vector<8x128xf32>
    %193 = arith.addf %192, %191 : vector<8x128xf32>
    %194 = arith.divf %192, %193 : vector<8x128xf32>
    %195 = vector.extract_strided_slice %182 {offsets = [0, 256], sizes = [8, 128], strides = [1, 1]} : vector<8x512xf32> to vector<8x128xf32>
    %196 = math.tanh %195 : vector<8x128xf32>
    %197 = vector.extract_strided_slice %182 {offsets = [0, 384], sizes = [8, 128], strides = [1, 1]} : vector<8x512xf32> to vector<8x128xf32>
    %198 = arith.negf %197 : vector<8x128xf32>
    %199 = math.exp %198 : vector<8x128xf32>
    %cst_54 = arith.constant 1.000000e+00 : f32
    %200 = vector.broadcast %cst_54 : f32 to vector<8x128xf32>
    %201 = arith.addf %200, %199 : vector<8x128xf32>
    %202 = arith.divf %200, %201 : vector<8x128xf32>
    %203 = arith.mulf %194, %140 : vector<8x128xf32>
    %204 = arith.mulf %188, %196 : vector<8x128xf32>
    %205 = arith.addf %203, %204 : vector<8x128xf32>
    %206 = math.tanh %205 : vector<8x128xf32>
    %207 = arith.mulf %202, %206 : vector<8x128xf32>
    %208 = arith.truncf %207 : vector<8x128xf32> to vector<8x128xbf16>
    %209 = vector.extract_strided_slice %0 {offsets = [0, 3], sizes = [8, 1], strides = [1, 1]} : vector<8x8xf32> to vector<8x1xf32>
    %210 = vector.broadcast %209 : vector<8x1xf32> to vector<8x512xf32>
    %211 = arith.mulf %210, %3 : vector<8x512xf32>
    %212 = arith.addf %211, %6 : vector<8x512xf32>
    %c0_55 = arith.constant 0 : index
    %c0_56 = arith.constant 0 : index
    %213 = vector.load %arg3[%c0_55, %c0_56] : memref<128x512xbf16, #tpu.memory_space<vmem>>, vector<128x512xbf16>
    %cst_57 = arith.constant dense<0.000000e+00> : vector<8x512xf32>
    %214 = tpu.matmul %178, %213, %cst_57 {dimension_numbers = #tpu.dot_dimension_numbers<[1], [0], [0], [1], [0, 0, 1, 1], [], []>} : vector<8x128xbf16>, vector<128x512xbf16>, vector<8x512xf32> -> vector<8x512xf32>
    %215 = arith.addf %212, %214 : vector<8x512xf32>
    %c0_58 = arith.constant 0 : index
    %c0_59 = arith.constant 0 : index
    %216 = vector.load %arg5[%c0_58, %c0_59] : memref<128x512xbf16, #tpu.memory_space<vmem>>, vector<128x512xbf16>
    %cst_60 = arith.constant dense<0.000000e+00> : vector<8x512xf32>
    %217 = tpu.matmul %208, %216, %cst_60 {dimension_numbers = #tpu.dot_dimension_numbers<[1], [0], [0], [1], [0, 0, 1, 1], [], []>} : vector<8x128xbf16>, vector<128x512xbf16>, vector<8x512xf32> -> vector<8x512xf32>
    %218 = vector.extract_strided_slice %215 {offsets = [0, 0], sizes = [8, 128], strides = [1, 1]} : vector<8x512xf32> to vector<8x128xf32>
    %219 = arith.negf %218 : vector<8x128xf32>
    %220 = math.exp %219 : vector<8x128xf32>
    %cst_61 = arith.constant 1.000000e+00 : f32
    %221 = vector.broadcast %cst_61 : f32 to vector<8x128xf32>
    %222 = arith.addf %221, %220 : vector<8x128xf32>
    %223 = arith.divf %221, %222 : vector<8x128xf32>
    %224 = vector.extract_strided_slice %215 {offsets = [0, 128], sizes = [8, 128], strides = [1, 1]} : vector<8x512xf32> to vector<8x128xf32>
    %225 = arith.negf %224 : vector<8x128xf32>
    %226 = math.exp %225 : vector<8x128xf32>
    %cst_62 = arith.constant 1.000000e+00 : f32
    %227 = vector.broadcast %cst_62 : f32 to vector<8x128xf32>
    %228 = arith.addf %227, %226 : vector<8x128xf32>
    %229 = arith.divf %227, %228 : vector<8x128xf32>
    %230 = vector.extract_strided_slice %215 {offsets = [0, 256], sizes = [8, 128], strides = [1, 1]} : vector<8x512xf32> to vector<8x128xf32>
    %231 = math.tanh %230 : vector<8x128xf32>
    %232 = vector.extract_strided_slice %215 {offsets = [0, 384], sizes = [8, 128], strides = [1, 1]} : vector<8x512xf32> to vector<8x128xf32>
    %233 = arith.negf %232 : vector<8x128xf32>
    %234 = math.exp %233 : vector<8x128xf32>
    %cst_63 = arith.constant 1.000000e+00 : f32
    %235 = vector.broadcast %cst_63 : f32 to vector<8x128xf32>
    %236 = arith.addf %235, %234 : vector<8x128xf32>
    %237 = arith.divf %235, %236 : vector<8x128xf32>
    %238 = arith.mulf %229, %175 : vector<8x128xf32>
    %239 = arith.mulf %223, %231 : vector<8x128xf32>
    %240 = arith.addf %238, %239 : vector<8x128xf32>
    %241 = math.tanh %240 : vector<8x128xf32>
    %242 = arith.mulf %237, %241 : vector<8x128xf32>
    %243 = arith.truncf %242 : vector<8x128xf32> to vector<8x128xbf16>
    %c0_64 = arith.constant 0 : index
    %c0_65 = arith.constant 0 : index
    %244 = vector.load %arg4[%c0_64, %c0_65] : memref<128x512xbf16, #tpu.memory_space<vmem>>, vector<128x512xbf16>
    %cst_66 = arith.constant dense<0.000000e+00> : vector<8x512xf32>
    %245 = tpu.matmul %243, %244, %cst_66 {dimension_numbers = #tpu.dot_dimension_numbers<[1], [0], [0], [1], [0, 0, 1, 1], [], []>} : vector<8x128xbf16>, vector<128x512xbf16>, vector<8x512xf32> -> vector<8x512xf32>
    %246 = arith.addf %217, %245 : vector<8x512xf32>
    %247 = arith.addf %246, %9 : vector<8x512xf32>
    %248 = vector.extract_strided_slice %247 {offsets = [0, 0], sizes = [8, 128], strides = [1, 1]} : vector<8x512xf32> to vector<8x128xf32>
    %249 = arith.negf %248 : vector<8x128xf32>
    %250 = math.exp %249 : vector<8x128xf32>
    %cst_67 = arith.constant 1.000000e+00 : f32
    %251 = vector.broadcast %cst_67 : f32 to vector<8x128xf32>
    %252 = arith.addf %251, %250 : vector<8x128xf32>
    %253 = arith.divf %251, %252 : vector<8x128xf32>
    %254 = vector.extract_strided_slice %247 {offsets = [0, 128], sizes = [8, 128], strides = [1, 1]} : vector<8x512xf32> to vector<8x128xf32>
    %255 = arith.negf %254 : vector<8x128xf32>
    %256 = math.exp %255 : vector<8x128xf32>
    %cst_68 = arith.constant 1.000000e+00 : f32
    %257 = vector.broadcast %cst_68 : f32 to vector<8x128xf32>
    %258 = arith.addf %257, %256 : vector<8x128xf32>
    %259 = arith.divf %257, %258 : vector<8x128xf32>
    %260 = vector.extract_strided_slice %247 {offsets = [0, 256], sizes = [8, 128], strides = [1, 1]} : vector<8x512xf32> to vector<8x128xf32>
    %261 = math.tanh %260 : vector<8x128xf32>
    %262 = vector.extract_strided_slice %247 {offsets = [0, 384], sizes = [8, 128], strides = [1, 1]} : vector<8x512xf32> to vector<8x128xf32>
    %263 = arith.negf %262 : vector<8x128xf32>
    %264 = math.exp %263 : vector<8x128xf32>
    %cst_69 = arith.constant 1.000000e+00 : f32
    %265 = vector.broadcast %cst_69 : f32 to vector<8x128xf32>
    %266 = arith.addf %265, %264 : vector<8x128xf32>
    %267 = arith.divf %265, %266 : vector<8x128xf32>
    %268 = arith.mulf %259, %205 : vector<8x128xf32>
    %269 = arith.mulf %253, %261 : vector<8x128xf32>
    %270 = arith.addf %268, %269 : vector<8x128xf32>
    %271 = math.tanh %270 : vector<8x128xf32>
    %272 = arith.mulf %267, %271 : vector<8x128xf32>
    %273 = arith.truncf %272 : vector<8x128xf32> to vector<8x128xbf16>
    %274 = vector.extract_strided_slice %0 {offsets = [0, 4], sizes = [8, 1], strides = [1, 1]} : vector<8x8xf32> to vector<8x1xf32>
    %275 = vector.broadcast %274 : vector<8x1xf32> to vector<8x512xf32>
    %276 = arith.mulf %275, %3 : vector<8x512xf32>
    %277 = arith.addf %276, %6 : vector<8x512xf32>
    %c0_70 = arith.constant 0 : index
    %c0_71 = arith.constant 0 : index
    %278 = vector.load %arg3[%c0_70, %c0_71] : memref<128x512xbf16, #tpu.memory_space<vmem>>, vector<128x512xbf16>
    %cst_72 = arith.constant dense<0.000000e+00> : vector<8x512xf32>
    %279 = tpu.matmul %243, %278, %cst_72 {dimension_numbers = #tpu.dot_dimension_numbers<[1], [0], [0], [1], [0, 0, 1, 1], [], []>} : vector<8x128xbf16>, vector<128x512xbf16>, vector<8x512xf32> -> vector<8x512xf32>
    %280 = arith.addf %277, %279 : vector<8x512xf32>
    %c0_73 = arith.constant 0 : index
    %c0_74 = arith.constant 0 : index
    %281 = vector.load %arg5[%c0_73, %c0_74] : memref<128x512xbf16, #tpu.memory_space<vmem>>, vector<128x512xbf16>
    %cst_75 = arith.constant dense<0.000000e+00> : vector<8x512xf32>
    %282 = tpu.matmul %273, %281, %cst_75 {dimension_numbers = #tpu.dot_dimension_numbers<[1], [0], [0], [1], [0, 0, 1, 1], [], []>} : vector<8x128xbf16>, vector<128x512xbf16>, vector<8x512xf32> -> vector<8x512xf32>
    %283 = vector.extract_strided_slice %280 {offsets = [0, 0], sizes = [8, 128], strides = [1, 1]} : vector<8x512xf32> to vector<8x128xf32>
    %284 = arith.negf %283 : vector<8x128xf32>
    %285 = math.exp %284 : vector<8x128xf32>
    %cst_76 = arith.constant 1.000000e+00 : f32
    %286 = vector.broadcast %cst_76 : f32 to vector<8x128xf32>
    %287 = arith.addf %286, %285 : vector<8x128xf32>
    %288 = arith.divf %286, %287 : vector<8x128xf32>
    %289 = vector.extract_strided_slice %280 {offsets = [0, 128], sizes = [8, 128], strides = [1, 1]} : vector<8x512xf32> to vector<8x128xf32>
    %290 = arith.negf %289 : vector<8x128xf32>
    %291 = math.exp %290 : vector<8x128xf32>
    %cst_77 = arith.constant 1.000000e+00 : f32
    %292 = vector.broadcast %cst_77 : f32 to vector<8x128xf32>
    %293 = arith.addf %292, %291 : vector<8x128xf32>
    %294 = arith.divf %292, %293 : vector<8x128xf32>
    %295 = vector.extract_strided_slice %280 {offsets = [0, 256], sizes = [8, 128], strides = [1, 1]} : vector<8x512xf32> to vector<8x128xf32>
    %296 = math.tanh %295 : vector<8x128xf32>
    %297 = vector.extract_strided_slice %280 {offsets = [0, 384], sizes = [8, 128], strides = [1, 1]} : vector<8x512xf32> to vector<8x128xf32>
    %298 = arith.negf %297 : vector<8x128xf32>
    %299 = math.exp %298 : vector<8x128xf32>
    %cst_78 = arith.constant 1.000000e+00 : f32
    %300 = vector.broadcast %cst_78 : f32 to vector<8x128xf32>
    %301 = arith.addf %300, %299 : vector<8x128xf32>
    %302 = arith.divf %300, %301 : vector<8x128xf32>
    %303 = arith.mulf %294, %240 : vector<8x128xf32>
    %304 = arith.mulf %288, %296 : vector<8x128xf32>
    %305 = arith.addf %303, %304 : vector<8x128xf32>
    %306 = math.tanh %305 : vector<8x128xf32>
    %307 = arith.mulf %302, %306 : vector<8x128xf32>
    %308 = arith.truncf %307 : vector<8x128xf32> to vector<8x128xbf16>
    %c0_79 = arith.constant 0 : index
    %c0_80 = arith.constant 0 : index
    %309 = vector.load %arg4[%c0_79, %c0_80] : memref<128x512xbf16, #tpu.memory_space<vmem>>, vector<128x512xbf16>
    %cst_81 = arith.constant dense<0.000000e+00> : vector<8x512xf32>
    %310 = tpu.matmul %308, %309, %cst_81 {dimension_numbers = #tpu.dot_dimension_numbers<[1], [0], [0], [1], [0, 0, 1, 1], [], []>} : vector<8x128xbf16>, vector<128x512xbf16>, vector<8x512xf32> -> vector<8x512xf32>
    %311 = arith.addf %282, %310 : vector<8x512xf32>
    %312 = arith.addf %311, %9 : vector<8x512xf32>
    %313 = vector.extract_strided_slice %312 {offsets = [0, 0], sizes = [8, 128], strides = [1, 1]} : vector<8x512xf32> to vector<8x128xf32>
    %314 = arith.negf %313 : vector<8x128xf32>
    %315 = math.exp %314 : vector<8x128xf32>
    %cst_82 = arith.constant 1.000000e+00 : f32
    %316 = vector.broadcast %cst_82 : f32 to vector<8x128xf32>
    %317 = arith.addf %316, %315 : vector<8x128xf32>
    %318 = arith.divf %316, %317 : vector<8x128xf32>
    %319 = vector.extract_strided_slice %312 {offsets = [0, 128], sizes = [8, 128], strides = [1, 1]} : vector<8x512xf32> to vector<8x128xf32>
    %320 = arith.negf %319 : vector<8x128xf32>
    %321 = math.exp %320 : vector<8x128xf32>
    %cst_83 = arith.constant 1.000000e+00 : f32
    %322 = vector.broadcast %cst_83 : f32 to vector<8x128xf32>
    %323 = arith.addf %322, %321 : vector<8x128xf32>
    %324 = arith.divf %322, %323 : vector<8x128xf32>
    %325 = vector.extract_strided_slice %312 {offsets = [0, 256], sizes = [8, 128], strides = [1, 1]} : vector<8x512xf32> to vector<8x128xf32>
    %326 = math.tanh %325 : vector<8x128xf32>
    %327 = vector.extract_strided_slice %312 {offsets = [0, 384], sizes = [8, 128], strides = [1, 1]} : vector<8x512xf32> to vector<8x128xf32>
    %328 = arith.negf %327 : vector<8x128xf32>
    %329 = math.exp %328 : vector<8x128xf32>
    %cst_84 = arith.constant 1.000000e+00 : f32
    %330 = vector.broadcast %cst_84 : f32 to vector<8x128xf32>
    %331 = arith.addf %330, %329 : vector<8x128xf32>
    %332 = arith.divf %330, %331 : vector<8x128xf32>
    %333 = arith.mulf %324, %270 : vector<8x128xf32>
    %334 = arith.mulf %318, %326 : vector<8x128xf32>
    %335 = arith.addf %333, %334 : vector<8x128xf32>
    %336 = math.tanh %335 : vector<8x128xf32>
    %337 = arith.mulf %332, %336 : vector<8x128xf32>
    %338 = arith.truncf %337 : vector<8x128xf32> to vector<8x128xbf16>
    %339 = vector.extract_strided_slice %0 {offsets = [0, 5], sizes = [8, 1], strides = [1, 1]} : vector<8x8xf32> to vector<8x1xf32>
    %340 = vector.broadcast %339 : vector<8x1xf32> to vector<8x512xf32>
    %341 = arith.mulf %340, %3 : vector<8x512xf32>
    %342 = arith.addf %341, %6 : vector<8x512xf32>
    %c0_85 = arith.constant 0 : index
    %c0_86 = arith.constant 0 : index
    %343 = vector.load %arg3[%c0_85, %c0_86] : memref<128x512xbf16, #tpu.memory_space<vmem>>, vector<128x512xbf16>
    %cst_87 = arith.constant dense<0.000000e+00> : vector<8x512xf32>
    %344 = tpu.matmul %308, %343, %cst_87 {dimension_numbers = #tpu.dot_dimension_numbers<[1], [0], [0], [1], [0, 0, 1, 1], [], []>} : vector<8x128xbf16>, vector<128x512xbf16>, vector<8x512xf32> -> vector<8x512xf32>
    %345 = arith.addf %342, %344 : vector<8x512xf32>
    %c0_88 = arith.constant 0 : index
    %c0_89 = arith.constant 0 : index
    %346 = vector.load %arg5[%c0_88, %c0_89] : memref<128x512xbf16, #tpu.memory_space<vmem>>, vector<128x512xbf16>
    %cst_90 = arith.constant dense<0.000000e+00> : vector<8x512xf32>
    %347 = tpu.matmul %338, %346, %cst_90 {dimension_numbers = #tpu.dot_dimension_numbers<[1], [0], [0], [1], [0, 0, 1, 1], [], []>} : vector<8x128xbf16>, vector<128x512xbf16>, vector<8x512xf32> -> vector<8x512xf32>
    %348 = vector.extract_strided_slice %345 {offsets = [0, 0], sizes = [8, 128], strides = [1, 1]} : vector<8x512xf32> to vector<8x128xf32>
    %349 = arith.negf %348 : vector<8x128xf32>
    %350 = math.exp %349 : vector<8x128xf32>
    %cst_91 = arith.constant 1.000000e+00 : f32
    %351 = vector.broadcast %cst_91 : f32 to vector<8x128xf32>
    %352 = arith.addf %351, %350 : vector<8x128xf32>
    %353 = arith.divf %351, %352 : vector<8x128xf32>
    %354 = vector.extract_strided_slice %345 {offsets = [0, 128], sizes = [8, 128], strides = [1, 1]} : vector<8x512xf32> to vector<8x128xf32>
    %355 = arith.negf %354 : vector<8x128xf32>
    %356 = math.exp %355 : vector<8x128xf32>
    %cst_92 = arith.constant 1.000000e+00 : f32
    %357 = vector.broadcast %cst_92 : f32 to vector<8x128xf32>
    %358 = arith.addf %357, %356 : vector<8x128xf32>
    %359 = arith.divf %357, %358 : vector<8x128xf32>
    %360 = vector.extract_strided_slice %345 {offsets = [0, 256], sizes = [8, 128], strides = [1, 1]} : vector<8x512xf32> to vector<8x128xf32>
    %361 = math.tanh %360 : vector<8x128xf32>
    %362 = vector.extract_strided_slice %345 {offsets = [0, 384], sizes = [8, 128], strides = [1, 1]} : vector<8x512xf32> to vector<8x128xf32>
    %363 = arith.negf %362 : vector<8x128xf32>
    %364 = math.exp %363 : vector<8x128xf32>
    %cst_93 = arith.constant 1.000000e+00 : f32
    %365 = vector.broadcast %cst_93 : f32 to vector<8x128xf32>
    %366 = arith.addf %365, %364 : vector<8x128xf32>
    %367 = arith.divf %365, %366 : vector<8x128xf32>
    %368 = arith.mulf %359, %305 : vector<8x128xf32>
    %369 = arith.mulf %353, %361 : vector<8x128xf32>
    %370 = arith.addf %368, %369 : vector<8x128xf32>
    %371 = math.tanh %370 : vector<8x128xf32>
    %372 = arith.mulf %367, %371 : vector<8x128xf32>
    %373 = arith.truncf %372 : vector<8x128xf32> to vector<8x128xbf16>
    %c0_94 = arith.constant 0 : index
    %c0_95 = arith.constant 0 : index
    %374 = vector.load %arg4[%c0_94, %c0_95] : memref<128x512xbf16, #tpu.memory_space<vmem>>, vector<128x512xbf16>
    %cst_96 = arith.constant dense<0.000000e+00> : vector<8x512xf32>
    %375 = tpu.matmul %373, %374, %cst_96 {dimension_numbers = #tpu.dot_dimension_numbers<[1], [0], [0], [1], [0, 0, 1, 1], [], []>} : vector<8x128xbf16>, vector<128x512xbf16>, vector<8x512xf32> -> vector<8x512xf32>
    %376 = arith.addf %347, %375 : vector<8x512xf32>
    %377 = arith.addf %376, %9 : vector<8x512xf32>
    %378 = vector.extract_strided_slice %377 {offsets = [0, 0], sizes = [8, 128], strides = [1, 1]} : vector<8x512xf32> to vector<8x128xf32>
    %379 = arith.negf %378 : vector<8x128xf32>
    %380 = math.exp %379 : vector<8x128xf32>
    %cst_97 = arith.constant 1.000000e+00 : f32
    %381 = vector.broadcast %cst_97 : f32 to vector<8x128xf32>
    %382 = arith.addf %381, %380 : vector<8x128xf32>
    %383 = arith.divf %381, %382 : vector<8x128xf32>
    %384 = vector.extract_strided_slice %377 {offsets = [0, 128], sizes = [8, 128], strides = [1, 1]} : vector<8x512xf32> to vector<8x128xf32>
    %385 = arith.negf %384 : vector<8x128xf32>
    %386 = math.exp %385 : vector<8x128xf32>
    %cst_98 = arith.constant 1.000000e+00 : f32
    %387 = vector.broadcast %cst_98 : f32 to vector<8x128xf32>
    %388 = arith.addf %387, %386 : vector<8x128xf32>
    %389 = arith.divf %387, %388 : vector<8x128xf32>
    %390 = vector.extract_strided_slice %377 {offsets = [0, 256], sizes = [8, 128], strides = [1, 1]} : vector<8x512xf32> to vector<8x128xf32>
    %391 = math.tanh %390 : vector<8x128xf32>
    %392 = vector.extract_strided_slice %377 {offsets = [0, 384], sizes = [8, 128], strides = [1, 1]} : vector<8x512xf32> to vector<8x128xf32>
    %393 = arith.negf %392 : vector<8x128xf32>
    %394 = math.exp %393 : vector<8x128xf32>
    %cst_99 = arith.constant 1.000000e+00 : f32
    %395 = vector.broadcast %cst_99 : f32 to vector<8x128xf32>
    %396 = arith.addf %395, %394 : vector<8x128xf32>
    %397 = arith.divf %395, %396 : vector<8x128xf32>
    %398 = arith.mulf %389, %335 : vector<8x128xf32>
    %399 = arith.mulf %383, %391 : vector<8x128xf32>
    %400 = arith.addf %398, %399 : vector<8x128xf32>
    %401 = math.tanh %400 : vector<8x128xf32>
    %402 = arith.mulf %397, %401 : vector<8x128xf32>
    %403 = arith.truncf %402 : vector<8x128xf32> to vector<8x128xbf16>
    %404 = vector.extract_strided_slice %0 {offsets = [0, 6], sizes = [8, 1], strides = [1, 1]} : vector<8x8xf32> to vector<8x1xf32>
    %405 = vector.broadcast %404 : vector<8x1xf32> to vector<8x512xf32>
    %406 = arith.mulf %405, %3 : vector<8x512xf32>
    %407 = arith.addf %406, %6 : vector<8x512xf32>
    %c0_100 = arith.constant 0 : index
    %c0_101 = arith.constant 0 : index
    %408 = vector.load %arg3[%c0_100, %c0_101] : memref<128x512xbf16, #tpu.memory_space<vmem>>, vector<128x512xbf16>
    %cst_102 = arith.constant dense<0.000000e+00> : vector<8x512xf32>
    %409 = tpu.matmul %373, %408, %cst_102 {dimension_numbers = #tpu.dot_dimension_numbers<[1], [0], [0], [1], [0, 0, 1, 1], [], []>} : vector<8x128xbf16>, vector<128x512xbf16>, vector<8x512xf32> -> vector<8x512xf32>
    %410 = arith.addf %407, %409 : vector<8x512xf32>
    %c0_103 = arith.constant 0 : index
    %c0_104 = arith.constant 0 : index
    %411 = vector.load %arg5[%c0_103, %c0_104] : memref<128x512xbf16, #tpu.memory_space<vmem>>, vector<128x512xbf16>
    %cst_105 = arith.constant dense<0.000000e+00> : vector<8x512xf32>
    %412 = tpu.matmul %403, %411, %cst_105 {dimension_numbers = #tpu.dot_dimension_numbers<[1], [0], [0], [1], [0, 0, 1, 1], [], []>} : vector<8x128xbf16>, vector<128x512xbf16>, vector<8x512xf32> -> vector<8x512xf32>
    %413 = vector.extract_strided_slice %410 {offsets = [0, 0], sizes = [8, 128], strides = [1, 1]} : vector<8x512xf32> to vector<8x128xf32>
    %414 = arith.negf %413 : vector<8x128xf32>
    %415 = math.exp %414 : vector<8x128xf32>
    %cst_106 = arith.constant 1.000000e+00 : f32
    %416 = vector.broadcast %cst_106 : f32 to vector<8x128xf32>
    %417 = arith.addf %416, %415 : vector<8x128xf32>
    %418 = arith.divf %416, %417 : vector<8x128xf32>
    %419 = vector.extract_strided_slice %410 {offsets = [0, 128], sizes = [8, 128], strides = [1, 1]} : vector<8x512xf32> to vector<8x128xf32>
    %420 = arith.negf %419 : vector<8x128xf32>
    %421 = math.exp %420 : vector<8x128xf32>
    %cst_107 = arith.constant 1.000000e+00 : f32
    %422 = vector.broadcast %cst_107 : f32 to vector<8x128xf32>
    %423 = arith.addf %422, %421 : vector<8x128xf32>
    %424 = arith.divf %422, %423 : vector<8x128xf32>
    %425 = vector.extract_strided_slice %410 {offsets = [0, 256], sizes = [8, 128], strides = [1, 1]} : vector<8x512xf32> to vector<8x128xf32>
    %426 = math.tanh %425 : vector<8x128xf32>
    %427 = vector.extract_strided_slice %410 {offsets = [0, 384], sizes = [8, 128], strides = [1, 1]} : vector<8x512xf32> to vector<8x128xf32>
    %428 = arith.negf %427 : vector<8x128xf32>
    %429 = math.exp %428 : vector<8x128xf32>
    %cst_108 = arith.constant 1.000000e+00 : f32
    %430 = vector.broadcast %cst_108 : f32 to vector<8x128xf32>
    %431 = arith.addf %430, %429 : vector<8x128xf32>
    %432 = arith.divf %430, %431 : vector<8x128xf32>
    %433 = arith.mulf %424, %370 : vector<8x128xf32>
    %434 = arith.mulf %418, %426 : vector<8x128xf32>
    %435 = arith.addf %433, %434 : vector<8x128xf32>
    %436 = math.tanh %435 : vector<8x128xf32>
    %437 = arith.mulf %432, %436 : vector<8x128xf32>
    %438 = arith.truncf %437 : vector<8x128xf32> to vector<8x128xbf16>
    %c0_109 = arith.constant 0 : index
    %c0_110 = arith.constant 0 : index
    %439 = vector.load %arg4[%c0_109, %c0_110] : memref<128x512xbf16, #tpu.memory_space<vmem>>, vector<128x512xbf16>
    %cst_111 = arith.constant dense<0.000000e+00> : vector<8x512xf32>
    %440 = tpu.matmul %438, %439, %cst_111 {dimension_numbers = #tpu.dot_dimension_numbers<[1], [0], [0], [1], [0, 0, 1, 1], [], []>} : vector<8x128xbf16>, vector<128x512xbf16>, vector<8x512xf32> -> vector<8x512xf32>
    %441 = arith.addf %412, %440 : vector<8x512xf32>
    %442 = arith.addf %441, %9 : vector<8x512xf32>
    %443 = vector.extract_strided_slice %442 {offsets = [0, 0], sizes = [8, 128], strides = [1, 1]} : vector<8x512xf32> to vector<8x128xf32>
    %444 = arith.negf %443 : vector<8x128xf32>
    %445 = math.exp %444 : vector<8x128xf32>
    %cst_112 = arith.constant 1.000000e+00 : f32
    %446 = vector.broadcast %cst_112 : f32 to vector<8x128xf32>
    %447 = arith.addf %446, %445 : vector<8x128xf32>
    %448 = arith.divf %446, %447 : vector<8x128xf32>
    %449 = vector.extract_strided_slice %442 {offsets = [0, 128], sizes = [8, 128], strides = [1, 1]} : vector<8x512xf32> to vector<8x128xf32>
    %450 = arith.negf %449 : vector<8x128xf32>
    %451 = math.exp %450 : vector<8x128xf32>
    %cst_113 = arith.constant 1.000000e+00 : f32
    %452 = vector.broadcast %cst_113 : f32 to vector<8x128xf32>
    %453 = arith.addf %452, %451 : vector<8x128xf32>
    %454 = arith.divf %452, %453 : vector<8x128xf32>
    %455 = vector.extract_strided_slice %442 {offsets = [0, 256], sizes = [8, 128], strides = [1, 1]} : vector<8x512xf32> to vector<8x128xf32>
    %456 = math.tanh %455 : vector<8x128xf32>
    %457 = vector.extract_strided_slice %442 {offsets = [0, 384], sizes = [8, 128], strides = [1, 1]} : vector<8x512xf32> to vector<8x128xf32>
    %458 = arith.negf %457 : vector<8x128xf32>
    %459 = math.exp %458 : vector<8x128xf32>
    %cst_114 = arith.constant 1.000000e+00 : f32
    %460 = vector.broadcast %cst_114 : f32 to vector<8x128xf32>
    %461 = arith.addf %460, %459 : vector<8x128xf32>
    %462 = arith.divf %460, %461 : vector<8x128xf32>
    %463 = arith.mulf %454, %400 : vector<8x128xf32>
    %464 = arith.mulf %448, %456 : vector<8x128xf32>
    %465 = arith.addf %463, %464 : vector<8x128xf32>
    %466 = math.tanh %465 : vector<8x128xf32>
    %467 = arith.mulf %462, %466 : vector<8x128xf32>
    %468 = arith.truncf %467 : vector<8x128xf32> to vector<8x128xbf16>
    %469 = vector.extract_strided_slice %0 {offsets = [0, 7], sizes = [8, 1], strides = [1, 1]} : vector<8x8xf32> to vector<8x1xf32>
    %470 = vector.broadcast %469 : vector<8x1xf32> to vector<8x512xf32>
    %471 = arith.mulf %470, %3 : vector<8x512xf32>
    %472 = arith.addf %471, %6 : vector<8x512xf32>
    %c0_115 = arith.constant 0 : index
    %c0_116 = arith.constant 0 : index
    %473 = vector.load %arg3[%c0_115, %c0_116] : memref<128x512xbf16, #tpu.memory_space<vmem>>, vector<128x512xbf16>
    %cst_117 = arith.constant dense<0.000000e+00> : vector<8x512xf32>
    %474 = tpu.matmul %438, %473, %cst_117 {dimension_numbers = #tpu.dot_dimension_numbers<[1], [0], [0], [1], [0, 0, 1, 1], [], []>} : vector<8x128xbf16>, vector<128x512xbf16>, vector<8x512xf32> -> vector<8x512xf32>
    %475 = arith.addf %472, %474 : vector<8x512xf32>
    %c0_118 = arith.constant 0 : index
    %c0_119 = arith.constant 0 : index
    %476 = vector.load %arg5[%c0_118, %c0_119] : memref<128x512xbf16, #tpu.memory_space<vmem>>, vector<128x512xbf16>
    %cst_120 = arith.constant dense<0.000000e+00> : vector<8x512xf32>
    %477 = tpu.matmul %468, %476, %cst_120 {dimension_numbers = #tpu.dot_dimension_numbers<[1], [0], [0], [1], [0, 0, 1, 1], [], []>} : vector<8x128xbf16>, vector<128x512xbf16>, vector<8x512xf32> -> vector<8x512xf32>
    %478 = vector.extract_strided_slice %475 {offsets = [0, 0], sizes = [8, 128], strides = [1, 1]} : vector<8x512xf32> to vector<8x128xf32>
    %479 = arith.negf %478 : vector<8x128xf32>
    %480 = math.exp %479 : vector<8x128xf32>
    %cst_121 = arith.constant 1.000000e+00 : f32
    %481 = vector.broadcast %cst_121 : f32 to vector<8x128xf32>
    %482 = arith.addf %481, %480 : vector<8x128xf32>
    %483 = arith.divf %481, %482 : vector<8x128xf32>
    %484 = vector.extract_strided_slice %475 {offsets = [0, 128], sizes = [8, 128], strides = [1, 1]} : vector<8x512xf32> to vector<8x128xf32>
    %485 = arith.negf %484 : vector<8x128xf32>
    %486 = math.exp %485 : vector<8x128xf32>
    %cst_122 = arith.constant 1.000000e+00 : f32
    %487 = vector.broadcast %cst_122 : f32 to vector<8x128xf32>
    %488 = arith.addf %487, %486 : vector<8x128xf32>
    %489 = arith.divf %487, %488 : vector<8x128xf32>
    %490 = vector.extract_strided_slice %475 {offsets = [0, 256], sizes = [8, 128], strides = [1, 1]} : vector<8x512xf32> to vector<8x128xf32>
    %491 = math.tanh %490 : vector<8x128xf32>
    %492 = vector.extract_strided_slice %475 {offsets = [0, 384], sizes = [8, 128], strides = [1, 1]} : vector<8x512xf32> to vector<8x128xf32>
    %493 = arith.negf %492 : vector<8x128xf32>
    %494 = math.exp %493 : vector<8x128xf32>
    %cst_123 = arith.constant 1.000000e+00 : f32
    %495 = vector.broadcast %cst_123 : f32 to vector<8x128xf32>
    %496 = arith.addf %495, %494 : vector<8x128xf32>
    %497 = arith.divf %495, %496 : vector<8x128xf32>
    %498 = arith.mulf %489, %435 : vector<8x128xf32>
    %499 = arith.mulf %483, %491 : vector<8x128xf32>
    %500 = arith.addf %498, %499 : vector<8x128xf32>
    %501 = math.tanh %500 : vector<8x128xf32>
    %502 = arith.mulf %497, %501 : vector<8x128xf32>
    %503 = arith.truncf %502 : vector<8x128xf32> to vector<8x128xbf16>
    %c0_124 = arith.constant 0 : index
    %c0_125 = arith.constant 0 : index
    %504 = vector.load %arg4[%c0_124, %c0_125] : memref<128x512xbf16, #tpu.memory_space<vmem>>, vector<128x512xbf16>
    %cst_126 = arith.constant dense<0.000000e+00> : vector<8x512xf32>
    %505 = tpu.matmul %503, %504, %cst_126 {dimension_numbers = #tpu.dot_dimension_numbers<[1], [0], [0], [1], [0, 0, 1, 1], [], []>} : vector<8x128xbf16>, vector<128x512xbf16>, vector<8x512xf32> -> vector<8x512xf32>
    %506 = arith.addf %477, %505 : vector<8x512xf32>
    %507 = arith.addf %506, %9 : vector<8x512xf32>
    %508 = vector.extract_strided_slice %507 {offsets = [0, 0], sizes = [8, 128], strides = [1, 1]} : vector<8x512xf32> to vector<8x128xf32>
    %509 = arith.negf %508 : vector<8x128xf32>
    %510 = math.exp %509 : vector<8x128xf32>
    %cst_127 = arith.constant 1.000000e+00 : f32
    %511 = vector.broadcast %cst_127 : f32 to vector<8x128xf32>
    %512 = arith.addf %511, %510 : vector<8x128xf32>
    %513 = arith.divf %511, %512 : vector<8x128xf32>
    %514 = vector.extract_strided_slice %507 {offsets = [0, 128], sizes = [8, 128], strides = [1, 1]} : vector<8x512xf32> to vector<8x128xf32>
    %515 = arith.negf %514 : vector<8x128xf32>
    %516 = math.exp %515 : vector<8x128xf32>
    %cst_128 = arith.constant 1.000000e+00 : f32
    %517 = vector.broadcast %cst_128 : f32 to vector<8x128xf32>
    %518 = arith.addf %517, %516 : vector<8x128xf32>
    %519 = arith.divf %517, %518 : vector<8x128xf32>
    %520 = vector.extract_strided_slice %507 {offsets = [0, 256], sizes = [8, 128], strides = [1, 1]} : vector<8x512xf32> to vector<8x128xf32>
    %521 = math.tanh %520 : vector<8x128xf32>
    %522 = vector.extract_strided_slice %507 {offsets = [0, 384], sizes = [8, 128], strides = [1, 1]} : vector<8x512xf32> to vector<8x128xf32>
    %523 = arith.negf %522 : vector<8x128xf32>
    %524 = math.exp %523 : vector<8x128xf32>
    %cst_129 = arith.constant 1.000000e+00 : f32
    %525 = vector.broadcast %cst_129 : f32 to vector<8x128xf32>
    %526 = arith.addf %525, %524 : vector<8x128xf32>
    %527 = arith.divf %525, %526 : vector<8x128xf32>
    %528 = arith.mulf %519, %465 : vector<8x128xf32>
    %529 = arith.mulf %513, %521 : vector<8x128xf32>
    %530 = arith.addf %528, %529 : vector<8x128xf32>
    %531 = math.tanh %530 : vector<8x128xf32>
    %532 = arith.mulf %527, %531 : vector<8x128xf32>
    %533 = arith.truncf %532 : vector<8x128xf32> to vector<8x128xbf16>
    %c0_130 = arith.constant 0 : index
    %c0_131 = arith.constant 0 : index
    %534 = vector.load %arg7[%c0_130, %c0_131] : memref<128x128xbf16, #tpu.memory_space<vmem>>, vector<128x128xbf16>
    %cst_132 = arith.constant dense<0.000000e+00> : vector<8x128xf32>
    %535 = tpu.matmul %533, %534, %cst_132 {dimension_numbers = #tpu.dot_dimension_numbers<[1], [0], [0], [1], [0, 0, 1, 1], [], []>} : vector<8x128xbf16>, vector<128x128xbf16>, vector<8x128xf32> -> vector<8x128xf32>
    %c0_133 = arith.constant 0 : index
    %c0_134 = arith.constant 0 : index
    %536 = vector.load %arg8[%c0_133, %c0_134] : memref<1x128xf32, #tpu.memory_space<vmem>>, vector<1x128xf32>
    %537 = vector.broadcast %536 : vector<1x128xf32> to vector<8x128xf32>
    %538 = arith.addf %535, %537 : vector<8x128xf32>
    %c0_135 = arith.constant 0 : index
    %c0_136 = arith.constant 0 : index
    %539 = vector.load %arg9[%c0_135, %c0_136] : memref<8x128xf32, #tpu.memory_space<vmem>>, vector<8x128xf32>
    tpu.vector_store %arg9[%c0_135, %c0_136], %538 {strides = array<i32>} : memref<8x128xf32, #tpu.memory_space<vmem>>, vector<8x128xf32>,
    return
  }
}

</mosaic_0001>

<bundles_post_ra>
// kernel: lstm_dqn_forward.1
= control target key start
LH: loop header
LB: loop body
LE: loop exit
PB: predicated region body
PF: predicated region fallthrough
CT: control target
= control target key end

     0   :  { %14 = vsyncpa [#allocation3], 0  ;;  %s6123_s0 = inlined_call_operand.vmem [shape: f32[8,8], index: 0, kind: input, shape index: {}]   ;;  %s6124_s1 = inlined_call_operand.vmem [shape: f32[1,512], index: 1, kind: input, shape index: {}]   ;;  %s6125_s2 = inlined_call_operand.vmem [shape: f32[1,512], index: 2, kind: input, shape index: {}]   ;;  %s6126_s3 = inlined_call_operand.hbm [shape: bf16[128,512], index: 3, kind: input, shape index: {}]   ;;  %s6127_s4 = inlined_call_operand.hbm [shape: bf16[128,512], index: 4, kind: input, shape index: {}]   ;;  %s6128_s5 = inlined_call_operand.hbm [shape: bf16[128,512], index: 5, kind: input, shape index: {}]   ;;  %s6129_s6 = inlined_call_operand.vmem [shape: f32[1,512], index: 6, kind: input, shape index: {}]   ;;  %s6130_s7 = inlined_call_operand.hbm [shape: bf16[128,128], index: 7, kind: input, shape index: {}]   ;;  %s6131_s8 = inlined_call_operand.vmem [shape: f32[1,128], index: 8, kind: input, shape index: {}]   ;;  %s6132_s9 = inlined_call_operand.vmem [shape: f32[8,128], index: 9, kind: output, shape index: {}]  }
   0x1   :  { %15 = vsyncpa [#allocation5], 0 }
   0x2   :  { %16 = vsyncpa [#allocation8], 0  ;;  %s4284_s30 = smov [#allocation4]   ;;  %s4285_s11 = smov [#allocation2]  }
   0x3   :  { %s40_s10 = sshll.u32 %s4284_s30, 4  ;;  %s28_s12 = sshll.u32 %s4285_s11, 4  ;;  %s41_s10 = int_to_ptr.vmem [resolvable:$true] %s40_s10  ;;  %s4352_s12 = int_to_ptr.vmem [resolvable:$true] %s28_s12 }
   0x4   :  { %s4190_s15 = scalar_lea.hbm %s6127_s4, 4096 }
   0x5   :  { %p4191_p0 = scmp.ne.s32.totalorder %s6127_s4, %s4190_s15  ;;  %p4194_p1 = scmp.lt.u32.totalorder %s4190_s15, %s6127_s4 }
   0x7   :  { %p4196_p2 = pnand %p4194_p1, %p4191_p0 }
   0x9   :  { %4199 = shalt.err (!%p4196_p2)
}
   0xa   :  { %s4200_s20 = scalar_lea.vmem %s41_s10, 4096  ;;  %p4205_p4 = scmp.lt.s32.totalorder %s41_s10, %s41_s10 }
   0xb   :  { %p4201_p3 = scmp.ne.s32.totalorder %s41_s10, %s4200_s20  ;;  %p4206_p5 = scmp.lt.s32.totalorder %s4200_s20, %s4200_s20 }
   0xd   :  { %p4207_p6 = por %p4206_p5, %p4205_p4 }
   0xf   :  { %p4208_p7 = pnand %p4207_p6, %p4201_p3 }
  0x11   :  { %4211 = shalt.err (!%p4208_p7)
}
  0x12   :  { %s4286_s21 = smov 256   ;;  %s4287_s22 = smov 16  }
  0x13   :  { %46 = dma.hbm_to_vmem [thread:$0]  %s6127_s4, 4096, %s41_s10, [#allocation5], %s4286_s21, %s4286_s21, %s4287_s22  }
  0x14   :  { %s4212_s27 = scalar_lea.hbm %s6126_s3, 4096 }
  0x15   :  { %p4213_p8 = scmp.ne.s32.totalorder %s6126_s3, %s4212_s27  ;;  %p4216_p9 = scmp.lt.u32.totalorder %s4212_s27, %s6126_s3 }
  0x17   :  { %p4218_p10 = pnand %p4216_p9, %p4213_p8 }
  0x19   :  { %4221 = shalt.err (!%p4218_p10)
}
  0x1a   :  { %s4222_s13 = scalar_lea.vmem %s4352_s12, 4096  ;;  %p4227_p12 = scmp.lt.s32.totalorder %s4352_s12, %s4352_s12 }
  0x1b   :  { %p4223_p11 = scmp.ne.s32.totalorder %s4352_s12, %s4222_s13  ;;  %p4228_p13 = scmp.lt.s32.totalorder %s4222_s13, %s4222_s13 }
  0x1d   :  { %p4229_p0 = por %p4228_p13, %p4227_p12 }
  0x1f   :  { %p4230_p1 = pnand %p4229_p0, %p4223_p11 }
  0x21   :  { %4233 = shalt.err (!%p4230_p1)
}
  0x22   :  { %34 = dma.hbm_to_vmem [thread:$0]  %s6126_s3, 4096, %s4352_s12, [#allocation3], %s4286_s21, %s4286_s21, %s4287_s22  }
  0x23   :  { %s4288_s14 = smov [#allocation6]   ;;  %s4289_s16 = smov [#allocation7]  }
  0x24   :  { %s52_s15 = sshll.u32 %s4288_s14, 4  ;;  %s66_s17 = sshll.u32 %s4289_s16, 4  ;;  %s53_s15 = int_to_ptr.vmem [resolvable:$true] %s52_s15  ;;  %s4389_s17 = int_to_ptr.vmem [resolvable:$true] %s66_s17 }
  0x25   :  { %s4234_s20 = scalar_lea.hbm %s6128_s5, 4096 }
  0x26   :  { %p4235_p2 = scmp.ne.s32.totalorder %s6128_s5, %s4234_s20  ;;  %p4238_p3 = scmp.lt.u32.totalorder %s4234_s20, %s6128_s5 }
  0x28   :  { %p4240_p4 = pnand %p4238_p3, %p4235_p2 }
  0x2a   :  { %4243 = shalt.err (!%p4240_p4)
}
  0x2b   :  { %s4244_s3 = scalar_lea.vmem %s53_s15, 4096  ;;  %p4249_p6 = scmp.lt.s32.totalorder %s53_s15, %s53_s15 }
  0x2c   :  { %p4245_p5 = scmp.ne.s32.totalorder %s53_s15, %s4244_s3  ;;  %p4250_p7 = scmp.lt.s32.totalorder %s4244_s3, %s4244_s3 }
  0x2e   :  { %p4251_p8 = por %p4250_p7, %p4249_p6 }
  0x30   :  { %p4252_p9 = pnand %p4251_p8, %p4245_p5 }
  0x32   :  { %4255 = shalt.err (!%p4252_p9)
}
  0x33   :  { %58 = dma.hbm_to_vmem [thread:$0]  %s6128_s5, 4096, %s53_s15, [#allocation5], %s4286_s21, %s4286_s21, %s4287_s22  }
  0x34   :  { %s4256_s30 = scalar_lea.hbm %s6130_s7, 1024 }
  0x35   :  { %p4257_p10 = scmp.ne.s32.totalorder %s6130_s7, %s4256_s30  ;;  %p4260_p11 = scmp.lt.u32.totalorder %s4256_s30, %s6130_s7 }
  0x37   :  { %p4262_p12 = pnand %p4260_p11, %p4257_p10 }
  0x39   :  { %4265 = shalt.err (!%p4262_p12)
}
  0x3a   :  { %s4266_s14 = scalar_lea.vmem %s4389_s17, 1024  ;;  %p4271_p0 = scmp.lt.s32.totalorder %s4389_s17, %s4389_s17 }
  0x3b   :  { %p4267_p13 = scmp.ne.s32.totalorder %s4389_s17, %s4266_s14  ;;  %p4272_p1 = scmp.lt.s32.totalorder %s4266_s14, %s4266_s14 }
  0x3d   :  { %p4273_p2 = por %p4272_p1, %p4271_p0 }
  0x3f   :  { %p4274_p3 = pnand %p4273_p2, %p4267_p13 }
  0x41   :  { %4277 = shalt.err (!%p4274_p3)
}
  0x42   :  { %s4290_s5 = smov 64   ;;  %s4291_s21 = smov 4  }
  0x43   :  { %72 = dma.hbm_to_vmem [thread:$0]  %s6130_s7, 1024, %s4389_s17, [#allocation8], %s4290_s5, %s4290_s5, %s4291_s21  }
  0x44   :  { %4278 = dma.done.wait [#allocation3], 4096  }
  0x45   :  { %4279 = vsyncadd [#allocation3], 4294963200 }
  0x46   :  { %4280 = dma.done.wait [#allocation5], 8192  }
  0x47   :  { %4281 = vsyncadd [#allocation5], 4294959104 }
  0x48   :  { %4282 = dma.done.wait [#allocation8], 1024  }
  0x49   :  { %4283 = vsyncadd [#allocation8], 4294966272  ;;  %v6133_v0 = vmov 0   ;;  %v4426_v1 = vld [vmem:[#allocation2 + $0x4] ss:$16 sps:$4 sm:$0xff]   ;;  %vm4301_vm0 = vmmov 0  }
  0x4a   :  { %392 = vmatprep.mubr.bf16.mxu0 %v6133_v0  ;;  %433 = vmatprep.mubr.bf16.mxu1 %v6133_v0  ;;  %v4428_v2 = vld [vmem:[#allocation2 + $0xc] ss:$16 sps:$4 sm:$0xff]   ;;  %v4431_v3 = vld [vmem:[#allocation2] ss:$16 sps:$4 sm:$0xff]   ;;  %v4433_v4 = vld [vmem:[#allocation2 + $0x8] ss:$16 sps:$4 sm:$0xff]  }
  0x4b   :  { %3579 = vset.pattern.permute.xlu0 %v6133_v0  ;;  %360 = vmatprep.subr.bf16.mxu0 %v4426_v1  ;;  %v4436_v5 = vld [vmem:[#allocation2 + $0x24] ss:$16 sps:$4 sm:$0xff]   ;;  %v4440_v6 = vld [vmem:[#allocation2 + $0x2c] ss:$16 sps:$4 sm:$0xff]   ;;  %v4442_v7 = vld [vmem:[#allocation2 + $0x20] ss:$16 sps:$4 sm:$0xff]  }
  0x4c   :  { %401 = vmatprep.subr.bf16.mxu1 %v4428_v2  ;;  %361 = vmatpush1.bf16.msra.mxu0 %v4431_v3  ;;  %v4445_v8 = vld [vmem:[#allocation2 + $0x28] ss:$16 sps:$4 sm:$0xff]   ;;  %v4448_v9 = vld [vmem:[#allocation2 + $0x44] ss:$16 sps:$4 sm:$0xff]   ;;  %v4450_v10 = vld [vmem:[#allocation2 + $0x4c] ss:$16 sps:$4 sm:$0xff]  }
  0x4d   :  { %402 = vmatpush1.bf16.msra.mxu1 %v4433_v4  ;;  %362 = vmatprep.subr.bf16.mxu0 %v4436_v5  ;;  %v4452_v11 = vld [vmem:[#allocation2 + $0x40] ss:$16 sps:$4 sm:$0xff]   ;;  %v4454_v12 = vld [vmem:[#allocation2 + $0x48] ss:$16 sps:$4 sm:$0xff]   ;;  %v4458_v13 = vld [vmem:[#allocation2 + $0x64] ss:$16 sps:$4 sm:$0xff]  }
  0x4e   :  { %403 = vmatprep.subr.bf16.mxu1 %v4440_v6  ;;  %v4462_v14 = vld [vmem:[#allocation2 + $0x6c] ss:$16 sps:$4 sm:$0xff]   ;;  %v4464_v15 = vld [vmem:[#allocation2 + $0x60] ss:$16 sps:$4 sm:$0xff]   ;;  %v4468_v16 = vld [vmem:[#allocation2 + $0x68] ss:$16 sps:$4 sm:$0xff]  }
  0x4f   :  { %v4470_v17 = vld [vmem:[#allocation2 + $0x84] ss:$16 sps:$4 sm:$0xff]   ;;  %v4474_v18 = vld [vmem:[#allocation2 + $0x8c] ss:$16 sps:$4 sm:$0xff]   ;;  %v4476_v19 = vld [vmem:[#allocation2 + $0x80] ss:$16 sps:$4 sm:$0xff]  }
  0x50   :  { %363 = vmatpush1.bf16.msra.mxu0 %v4442_v7  ;;  %v4478_v20 = vld [vmem:[#allocation2 + $0x88] ss:$16 sps:$4 sm:$0xff]   ;;  %v4482_v21 = vld [vmem:[#allocation2 + $0xa4] ss:$16 sps:$4 sm:$0xff]   ;;  %v4486_v22 = vld [vmem:[#allocation2 + $0xac] ss:$16 sps:$4 sm:$0xff]  }
  0x51   :  { %404 = vmatpush1.bf16.msra.mxu1 %v4445_v8  ;;  %364 = vmatprep.subr.bf16.mxu0 %v4448_v9  ;;  %v4490_v23 = vld [vmem:[#allocation2 + $0xa0] ss:$16 sps:$4 sm:$0xff]   ;;  %v4492_v24 = vld [vmem:[#allocation2 + $0xa8] ss:$16 sps:$4 sm:$0xff]   ;;  %v4496_v25 = vld [vmem:[#allocation2 + $0xc4] ss:$16 sps:$4 sm:$0xff]  }
  0x52   :  { %405 = vmatprep.subr.bf16.mxu1 %v4450_v10  ;;  %v4498_v26 = vld [vmem:[#allocation2 + $0xcc] ss:$16 sps:$4 sm:$0xff]   ;;  %v4503_v27 = vld [vmem:[%s6123_s0] sm:$0xff]  ;;  %v4507_v29 = vld [vmem:[#allocation2 + $0xc8] ss:$16 sps:$4 sm:$0xff]  }
  0x53   :  { %6494 = vst [vmem:[#allocation12_spill] sm:$0xff] %v4503_v27  ;;  %v4505_v28 = vld [vmem:[#allocation2 + $0xc0] ss:$16 sps:$4 sm:$0xff]   ;;  %157 = vperm.xlu0 %3579, %v4503_v27   ;;  %v4510_v30 = vld [vmem:[#allocation2 + $0xe4] ss:$16 sps:$4 sm:$0xff]  }
  0x54   :  { %365 = vmatpush1.bf16.msra.mxu0 %v4452_v11  ;;  %v4512_v31 = vld [vmem:[#allocation2 + $0xec] ss:$16 sps:$4 sm:$0xff]   ;;  %v4518_v32 = vld [vmem:[#allocation2 + $0xe0] ss:$16 sps:$4 sm:$0xff]   ;;  %v4520_v33 = vld [vmem:[#allocation2 + $0xe8] ss:$16 sps:$4 sm:$0xff]  }
  0x55   :  { %406 = vmatpush1.bf16.msra.mxu1 %v4454_v12  ;;  %366 = vmatprep.subr.bf16.mxu0 %v4458_v13  ;;  %v4532_v34 = vld [vmem:[#allocation4 + $0x4] ss:$16 sps:$4 sm:$0xff]   ;;  %v4534_v35 = vld [vmem:[#allocation4 + $0xc] ss:$16 sps:$4 sm:$0xff]   ;;  %v4536_v36 = vld [vmem:[#allocation4] ss:$16 sps:$4 sm:$0xff]  }
  0x56   :  { %407 = vmatprep.subr.bf16.mxu1 %v4462_v14  ;;  %v4538_v37 = vld [vmem:[#allocation4 + $0x8] ss:$16 sps:$4 sm:$0xff]   ;;  %v4544_v38 = vld [vmem:[#allocation4 + $0x24] ss:$16 sps:$4 sm:$0xff]   ;;  %v4546_v39 = vld [vmem:[#allocation4 + $0x2c] ss:$16 sps:$4 sm:$0xff]  }
  0x57   :  { %v4548_v40 = vld [vmem:[#allocation4 + $0x20] ss:$16 sps:$4 sm:$0xff]   ;;  %v4550_v41 = vld [vmem:[#allocation4 + $0x28] ss:$16 sps:$4 sm:$0xff]   ;;  %v4556_v42 = vld [vmem:[#allocation4 + $0x44] ss:$16 sps:$4 sm:$0xff]  }
  0x58   :  { %367 = vmatpush1.bf16.msra.mxu0 %v4464_v15  ;;  %6495 = vst [vmem:[#allocation13_spill] sm:$0xff] %v4556_v42  ;;  %v4558_v43 = vld [vmem:[#allocation4 + $0x4c] ss:$16 sps:$4 sm:$0xff]   ;;  %v4560_v44 = vld [vmem:[#allocation4 + $0x40] ss:$16 sps:$4 sm:$0xff]  }
  0x59   :  { %408 = vmatpush1.bf16.msra.mxu1 %v4468_v16  ;;  %368 = vmatprep.subr.bf16.mxu0 %v4470_v17  ;;  %6496 = vst [vmem:[#allocation14_spill] sm:$0xff] %v4558_v43  ;;  %6497 = vst [vmem:[#allocation15_spill] sm:$0xff] %v4560_v44  ;;  %v4562_v45 = vld [vmem:[#allocation4 + $0x48] ss:$16 sps:$4 sm:$0xff]   ;;  %v4568_v46 = vld [vmem:[#allocation4 + $0x64] ss:$16 sps:$4 sm:$0xff]  }
  0x5a   :  { %409 = vmatprep.subr.bf16.mxu1 %v4474_v18  ;;  %6498 = vst [vmem:[#allocation16_spill] sm:$0xff] %v4562_v45  ;;  %6499 = vst [vmem:[#allocation17_spill] sm:$0xff] %v4568_v46  ;;  %v4570_v47 = vld [vmem:[#allocation4 + $0x6c] ss:$16 sps:$4 sm:$0xff]   ;;  %v4572_v48 = vld [vmem:[#allocation4 + $0x60] ss:$16 sps:$4 sm:$0xff]  }
  0x5b   :  { %6500 = vst [vmem:[#allocation18_spill] sm:$0xff] %v4570_v47  ;;  %6501 = vst [vmem:[#allocation19_spill] sm:$0xff] %v4572_v48  ;;  %v4574_v49 = vld [vmem:[#allocation4 + $0x68] ss:$16 sps:$4 sm:$0xff]   ;;  %v4580_v50 = vld [vmem:[#allocation4 + $0x84] ss:$16 sps:$4 sm:$0xff]  }
  0x5c   :  { %369 = vmatpush1.bf16.msra.mxu0 %v4476_v19  ;;  %6502 = vst [vmem:[#allocation20_spill] sm:$0xff] %v4574_v49  ;;  %6503 = vst [vmem:[#allocation21_spill] sm:$0xff] %v4580_v50  ;;  %v4582_v51 = vld [vmem:[#allocation4 + $0x8c] ss:$16 sps:$4 sm:$0xff]   ;;  %v4584_v52 = vld [vmem:[#allocation4 + $0x80] ss:$16 sps:$4 sm:$0xff]  }
  0x5d   :  { %410 = vmatpush1.bf16.msra.mxu1 %v4478_v20  ;;  %370 = vmatprep.subr.bf16.mxu0 %v4482_v21  ;;  %6504 = vst [vmem:[#allocation22_spill] sm:$0xff] %v4582_v51  ;;  %6505 = vst [vmem:[#allocation23_spill] sm:$0xff] %v4584_v52  ;;  %v4586_v53 = vld [vmem:[#allocation4 + $0x88] ss:$16 sps:$4 sm:$0xff]   ;;  %v4591_v54 = vld [vmem:[#allocation4 + $0xa4] ss:$16 sps:$4 sm:$0xff]  }
  0x5e   :  { %411 = vmatprep.subr.bf16.mxu1 %v4486_v22  ;;  %6506 = vst [vmem:[#allocation24_spill] sm:$0xff] %v4586_v53  ;;  %6507 = vst [vmem:[#allocation25_spill] sm:$0xff] %v4591_v54  ;;  %v4593_v55 = vld [vmem:[#allocation4 + $0xac] ss:$16 sps:$4 sm:$0xff]   ;;  %v4595_v56 = vld [vmem:[#allocation4 + $0xa0] ss:$16 sps:$4 sm:$0xff]  }
  0x5f   :  { %6508 = vst [vmem:[#allocation26_spill] sm:$0xff] %v4593_v55  ;;  %6509 = vst [vmem:[#allocation27_spill] sm:$0xff] %v4595_v56  ;;  %v4598_v57 = vld [vmem:[#allocation4 + $0xa8] ss:$16 sps:$4 sm:$0xff]   ;;  %v4600_v58 = vld [vmem:[#allocation4 + $0xc4] ss:$16 sps:$4 sm:$0xff]  }
  0x60   :  { %371 = vmatpush1.bf16.msra.mxu0 %v4490_v23  ;;  %6510 = vst [vmem:[#allocation28_spill] sm:$0xff] %v4598_v57  ;;  %6511 = vst [vmem:[#allocation29_spill] sm:$0xff] %v4600_v58  ;;  %v4604_v59 = vld [vmem:[#allocation4 + $0xcc] ss:$16 sps:$4 sm:$0xff]   ;;  %v4607_v60 = vld [vmem:[#allocation4 + $0xc0] ss:$16 sps:$4 sm:$0xff]  }
  0x61   :  { %412 = vmatpush1.bf16.msra.mxu1 %v4492_v24  ;;  %372 = vmatprep.subr.bf16.mxu0 %v4496_v25  ;;  %6512 = vst [vmem:[#allocation30_spill] sm:$0xff] %v4604_v59  ;;  %6513 = vst [vmem:[#allocation31_spill] sm:$0xff] %v4607_v60  ;;  %v4611_v61 = vld [vmem:[#allocation4 + $0xc8] ss:$16 sps:$4 sm:$0xff]   ;;  %v4613_v62 = vld [vmem:[#allocation4 + $0xe4] ss:$16 sps:$4 sm:$0xff]  }
  0x62   :  { %413 = vmatprep.subr.bf16.mxu1 %v4498_v26  ;;  %6514 = vst [vmem:[#allocation32_spill] sm:$0xff] %v4611_v61  ;;  %6515 = vst [vmem:[#allocation33_spill] sm:$0xff] %v4613_v62  ;;  %v4616_v63 = vld [vmem:[#allocation4 + $0xec] ss:$16 sps:$4 sm:$0xff]  }
  0x63   :  { %6516 = vst [vmem:[#allocation34_spill] sm:$0xff] %v4616_v63 }
  0x64   :  { %373 = vmatpush1.bf16.msra.mxu0 %v4505_v28 }
  0x65   :  { %414 = vmatpush1.bf16.msra.mxu1 %v4507_v29  ;;  %374 = vmatprep.subr.bf16.mxu0 %v4510_v30 }
  0x66   :  { %415 = vmatprep.subr.bf16.mxu1 %v4512_v31 }
  0x68   :  { %375 = vmatpush1.bf16.msra.mxu0 %v4518_v32 }
  0x69   :  { %416 = vmatpush1.bf16.msra.mxu1 %v4520_v33  ;;  %695 = vmatprep.subr.bf16.mxu0 %v4532_v34 }
  0x6a   :  { %736 = vmatprep.subr.bf16.mxu1 %v4534_v35 }
  0x6b   :  { %393 = vmatmul.mubr.bf16.vlgmr.msra.gmra.mrb[0].mxu0 %v6133_v0 }
  0x6c   :  { %434 = vmatmul.mubr.bf16.vlgmr.msra.gmra.mrb[0].mxu1 %v6133_v0  ;;  %727 = vmatprep.mubr.bf16.mxu0 %v6133_v0 }
  0x6d   :  { %768 = vmatprep.mubr.bf16.mxu1 %v6133_v0  ;;  %696 = vmatpush1.bf16.msra.mxu0 %v4536_v36  ;;  %v4619_v0 = vld [vmem:[#allocation4 + $0xe0] ss:$16 sps:$4 sm:$0xff]  }
  0x6e   :  { %737 = vmatpush1.bf16.msra.mxu1 %v4538_v37  ;;  %697 = vmatprep.subr.bf16.mxu0 %v4544_v38  ;;  %6517 = vst [vmem:[#allocation35_spill] sm:$0xff] %v4619_v0 }
  0x6f   :  { %738 = vmatprep.subr.bf16.mxu1 %v4546_v39 }
  0x71   :  { %698 = vmatpush1.bf16.msra.mxu0 %v4548_v40 }
  0x72   :  { %739 = vmatpush1.bf16.msra.mxu1 %v4550_v41  ;;  %699 = vmatprep.subr.bf16.mxu0 %v4556_v42 }
  0x73   :  { %740 = vmatprep.subr.bf16.mxu1 %v4558_v43 }
  0x75   :  { %700 = vmatpush1.bf16.msra.mxu0 %v4560_v44 }
  0x76   :  { %741 = vmatpush1.bf16.msra.mxu1 %v4562_v45  ;;  %701 = vmatprep.subr.bf16.mxu0 %v4568_v46 }
  0x77   :  { %742 = vmatprep.subr.bf16.mxu1 %v4570_v47 }
  0x79   :  { %702 = vmatpush1.bf16.msra.mxu0 %v4572_v48 }
  0x7a   :  { %743 = vmatpush1.bf16.msra.mxu1 %v4574_v49  ;;  %703 = vmatprep.subr.bf16.mxu0 %v4580_v50 }
  0x7b   :  { %744 = vmatprep.subr.bf16.mxu1 %v4582_v51 }
  0x7d   :  { %704 = vmatpush1.bf16.msra.mxu0 %v4584_v52 }
  0x7e   :  { %745 = vmatpush1.bf16.msra.mxu1 %v4586_v53  ;;  %705 = vmatprep.subr.bf16.mxu0 %v4591_v54 }
  0x7f   :  { %746 = vmatprep.subr.bf16.mxu1 %v4593_v55 }
  0x81   :  { %706 = vmatpush1.bf16.msra.mxu0 %v4595_v56  ;;  %v4623_v56 = vld [vmem:[#allocation4 + $0xe8] ss:$16 sps:$4 sm:$0xff]  }
  0x82   :  { %747 = vmatpush1.bf16.msra.mxu1 %v4598_v57  ;;  %707 = vmatprep.subr.bf16.mxu0 %v4600_v58  ;;  %6518 = vst [vmem:[#allocation36_spill] sm:$0xff] %v4623_v56  ;;  %v4625_v57 = vld [vmem:[#allocation6 + $0x4] ss:$16 sps:$4 sm:$0xff]   ;;  %v4628_v58 = vld [vmem:[#allocation6 + $0xc] ss:$16 sps:$4 sm:$0xff]  }
  0x83   :  { %748 = vmatprep.subr.bf16.mxu1 %v4604_v59  ;;  %6519 = vst [vmem:[#allocation37_spill] sm:$0xff] %v4625_v57  ;;  %6520 = vst [vmem:[#allocation38_spill] sm:$0xff] %v4628_v58 }
  0x85   :  { %708 = vmatpush1.bf16.msra.mxu0 %v4607_v60  ;;  %v91_v60 = vlaneseq }
  0x86   :  { %749 = vmatpush1.bf16.msra.mxu1 %v4611_v61  ;;  %709 = vmatprep.subr.bf16.mxu0 %v4613_v62  ;;  %v89_v62 = vld [vmem:[%s6124_s1] sm:$0xf] }
  0x87   :  { %750 = vmatprep.subr.bf16.mxu1 %v4616_v63  ;;  %v92_v61 = vshrl.u32 %v91_v60, 7  ;;  %v4293_v63 = vmov 1   ;;  %v111_v60 = vld [vmem:[%s6125_s2] sm:$0xf] }
  0x88   :  { %3580 = vset.pattern.permute.xlu0 %v4293_v63 }
  0x89   :  { %710 = vmatpush1.bf16.msra.mxu0 %v4619_v0  ;;  %v4634_v59 = vsub.s32 0, %v92_v61  ;;  %v4639_v55 = vsub.s32 1, %v92_v61  ;;  %1049 = vperm.xlu0 %3580, %v4503_v27   ;;  %v4651_v0 = vsub.s32 3, %v92_v61  ;;  %v4665_v50 = vsub.s32 2, %v92_v61 }
  0x8a   :  { %751 = vmatpush1.bf16.msra.mxu1 %v4623_v56  ;;  %937 = vmatprep.subr.bf16.mxu0 %v4625_v57 }
  0x8b   :  { %978 = vmatprep.subr.bf16.mxu1 %v4628_v58  ;;  %6521 = vst [vmem:[#allocation39_spill] sm:$0xff] %v4634_v59  ;;  %6522 = vst [vmem:[#allocation40_spill] sm:$0xff] %v4639_v55  ;;  %v4643_v56 = vrot.slane %v89_v62, %v4634_v59  ;;  %v4649_v58 = vrot.slane %v89_v62, %v4639_v55  ;;  %v4654_v54 = vrot.slane %v111_v60, %v4634_v59 }
  0x8c   :  { %6525 = vst [vmem:[#allocation43_spill] sm:$0xff] %v4651_v0  ;;  %v4658_v27 = vrot.slane %v111_v60, %v4639_v55  ;;  %v4662_v52 = vrot.slane %v89_v62, %v4651_v0  ;;  %v4669_v59 = vrot.slane %v111_v60, %v4651_v0  ;;  %v4673_v46 = vrot.slane %v89_v62, %v4665_v50 }
  0x8d   :  { %6523 = vst [vmem:[#allocation41_spill] sm:$0xff] %v4643_v56  ;;  %6524 = vst [vmem:[#allocation42_spill] sm:$0xff] %v4649_v58  ;;  %v4677_v0 = vrot.slane %v111_v60, %v4665_v50 }
  0x8e   :  { %6526 = vst [vmem:[#allocation44_spill] sm:$0xff] %v4654_v54  ;;  %6527 = vst [vmem:[#allocation45_spill] sm:$0xff] %v4658_v27 }
  0x8f   :  { %6528 = vst [vmem:[#allocation46_spill] sm:$0xff] %v4662_v52 }
  0xd2   :  { %v158_v57 = vpop.permute.xlu0 %157 }
  0xd3   :  { %v160_v63 = vmul.f32 %v158_v57, %v4643_v56  ;;  %v161_v53 = vmul.f32 %v158_v57, %v4649_v58  ;;  %v163_v56 = vmul.f32 %v158_v57, %v4662_v52 }
  0xd5   :  { %v164_v51 = vadd.f32 %v160_v63, %v4654_v54  ;;  %v165_v49 = vadd.f32 %v161_v53, %v4658_v27  ;;  %v167_v27 = vadd.f32 %v163_v56, %v4669_v59 }
 0x13e   :  { %v394_v48 = vpop.f32.mrb[0].mxu0 }
 0x13f   :  { %v435_v47 = vpop.f32.mrb[0].mxu1  ;;  %v442_v55 = vadd.f32 %v394_v48, %v164_v51  ;;  %v396_v58 = vpop.f32.mrb[1].mxu0  ;;  %v162_v48 = vmul.f32 %v158_v57, %v4673_v46 }
 0x140   :  { %v437_v45 = vpop.f32.mrb[1].mxu1  ;;  %v443_v44 = vadd.f32 %v396_v58, %v165_v49  ;;  %v398_v43 = vpop.f32.mrb[2].mxu0 }
 0x141   :  { %v439_v63 = vpop.f32.mrb[2].mxu1  ;;  %v3411_v61 = vmul.f32 -1.442695, %v442_v55  ;;  %v399_v54 = vpop.f32.mrb[3].mxu0  ;;  %v445_v51 = vadd.f32 %v437_v45, %v167_v27  ;;  %v166_v62 = vadd.f32 %v162_v48, %v4677_v0  ;;  %v4686_v48 = vld [vmem:[#allocation6 + $0x8] ss:$16 sps:$4 sm:$0xff]  }
 0x142   :  { %v440_v42 = vpop.f32.mrb[3].mxu1  ;;  %v3412_v53 = vmul.f32 -1.442695, %v443_v44 }
 0x143   :  { %3740 = vpow2.f32 %v3411_v61  ;;  %v3413_v52 = vmul.f32 -1.442695, %v445_v51  ;;  %v444_v49 = vadd.f32 %v435_v47, %v166_v62  ;;  %v4690_v62 = vld [vmem:[#allocation6 + $0x24] ss:$16 sps:$4 sm:$0xff]  }
 0x144   :  { %3742 = vpow2.f32 %v3412_v53 }
 0x145   :  { %3744 = vpow2.f32 %v3413_v52  ;;  %v4684_v52 = vld [vmem:[#allocation6] ss:$16 sps:$4 sm:$0xff]  }
 0x146   :  { %3746 = vtanh.f32 %v444_v49  ;;  %v4692_v49 = vld [vmem:[#allocation6 + $0x2c] ss:$16 sps:$4 sm:$0xff]  }
 0x14d   :  { %v3741_v43 = vpop.eup %3740 }
 0x14e   :  { %v3743_v58 = vpop.eup %3742  ;;  %v481_v55 = vadd.f32 1.0, %v3741_v43  ;;  %v4698_v43 = vld [vmem:[#allocation6 + $0x20] ss:$16 sps:$4 sm:$0xff]  }
 0x14f   :  { %v487_v42 = vadd.f32 1.0, %v3743_v58  ;;  %v3745_v44 = vpop.eup %3744  ;;  %v4700_v58 = vld [vmem:[#allocation6 + $0x28] ss:$16 sps:$4 sm:$0xff]  }
 0x150   :  { %3748 = vrcp.f32 %v481_v55  ;;  %v3747_v54 = vpop.eup %3746  ;;  %v494_v57 = vadd.f32 1.0, %v3745_v44  ;;  %v4704_v55 = vld [vmem:[#allocation6 + $0x44] ss:$16 sps:$4 sm:$0xff]   ;;  %v6529_v44 = vmov 0  }
 0x151   :  { %3750 = vrcp.f32 %v487_v42  ;;  %v4706_v42 = vld [vmem:[#allocation6 + $0x4c] ss:$16 sps:$4 sm:$0xff]  }
 0x152   :  { %3752 = vrcp.f32 %v494_v57  ;;  %v4724_v57 = vld [vmem:[#allocation6 + $0x60] ss:$16 sps:$4 sm:$0xff]  }
 0x153   :  { %6534 = vst [vmem:[#allocation51_spill] sm:$0xff] %v4724_v57 }
 0x15a   :  { %v3749_v56 = vpop.eup %3748 }
 0x15b   :  { %v3751_v60 = vpop.eup %3750  ;;  %v498_v63 = vmul.f32 %v3749_v56, %v3747_v54  ;;  %v4712_v54 = vld [vmem:[#allocation6 + $0x40] ss:$16 sps:$4 sm:$0xff]   ;;  %v4714_v56 = vld [vmem:[#allocation6 + $0x48] ss:$16 sps:$4 sm:$0xff]  }
 0x15c   :  { %v497_v61 = vmul.f32 0.0, %v3751_v60  ;;  %v3753_v45 = vpop.eup %3752  ;;  %6530 = vst [vmem:[#allocation47_spill] sm:$0xff] %v4712_v54  ;;  %6531 = vst [vmem:[#allocation48_spill] sm:$0xff] %v4714_v56  ;;  %v4718_v60 = vld [vmem:[#allocation6 + $0x64] ss:$16 sps:$4 sm:$0xff]  }
 0x15d   :  { %6532 = vst [vmem:[#allocation49_spill] sm:$0xff] %v4718_v60 }
 0x15e   :  { %v4681_v27 = vadd.f32 %v498_v63, %v497_v61  ;;  %v4720_v63 = vld [vmem:[#allocation6 + $0x6c] ss:$16 sps:$4 sm:$0xff]   ;;  %v4726_v61 = vld [vmem:[#allocation6 + $0x68] ss:$16 sps:$4 sm:$0xff]  }
 0x15f   :  { %6533 = vst [vmem:[#allocation50_spill] sm:$0xff] %v4720_v63  ;;  %6535 = vst [vmem:[#allocation52_spill] sm:$0xff] %v4726_v61 }
 0x160   :  { %3754 = vtanh.f32 %v4681_v27 }
 0x16a   :  { %v3755_v47 = vpop.eup %3754 }
 0x16b   :  { %v501_v53 = vmul.f32 %v3755_v47, %v3753_v45  ;;  %v4730_v45 = vld [vmem:[#allocation6 + $0x84] ss:$16 sps:$4 sm:$0xff]   ;;  %v4732_v47 = vld [vmem:[#allocation6 + $0x8c] ss:$16 sps:$4 sm:$0xff]  }
 0x16c   :  { %6536 = vst [vmem:[#allocation53_spill] sm:$0xff] %v4730_v45  ;;  %6537 = vst [vmem:[#allocation54_spill] sm:$0xff] %v4732_v47 }
 0x16d   :  { %v4688_v51 = vpack.c.bf16 %v501_v53, %v501_v53  ;;  %v4736_v53 = vld [vmem:[#allocation6 + $0x80] ss:$16 sps:$4 sm:$0xff]  }
 0x16e   :  { %6538 = vst [vmem:[#allocation55_spill] sm:$0xff] %v4736_v53 }
 0x16f   :  { %728 = vmatmul.mubr.bf16.vlgmr.msra.gmra.mrb[4].mxu0 %v4688_v51  ;;  %769 = vmatmul.mubr.bf16.vlgmr.msra.gmra.mrb[4].mxu1 %v4688_v51 }
 0x170   :  { %938 = vmatpush1.bf16.msra.mxu0 %v4684_v52  ;;  %979 = vmatpush1.bf16.msra.mxu1 %v4686_v48 }
 0x171   :  { %939 = vmatprep.subr.bf16.mxu0 %v4690_v62  ;;  %980 = vmatprep.subr.bf16.mxu1 %v4692_v49 }
 0x172   :  { %969 = vmatprep.mubr.bf16.mxu0 %v6529_v44  ;;  %1010 = vmatprep.mubr.bf16.mxu1 %v6529_v44 }
 0x174   :  { %940 = vmatpush1.bf16.msra.mxu0 %v4698_v43  ;;  %981 = vmatpush1.bf16.msra.mxu1 %v4700_v58 }
 0x175   :  { %941 = vmatprep.subr.bf16.mxu0 %v4704_v55  ;;  %982 = vmatprep.subr.bf16.mxu1 %v4706_v42 }
 0x178   :  { %942 = vmatpush1.bf16.msra.mxu0 %v4712_v54  ;;  %983 = vmatpush1.bf16.msra.mxu1 %v4714_v56  ;;  %v4738_v54 = vld [vmem:[#allocation6 + $0x88] ss:$16 sps:$4 sm:$0xff]   ;;  %v4742_v56 = vld [vmem:[#allocation6 + $0xa4] ss:$16 sps:$4 sm:$0xff]  }
 0x179   :  { %943 = vmatprep.subr.bf16.mxu0 %v4718_v60  ;;  %984 = vmatprep.subr.bf16.mxu1 %v4720_v63  ;;  %6539 = vst [vmem:[#allocation56_spill] sm:$0xff] %v4738_v54  ;;  %6540 = vst [vmem:[#allocation57_spill] sm:$0xff] %v4742_v56  ;;  %v4744_v60 = vld [vmem:[#allocation6 + $0xac] ss:$16 sps:$4 sm:$0xff]   ;;  %v4748_v63 = vld [vmem:[#allocation6 + $0xa0] ss:$16 sps:$4 sm:$0xff]  }
 0x17a   :  { %6541 = vst [vmem:[#allocation58_spill] sm:$0xff] %v4744_v60  ;;  %6542 = vst [vmem:[#allocation59_spill] sm:$0xff] %v4748_v63 }
 0x17c   :  { %944 = vmatpush1.bf16.msra.mxu0 %v4724_v57  ;;  %985 = vmatpush1.bf16.msra.mxu1 %v4726_v61  ;;  %v4750_v57 = vld [vmem:[#allocation6 + $0xa8] ss:$16 sps:$4 sm:$0xff]   ;;  %v4754_v61 = vld [vmem:[#allocation6 + $0xc4] ss:$16 sps:$4 sm:$0xff]  }
 0x17d   :  { %945 = vmatprep.subr.bf16.mxu0 %v4730_v45  ;;  %986 = vmatprep.subr.bf16.mxu1 %v4732_v47  ;;  %v4756_v45 = vld [vmem:[#allocation6 + $0xcc] ss:$16 sps:$4 sm:$0xff]   ;;  %v4760_v47 = vld [vmem:[#allocation6 + $0xc0] ss:$16 sps:$4 sm:$0xff]  }
 0x180   :  { %946 = vmatpush1.bf16.msra.mxu0 %v4736_v53  ;;  %987 = vmatpush1.bf16.msra.mxu1 %v4738_v54  ;;  %v4762_v53 = vld [vmem:[#allocation6 + $0xc8] ss:$16 sps:$4 sm:$0xff]   ;;  %v4766_v54 = vld [vmem:[#allocation6 + $0xe4] ss:$16 sps:$4 sm:$0xff]  }
 0x181   :  { %947 = vmatprep.subr.bf16.mxu0 %v4742_v56  ;;  %988 = vmatprep.subr.bf16.mxu1 %v4744_v60  ;;  %v4768_v56 = vld [vmem:[#allocation6 + $0xec] ss:$16 sps:$4 sm:$0xff]   ;;  %v4772_v60 = vld [vmem:[#allocation6 + $0xe0] ss:$16 sps:$4 sm:$0xff]  }
 0x184   :  { %948 = vmatpush1.bf16.msra.mxu0 %v4748_v63  ;;  %989 = vmatpush1.bf16.msra.mxu1 %v4750_v57  ;;  %v4774_v63 = vld [vmem:[#allocation6 + $0xe8] ss:$16 sps:$4 sm:$0xff]  }
 0x185   :  { %949 = vmatprep.subr.bf16.mxu0 %v4754_v61  ;;  %990 = vmatprep.subr.bf16.mxu1 %v4756_v45 }
 0x188   :  { %950 = vmatpush1.bf16.msra.mxu0 %v4760_v47  ;;  %991 = vmatpush1.bf16.msra.mxu1 %v4762_v53 }
 0x189   :  { %951 = vmatprep.subr.bf16.mxu0 %v4766_v54  ;;  %992 = vmatprep.subr.bf16.mxu1 %v4768_v56 }
 0x18c   :  { %952 = vmatpush1.bf16.msra.mxu0 %v4772_v60  ;;  %993 = vmatpush1.bf16.msra.mxu1 %v4774_v63 }
 0x18d   :  { %1060 = vmatprep.subr.bf16.mxu0 %v4426_v1  ;;  %1101 = vmatprep.subr.bf16.mxu1 %v4428_v2  ;;  %v6543_v1 = vld [vmem:[#allocation13_spill] sm:$0xff]  ;;  %v6544_v2 = vld [vmem:[#allocation14_spill] sm:$0xff] }
 0x18f   :  { %970 = vmatmul.mubr.bf16.vlgmr.msra.gmra.mrb[8].mxu0 %v6529_v44  ;;  %1011 = vmatmul.mubr.bf16.vlgmr.msra.gmra.mrb[8].mxu1 %v6529_v44 }
 0x190   :  { %1061 = vmatpush1.bf16.msra.mxu0 %v4431_v3  ;;  %1102 = vmatpush1.bf16.msra.mxu1 %v4433_v4  ;;  %v6545_v3 = vld [vmem:[#allocation15_spill] sm:$0xff]  ;;  %v6546_v4 = vld [vmem:[#allocation16_spill] sm:$0xff] }
 0x191   :  { %1062 = vmatprep.subr.bf16.mxu0 %v4436_v5  ;;  %1103 = vmatprep.subr.bf16.mxu1 %v4440_v6  ;;  %v6547_v5 = vld [vmem:[#allocation17_spill] sm:$0xff]  ;;  %v6548_v6 = vld [vmem:[#allocation18_spill] sm:$0xff] }
 0x192   :  { %1092 = vmatprep.mubr.bf16.mxu0 %v6529_v44  ;;  %1133 = vmatprep.mubr.bf16.mxu1 %v6529_v44 }
 0x194   :  { %1063 = vmatpush1.bf16.msra.mxu0 %v4442_v7  ;;  %1104 = vmatpush1.bf16.msra.mxu1 %v4445_v8  ;;  %v6549_v7 = vld [vmem:[#allocation19_spill] sm:$0xff]  ;;  %v6550_v8 = vld [vmem:[#allocation20_spill] sm:$0xff] }
 0x195   :  { %1064 = vmatprep.subr.bf16.mxu0 %v4448_v9  ;;  %1105 = vmatprep.subr.bf16.mxu1 %v4450_v10  ;;  %v6551_v9 = vld [vmem:[#allocation21_spill] sm:$0xff]  ;;  %v6552_v10 = vld [vmem:[#allocation22_spill] sm:$0xff] }
 0x198   :  { %1065 = vmatpush1.bf16.msra.mxu0 %v4452_v11  ;;  %1106 = vmatpush1.bf16.msra.mxu1 %v4454_v12  ;;  %v6553_v11 = vld [vmem:[#allocation23_spill] sm:$0xff]  ;;  %v6554_v12 = vld [vmem:[#allocation24_spill] sm:$0xff] }
 0x199   :  { %1066 = vmatprep.subr.bf16.mxu0 %v4458_v13  ;;  %1107 = vmatprep.subr.bf16.mxu1 %v4462_v14  ;;  %v6555_v13 = vld [vmem:[#allocation25_spill] sm:$0xff]  ;;  %v6556_v14 = vld [vmem:[#allocation26_spill] sm:$0xff] }
 0x19c   :  { %1067 = vmatpush1.bf16.msra.mxu0 %v4464_v15  ;;  %1108 = vmatpush1.bf16.msra.mxu1 %v4468_v16  ;;  %v6557_v15 = vld [vmem:[#allocation27_spill] sm:$0xff]  ;;  %v6558_v16 = vld [vmem:[#allocation28_spill] sm:$0xff] }
 0x19d   :  { %1068 = vmatprep.subr.bf16.mxu0 %v4470_v17  ;;  %1109 = vmatprep.subr.bf16.mxu1 %v4474_v18  ;;  %v6559_v17 = vld [vmem:[#allocation29_spill] sm:$0xff]  ;;  %v6560_v18 = vld [vmem:[#allocation30_spill] sm:$0xff] }
 0x1a0   :  { %1069 = vmatpush1.bf16.msra.mxu0 %v4476_v19  ;;  %1110 = vmatpush1.bf16.msra.mxu1 %v4478_v20  ;;  %v6561_v19 = vld [vmem:[#allocation31_spill] sm:$0xff]  ;;  %v6562_v20 = vld [vmem:[#allocation32_spill] sm:$0xff] }
 0x1a1   :  { %1070 = vmatprep.subr.bf16.mxu0 %v4482_v21  ;;  %1111 = vmatprep.subr.bf16.mxu1 %v4486_v22  ;;  %v6563_v21 = vld [vmem:[#allocation33_spill] sm:$0xff]  ;;  %v6564_v22 = vld [vmem:[#allocation34_spill] sm:$0xff] }
 0x1a4   :  { %1071 = vmatpush1.bf16.msra.mxu0 %v4490_v23  ;;  %1112 = vmatpush1.bf16.msra.mxu1 %v4492_v24  ;;  %v6565_v23 = vld [vmem:[#allocation35_spill] sm:$0xff]  ;;  %v6566_v24 = vld [vmem:[#allocation36_spill] sm:$0xff] }
 0x1a5   :  { %1072 = vmatprep.subr.bf16.mxu0 %v4496_v25  ;;  %1113 = vmatprep.subr.bf16.mxu1 %v4498_v26  ;;  %v6567_v25 = vld [vmem:[#allocation37_spill] sm:$0xff]  ;;  %v6568_v26 = vld [vmem:[#allocation38_spill] sm:$0xff] }
 0x1a8   :  { %1073 = vmatpush1.bf16.msra.mxu0 %v4505_v28  ;;  %1114 = vmatpush1.bf16.msra.mxu1 %v4507_v29 }
 0x1a9   :  { %1074 = vmatprep.subr.bf16.mxu0 %v4510_v30  ;;  %1115 = vmatprep.subr.bf16.mxu1 %v4512_v31 }
 0x1ac   :  { %1075 = vmatpush1.bf16.msra.mxu0 %v4518_v32  ;;  %1116 = vmatpush1.bf16.msra.mxu1 %v4520_v33 }
 0x1ad   :  { %1171 = vmatprep.subr.bf16.mxu0 %v4532_v34  ;;  %1212 = vmatprep.subr.bf16.mxu1 %v4534_v35 }
 0x1af   :  { %1093 = vmatmul.mubr.bf16.vlgmr.msra.gmra.mrb[12].mxu0 %v4688_v51  ;;  %1134 = vmatmul.mubr.bf16.vlgmr.msra.gmra.mrb[12].mxu1 %v4688_v51 }
 0x1b0   :  { %1172 = vmatpush1.bf16.msra.mxu0 %v4536_v36  ;;  %1213 = vmatpush1.bf16.msra.mxu1 %v4538_v37 }
 0x1b1   :  { %1173 = vmatprep.subr.bf16.mxu0 %v4544_v38  ;;  %1214 = vmatprep.subr.bf16.mxu1 %v4546_v39 }
 0x1b2   :  { %1203 = vmatprep.mubr.bf16.mxu0 %v6529_v44  ;;  %1244 = vmatprep.mubr.bf16.mxu1 %v6529_v44 }
 0x1b4   :  { %1174 = vmatpush1.bf16.msra.mxu0 %v4548_v40  ;;  %1215 = vmatpush1.bf16.msra.mxu1 %v4550_v41 }
 0x1b5   :  { %1175 = vmatprep.subr.bf16.mxu0 %v6543_v1  ;;  %1216 = vmatprep.subr.bf16.mxu1 %v6544_v2 }
 0x1b8   :  { %1176 = vmatpush1.bf16.msra.mxu0 %v6545_v3  ;;  %1217 = vmatpush1.bf16.msra.mxu1 %v6546_v4 }
 0x1b9   :  { %1177 = vmatprep.subr.bf16.mxu0 %v6547_v5  ;;  %1218 = vmatprep.subr.bf16.mxu1 %v6548_v6 }
 0x1bc   :  { %1178 = vmatpush1.bf16.msra.mxu0 %v6549_v7  ;;  %1219 = vmatpush1.bf16.msra.mxu1 %v6550_v8 }
 0x1bd   :  { %1179 = vmatprep.subr.bf16.mxu0 %v6551_v9  ;;  %1220 = vmatprep.subr.bf16.mxu1 %v6552_v10 }
 0x1c0   :  { %1180 = vmatpush1.bf16.msra.mxu0 %v6553_v11  ;;  %1221 = vmatpush1.bf16.msra.mxu1 %v6554_v12 }
 0x1c1   :  { %1181 = vmatprep.subr.bf16.mxu0 %v6555_v13  ;;  %1222 = vmatprep.subr.bf16.mxu1 %v6556_v14 }
 0x1c4   :  { %1182 = vmatpush1.bf16.msra.mxu0 %v6557_v15  ;;  %1223 = vmatpush1.bf16.msra.mxu1 %v6558_v16 }
 0x1c5   :  { %1183 = vmatprep.subr.bf16.mxu0 %v6559_v17  ;;  %1224 = vmatprep.subr.bf16.mxu1 %v6560_v18 }
 0x1c8   :  { %1184 = vmatpush1.bf16.msra.mxu0 %v6561_v19  ;;  %1225 = vmatpush1.bf16.msra.mxu1 %v6562_v20 }
 0x1c9   :  { %1185 = vmatprep.subr.bf16.mxu0 %v6563_v21  ;;  %1226 = vmatprep.subr.bf16.mxu1 %v6564_v22  ;;  %v4857_v22 = vld [vmem:[%s6129_s6] sm:$0xf] }
 0x1cc   :  { %1186 = vmatpush1.bf16.msra.mxu0 %v6565_v23  ;;  %1227 = vmatpush1.bf16.msra.mxu1 %v6566_v24  ;;  %v6569_v23 = vld [vmem:[#allocation39_spill] sm:$0xff] }
 0x1cd   :  { %1253 = vmatprep.subr.bf16.mxu0 %v6567_v25  ;;  %1294 = vmatprep.subr.bf16.mxu1 %v6568_v26  ;;  %v4861_v24 = vrot.slane %v4857_v22, %v6569_v23  ;;  %v6571_v26 = vld [vmem:[#allocation40_spill] sm:$0xff] }
 0x1ce   :  { %v4865_v19 = vrot.slane %v4857_v22, %v6571_v26 }
 0x1cf   :  { %6570 = vst [vmem:[#allocation13_spill] sm:$0xff] %v4861_v24 }
 0x1d0   :  { %6572 = vst [vmem:[#allocation14_spill] sm:$0xff] %v4865_v19 }
 0x242   :  { %v729_v28 = vpop.f32.mrb[4].mxu0  ;;  %v770_v29 = vpop.f32.mrb[4].mxu1 }
 0x243   :  { %v731_v30 = vpop.f32.mrb[5].mxu0  ;;  %v772_v31 = vpop.f32.mrb[5].mxu1 }
 0x244   :  { %v733_v32 = vpop.f32.mrb[6].mxu0  ;;  %v774_v33 = vpop.f32.mrb[6].mxu1 }
 0x245   :  { %v734_v51 = vpop.f32.mrb[7].mxu0  ;;  %v775_v20 = vpop.f32.mrb[7].mxu1 }
 0x262   :  { %v971_v25 = vpop.f32.mrb[8].mxu0  ;;  %v1012_v21 = vpop.f32.mrb[8].mxu1 }
 0x263   :  { %v972_v18 = vadd.f32 %v971_v25, %v729_v28  ;;  %v1013_v32 = vadd.f32 %v1012_v21, %v770_v29  ;;  %v973_v33 = vpop.f32.mrb[9].mxu0  ;;  %v1014_v51 = vpop.f32.mrb[9].mxu1  ;;  %v4873_v21 = vrot.slane %v4857_v22, %v4665_v50 }
 0x264   :  { %v974_v20 = vadd.f32 %v973_v33, %v731_v30  ;;  %v4867_v17 = vadd.f32 %v1014_v51, %v772_v31  ;;  %v975_v16 = vpop.f32.mrb[10].mxu0  ;;  %v1016_v15 = vpop.f32.mrb[10].mxu1  ;;  %v6577_v30 = vld [vmem:[#allocation44_spill] sm:$0xff]  ;;  %v6578_v33 = vld [vmem:[#allocation45_spill] sm:$0xff] }
 0x265   :  { %v1019_v14 = vadd.f32 %v972_v18, %v4861_v24  ;;  %v976_v13 = vpop.f32.mrb[11].mxu0  ;;  %v1017_v23 = vpop.f32.mrb[11].mxu1  ;;  %6573 = vst [vmem:[#allocation15_spill] sm:$0xff] %v4873_v21  ;;  %v1021_v25 = vadd.f32 %v1013_v32, %v4873_v21  ;;  %v4294_v15 = vmov 2   ;;  %v6574_v18 = vld [vmem:[#allocation12_spill] sm:$0xff] }
 0x266   :  { %v1020_v12 = vadd.f32 %v974_v20, %v4865_v19  ;;  %3581 = vset.pattern.permute.xlu1 %v4294_v15  ;;  %v6579_v15 = vld [vmem:[#allocation46_spill] sm:$0xff] }
 0x267   :  { %v3478_v11 = vmul.f32 -1.442695, %v1019_v14  ;;  %1365 = vperm.xlu1 %3581, %v6574_v18   ;;  %v6576_v14 = vld [vmem:[#allocation42_spill] sm:$0xff] }
 0x268   :  { %v3479_v10 = vmul.f32 -1.442695, %v1020_v12  ;;  %v1050_v12 = vpop.permute.xlu0 %1049 }
 0x269   :  { %3756 = vpow2.f32 %v3478_v11  ;;  %v6575_v11 = vld [vmem:[#allocation41_spill] sm:$0xff]  ;;  %v1053_v29 = vmul.f32 %v1050_v12, %v6576_v14  ;;  %v1055_v18 = vmul.f32 %v1050_v12, %v6579_v15 }
 0x26a   :  { %3758 = vpow2.f32 %v3479_v10  ;;  %v1052_v10 = vmul.f32 %v1050_v12, %v6575_v11 }
 0x26b   :  { %3760 = vtanh.f32 %v1021_v25  ;;  %v1057_v51 = vadd.f32 %v1053_v29, %v6578_v33  ;;  %v1059_v29 = vadd.f32 %v1055_v18, %v4669_v59 }
 0x26c   :  { %v1056_v31 = vadd.f32 %v1052_v10, %v6577_v30 }
 0x273   :  { %v3757_v26 = vpop.eup %3756 }
 0x274   :  { %v3759_v28 = vpop.eup %3758  ;;  %v1026_v16 = vadd.f32 1.0, %v3757_v26 }
 0x275   :  { %v1032_v13 = vadd.f32 1.0, %v3759_v28  ;;  %v3761_v50 = vpop.eup %3760 }
 0x276   :  { %3762 = vrcp.f32 %v1026_v16 }
 0x277   :  { %3764 = vrcp.f32 %v1032_v13 }
 0x280   :  { %v3763_v32 = vpop.eup %3762 }
 0x281   :  { %v3765_v20 = vpop.eup %3764  ;;  %v1043_v23 = vmul.f32 %v3763_v32, %v3761_v50  ;;  %v1054_v50 = vmul.f32 %v1050_v12, %v4673_v46 }
 0x282   :  { %v1042_v26 = vmul.f32 0.0, %v3765_v20  ;;  %v1094_v25 = vpop.f32.mrb[12].mxu0  ;;  %v1135_v28 = vpop.f32.mrb[12].mxu1 }
 0x283   :  { %v1142_v16 = vadd.f32 %v1094_v25, %v1056_v31  ;;  %v1096_v13 = vpop.f32.mrb[13].mxu0  ;;  %v1137_v21 = vpop.f32.mrb[13].mxu1  ;;  %v1058_v31 = vadd.f32 %v1054_v50, %v4677_v0 }
 0x284   :  { %v4882_v19 = vadd.f32 %v1043_v23, %v1042_v26  ;;  %v1143_v11 = vadd.f32 %v1096_v13, %v1057_v51  ;;  %v1098_v14 = vpop.f32.mrb[14].mxu0  ;;  %v1139_v24 = vpop.f32.mrb[14].mxu1  ;;  %v1145_v32 = vadd.f32 %v1137_v21, %v1059_v29 }
 0x285   :  { %v3481_v9 = vmul.f32 -1.442695, %v1142_v16  ;;  %v1099_v10 = vpop.f32.mrb[15].mxu0  ;;  %v1140_v30 = vpop.f32.mrb[15].mxu1  ;;  %v1144_v25 = vadd.f32 %v1135_v28, %v1058_v31  ;;  %v6580_v28 = vld [vmem:[#allocation43_spill] sm:$0xff] }
 0x286   :  { %v3482_v8 = vmul.f32 -1.442695, %v1143_v11  ;;  %v3483_v20 = vmul.f32 -1.442695, %v1145_v32  ;;  %v4893_v16 = vrot.slane %v4857_v22, %v6580_v28  ;;  %v6582_v22 = vld [vmem:[#allocation48_spill] sm:$0xff] }
 0x287   :  { %3766 = vpow2.f32 %v3481_v9 }
 0x288   :  { %3768 = vpow2.f32 %v3482_v8  ;;  %v1022_v13 = vadd.f32 %v4867_v17, %v4893_v16  ;;  %v6581_v17 = vld [vmem:[#allocation47_spill] sm:$0xff] }
 0x289   :  { %3770 = vpow2.f32 %v3483_v20  ;;  %v6583_v20 = vld [vmem:[#allocation49_spill] sm:$0xff] }
 0x28a   :  { %3772 = vtanh.f32 %v1144_v25  ;;  %v3480_v29 = vmul.f32 -1.442695, %v1022_v13  ;;  %v6584_v25 = vld [vmem:[#allocation50_spill] sm:$0xff] }
 0x291   :  { %v3767_v23 = vpop.eup %3766 }
 0x292   :  { %v3769_v26 = vpop.eup %3768  ;;  %v1149_v51 = vadd.f32 1.0, %v3767_v23 }
 0x293   :  { %v1155_v24 = vadd.f32 1.0, %v3769_v26  ;;  %v3771_v11 = vpop.eup %3770  ;;  %v6585_v26 = vld [vmem:[#allocation51_spill] sm:$0xff] }
 0x294   :  { %3774 = vrcp.f32 %v1149_v51  ;;  %v3773_v14 = vpop.eup %3772  ;;  %v1162_v12 = vadd.f32 1.0, %v3771_v11  ;;  %v6586_v51 = vld [vmem:[#allocation52_spill] sm:$0xff]  ;;  %v6588_v11 = vld [vmem:[#allocation54_spill] sm:$0xff] }
 0x295   :  { %3776 = vrcp.f32 %v1155_v24  ;;  %v6587_v24 = vld [vmem:[#allocation53_spill] sm:$0xff] }
 0x296   :  { %3778 = vrcp.f32 %v1162_v12  ;;  %v6593_v12 = vld [vmem:[#allocation59_spill] sm:$0xff] }
 0x29e   :  { %v3775_v30 = vpop.eup %3774 }
 0x29f   :  { %v3777_v9 = vpop.eup %3776  ;;  %v1166_v18 = vmul.f32 %v3775_v30, %v3773_v14  ;;  %v6589_v14 = vld [vmem:[#allocation55_spill] sm:$0xff]  ;;  %v6590_v30 = vld [vmem:[#allocation56_spill] sm:$0xff] }
 0x2a0   :  { %v1165_v8 = vmul.f32 %v3777_v9, %v4681_v27  ;;  %v3779_v10 = vpop.eup %3778  ;;  %v6591_v9 = vld [vmem:[#allocation57_spill] sm:$0xff] }
 0x2a2   :  { %v4888_v21 = vadd.f32 %v1166_v18, %v1165_v8  ;;  %v6592_v18 = vld [vmem:[#allocation58_spill] sm:$0xff] }
 0x2a4   :  { %3780 = vtanh.f32 %v4888_v21 }
 0x2a5   :  { %3782 = vpow2.f32 %v3480_v29  ;;  %v4934_v29 = vld [vmem:[#allocation2 + $0x4] ss:$16 sps:$4 sm:$0xff]  }
 0x2a6   :  { %3784 = vtanh.f32 %v4882_v19 }
 0x2ae   :  { %v3781_v50 = vpop.eup %3780 }
 0x2af   :  { %v1169_v32 = vmul.f32 %v3781_v50, %v3779_v10  ;;  %v3783_v27 = vpop.eup %3782  ;;  %v4937_v50 = vld [vmem:[#allocation2 + $0xc] ss:$16 sps:$4 sm:$0xff]  }
 0x2b0   :  { %v1039_v23 = vadd.f32 1.0, %v3783_v27  ;;  %v3785_v8 = vpop.eup %3784  ;;  %v4943_v27 = vld [vmem:[#allocation2 + $0x8] ss:$16 sps:$4 sm:$0xff]  }
 0x2b1   :  { %v4897_v31 = vpack.c.bf16 %v1169_v32, %v1169_v32  ;;  %v4940_v32 = vld [vmem:[#allocation2] ss:$16 sps:$4 sm:$0xff]   ;;  %6595 = vst [vmem:[#allocation17_spill] sm:$0xff] %v4943_v27 }
 0x2b2   :  { %3786 = vrcp.f32 %v1039_v23  ;;  %6594 = vst [vmem:[#allocation16_spill] sm:$0xff] %v4940_v32  ;;  %v4946_v23 = vld [vmem:[#allocation2 + $0x24] ss:$16 sps:$4 sm:$0xff]  }
 0x2b3   :  { %1204 = vmatmul.mubr.bf16.vlgmr.msra.gmra.mrb[16].mxu0 %v4897_v31  ;;  %1245 = vmatmul.mubr.bf16.vlgmr.msra.gmra.mrb[16].mxu1 %v4897_v31  ;;  %6596 = vst [vmem:[#allocation18_spill] sm:$0xff] %v4946_v23 }
 0x2b4   :  { %1254 = vmatpush1.bf16.msra.mxu0 %v4684_v52  ;;  %1295 = vmatpush1.bf16.msra.mxu1 %v4686_v48 }
 0x2b5   :  { %1255 = vmatprep.subr.bf16.mxu0 %v4690_v62  ;;  %1296 = vmatprep.subr.bf16.mxu1 %v4692_v49 }
 0x2b6   :  { %1285 = vmatprep.mubr.bf16.mxu0 %v6529_v44  ;;  %1326 = vmatprep.mubr.bf16.mxu1 %v6529_v44 }
 0x2b8   :  { %1256 = vmatpush1.bf16.msra.mxu0 %v4698_v43  ;;  %1297 = vmatpush1.bf16.msra.mxu1 %v4700_v58 }
 0x2b9   :  { %1257 = vmatprep.subr.bf16.mxu0 %v4704_v55  ;;  %1298 = vmatprep.subr.bf16.mxu1 %v4706_v42 }
 0x2bc   :  { %1258 = vmatpush1.bf16.msra.mxu0 %v6581_v17  ;;  %1299 = vmatpush1.bf16.msra.mxu1 %v6582_v22  ;;  %v3787_v28 = vpop.eup %3786 }
 0x2bd   :  { %1259 = vmatprep.subr.bf16.mxu0 %v6583_v20  ;;  %1300 = vmatprep.subr.bf16.mxu1 %v6584_v25  ;;  %v1046_v13 = vmul.f32 %v3787_v28, %v3785_v8  ;;  %v4949_v8 = vld [vmem:[#allocation2 + $0x2c] ss:$16 sps:$4 sm:$0xff]   ;;  %v4954_v28 = vld [vmem:[#allocation2 + $0x20] ss:$16 sps:$4 sm:$0xff]  }
 0x2be   :  { %6597 = vst [vmem:[#allocation19_spill] sm:$0xff] %v4949_v8  ;;  %6598 = vst [vmem:[#allocation39_spill] sm:$0xff] %v4954_v28 }
 0x2bf   :  { %v1047_v10 = vpack.c.bf16 %v1046_v13, %v1046_v13  ;;  %v4957_v13 = vld [vmem:[#allocation2 + $0x28] ss:$16 sps:$4 sm:$0xff]  }
 0x2c0   :  { %1260 = vmatpush1.bf16.msra.mxu0 %v6585_v26  ;;  %1301 = vmatpush1.bf16.msra.mxu1 %v6586_v51  ;;  %6599 = vst [vmem:[#allocation40_spill] sm:$0xff] %v4957_v13 }
 0x2c1   :  { %1261 = vmatprep.subr.bf16.mxu0 %v6587_v24  ;;  %1302 = vmatprep.subr.bf16.mxu1 %v6588_v11 }
 0x2c4   :  { %1262 = vmatpush1.bf16.msra.mxu0 %v6589_v14  ;;  %1303 = vmatpush1.bf16.msra.mxu1 %v6590_v30 }
 0x2c5   :  { %1263 = vmatprep.subr.bf16.mxu0 %v6591_v9  ;;  %1304 = vmatprep.subr.bf16.mxu1 %v6592_v18 }
 0x2c8   :  { %1264 = vmatpush1.bf16.msra.mxu0 %v6593_v12  ;;  %1305 = vmatpush1.bf16.msra.mxu1 %v4750_v57 }
 0x2c9   :  { %1265 = vmatprep.subr.bf16.mxu0 %v4754_v61  ;;  %1306 = vmatprep.subr.bf16.mxu1 %v4756_v45 }
 0x2cc   :  { %1266 = vmatpush1.bf16.msra.mxu0 %v4760_v47  ;;  %1307 = vmatpush1.bf16.msra.mxu1 %v4762_v53 }
 0x2cd   :  { %1267 = vmatprep.subr.bf16.mxu0 %v4766_v54  ;;  %1308 = vmatprep.subr.bf16.mxu1 %v4768_v56 }
 0x2d0   :  { %1268 = vmatpush1.bf16.msra.mxu0 %v4772_v60  ;;  %1309 = vmatpush1.bf16.msra.mxu1 %v4774_v63 }
 0x2d1   :  { %1376 = vmatprep.subr.bf16.mxu0 %v4934_v29  ;;  %1417 = vmatprep.subr.bf16.mxu1 %v4937_v50 }
 0x2d3   :  { %1286 = vmatmul.mubr.bf16.vlgmr.msra.gmra.mrb[20].mxu0 %v1047_v10  ;;  %1327 = vmatmul.mubr.bf16.vlgmr.msra.gmra.mrb[20].mxu1 %v1047_v10  ;;  %v4960_v10 = vld [vmem:[#allocation2 + $0x44] ss:$16 sps:$4 sm:$0xff]  }
 0x2d4   :  { %1377 = vmatpush1.bf16.msra.mxu0 %v4940_v32  ;;  %1418 = vmatpush1.bf16.msra.mxu1 %v4943_v27  ;;  %6600 = vst [vmem:[#allocation12_spill] sm:$0xff] %v4960_v10  ;;  %v4969_v27 = vld [vmem:[#allocation2 + $0x48] ss:$16 sps:$4 sm:$0xff]   ;;  %v6644_v32 = vld [vmem:[#allocation14_spill] sm:$0xff] }
 0x2d5   :  { %1378 = vmatprep.subr.bf16.mxu0 %v4946_v23  ;;  %1419 = vmatprep.subr.bf16.mxu1 %v4949_v8  ;;  %v4963_v23 = vld [vmem:[#allocation2 + $0x4c] ss:$16 sps:$4 sm:$0xff]   ;;  %v4966_v8 = vld [vmem:[#allocation2 + $0x40] ss:$16 sps:$4 sm:$0xff]   ;;  %6603 = vst [vmem:[#allocation43_spill] sm:$0xff] %v4969_v27 }
 0x2d6   :  { %1408 = vmatprep.mubr.bf16.mxu0 %v6529_v44  ;;  %1449 = vmatprep.mubr.bf16.mxu1 %v6529_v44  ;;  %6601 = vst [vmem:[#allocation45_spill] sm:$0xff] %v4963_v23  ;;  %6602 = vst [vmem:[#allocation46_spill] sm:$0xff] %v4966_v8 }
 0x2d8   :  { %1379 = vmatpush1.bf16.msra.mxu0 %v4954_v28  ;;  %1420 = vmatpush1.bf16.msra.mxu1 %v4957_v13  ;;  %v4972_v28 = vld [vmem:[#allocation2 + $0x64] ss:$16 sps:$4 sm:$0xff]   ;;  %v4975_v13 = vld [vmem:[#allocation2 + $0x6c] ss:$16 sps:$4 sm:$0xff]  }
 0x2d9   :  { %1380 = vmatprep.subr.bf16.mxu0 %v4960_v10  ;;  %1421 = vmatprep.subr.bf16.mxu1 %v4963_v23  ;;  %6604 = vst [vmem:[#allocation47_spill] sm:$0xff] %v4972_v28  ;;  %6605 = vst [vmem:[#allocation48_spill] sm:$0xff] %v4975_v13  ;;  %v4978_v10 = vld [vmem:[#allocation2 + $0x60] ss:$16 sps:$4 sm:$0xff]   ;;  %v4981_v23 = vld [vmem:[#allocation2 + $0x68] ss:$16 sps:$4 sm:$0xff]  }
 0x2da   :  { %6606 = vst [vmem:[#allocation49_spill] sm:$0xff] %v4978_v10  ;;  %6607 = vst [vmem:[#allocation50_spill] sm:$0xff] %v4981_v23 }
 0x2dc   :  { %1381 = vmatpush1.bf16.msra.mxu0 %v4966_v8  ;;  %1422 = vmatpush1.bf16.msra.mxu1 %v4969_v27  ;;  %v4984_v8 = vld [vmem:[#allocation2 + $0x84] ss:$16 sps:$4 sm:$0xff]   ;;  %v4987_v27 = vld [vmem:[#allocation2 + $0x8c] ss:$16 sps:$4 sm:$0xff]  }
 0x2dd   :  { %1382 = vmatprep.subr.bf16.mxu0 %v4972_v28  ;;  %1423 = vmatprep.subr.bf16.mxu1 %v4975_v13  ;;  %6608 = vst [vmem:[#allocation51_spill] sm:$0xff] %v4984_v8  ;;  %6609 = vst [vmem:[#allocation52_spill] sm:$0xff] %v4987_v27  ;;  %v4990_v28 = vld [vmem:[#allocation2 + $0x80] ss:$16 sps:$4 sm:$0xff]   ;;  %v4993_v13 = vld [vmem:[#allocation2 + $0x88] ss:$16 sps:$4 sm:$0xff]  }
 0x2de   :  { %6610 = vst [vmem:[#allocation53_spill] sm:$0xff] %v4990_v28  ;;  %6611 = vst [vmem:[#allocation54_spill] sm:$0xff] %v4993_v13 }
 0x2e0   :  { %1383 = vmatpush1.bf16.msra.mxu0 %v4978_v10  ;;  %1424 = vmatpush1.bf16.msra.mxu1 %v4981_v23  ;;  %v4996_v10 = vld [vmem:[#allocation2 + $0xa4] ss:$16 sps:$4 sm:$0xff]   ;;  %v4999_v23 = vld [vmem:[#allocation2 + $0xac] ss:$16 sps:$4 sm:$0xff]  }
 0x2e1   :  { %1384 = vmatprep.subr.bf16.mxu0 %v4984_v8  ;;  %1425 = vmatprep.subr.bf16.mxu1 %v4987_v27  ;;  %6612 = vst [vmem:[#allocation55_spill] sm:$0xff] %v4996_v10  ;;  %6613 = vst [vmem:[#allocation56_spill] sm:$0xff] %v4999_v23  ;;  %v5002_v8 = vld [vmem:[#allocation2 + $0xa0] ss:$16 sps:$4 sm:$0xff]   ;;  %v5005_v27 = vld [vmem:[#allocation2 + $0xa8] ss:$16 sps:$4 sm:$0xff]  }
 0x2e2   :  { %6614 = vst [vmem:[#allocation57_spill] sm:$0xff] %v5002_v8  ;;  %6615 = vst [vmem:[#allocation58_spill] sm:$0xff] %v5005_v27 }
 0x2e4   :  { %1385 = vmatpush1.bf16.msra.mxu0 %v4990_v28  ;;  %1426 = vmatpush1.bf16.msra.mxu1 %v4993_v13  ;;  %v5008_v28 = vld [vmem:[#allocation2 + $0xc4] ss:$16 sps:$4 sm:$0xff]   ;;  %v5011_v13 = vld [vmem:[#allocation2 + $0xcc] ss:$16 sps:$4 sm:$0xff]  }
 0x2e5   :  { %1386 = vmatprep.subr.bf16.mxu0 %v4996_v10  ;;  %1427 = vmatprep.subr.bf16.mxu1 %v4999_v23  ;;  %6616 = vst [vmem:[#allocation59_spill] sm:$0xff] %v5008_v28  ;;  %6617 = vst [vmem:[#allocation60_spill] sm:$0xff] %v5011_v13  ;;  %v5014_v10 = vld [vmem:[#allocation2 + $0xc0] ss:$16 sps:$4 sm:$0xff]   ;;  %v5017_v23 = vld [vmem:[#allocation2 + $0xc8] ss:$16 sps:$4 sm:$0xff]  }
 0x2e6   :  { %6618 = vst [vmem:[#allocation61_spill] sm:$0xff] %v5014_v10  ;;  %6619 = vst [vmem:[#allocation62_spill] sm:$0xff] %v5017_v23 }
 0x2e8   :  { %1387 = vmatpush1.bf16.msra.mxu0 %v5002_v8  ;;  %1428 = vmatpush1.bf16.msra.mxu1 %v5005_v27  ;;  %v5020_v8 = vld [vmem:[#allocation2 + $0xe4] ss:$16 sps:$4 sm:$0xff]   ;;  %v5023_v27 = vld [vmem:[#allocation2 + $0xec] ss:$16 sps:$4 sm:$0xff]  }
 0x2e9   :  { %1388 = vmatprep.subr.bf16.mxu0 %v5008_v28  ;;  %1429 = vmatprep.subr.bf16.mxu1 %v5011_v13  ;;  %6620 = vst [vmem:[#allocation63_spill] sm:$0xff] %v5020_v8  ;;  %6621 = vst [vmem:[#allocation64_spill] sm:$0xff] %v5023_v27  ;;  %v5026_v28 = vld [vmem:[#allocation2 + $0xe0] ss:$16 sps:$4 sm:$0xff]   ;;  %v5029_v13 = vld [vmem:[#allocation2 + $0xe8] ss:$16 sps:$4 sm:$0xff]  }
 0x2ea   :  { %6622 = vst [vmem:[#allocation65_spill] sm:$0xff] %v5026_v28  ;;  %6623 = vst [vmem:[#allocation66_spill] sm:$0xff] %v5029_v13 }
 0x2ec   :  { %1389 = vmatpush1.bf16.msra.mxu0 %v5014_v10  ;;  %1430 = vmatpush1.bf16.msra.mxu1 %v5017_v23 }
 0x2ed   :  { %1390 = vmatprep.subr.bf16.mxu0 %v5020_v8  ;;  %1431 = vmatprep.subr.bf16.mxu1 %v5023_v27 }
 0x2f0   :  { %1391 = vmatpush1.bf16.msra.mxu0 %v5026_v28  ;;  %1432 = vmatpush1.bf16.msra.mxu1 %v5029_v13 }
 0x2f1   :  { %1487 = vmatprep.subr.bf16.mxu0 %v4532_v34  ;;  %1528 = vmatprep.subr.bf16.mxu1 %v4534_v35  ;;  %v6624_v34 = vld [vmem:[#allocation20_spill] sm:$0xff]  ;;  %v6625_v35 = vld [vmem:[#allocation21_spill] sm:$0xff] }
 0x2f3   :  { %1409 = vmatmul.mubr.bf16.vlgmr.msra.gmra.mrb[24].mxu0 %v4897_v31  ;;  %1450 = vmatmul.mubr.bf16.vlgmr.msra.gmra.mrb[24].mxu1 %v4897_v31  ;;  %v6639_v31 = vld [vmem:[#allocation35_spill] sm:$0xff] }
 0x2f4   :  { %1488 = vmatpush1.bf16.msra.mxu0 %v4536_v36  ;;  %1529 = vmatpush1.bf16.msra.mxu1 %v4538_v37  ;;  %v6626_v36 = vld [vmem:[#allocation22_spill] sm:$0xff]  ;;  %v6627_v37 = vld [vmem:[#allocation23_spill] sm:$0xff] }
 0x2f5   :  { %1489 = vmatprep.subr.bf16.mxu0 %v4544_v38  ;;  %1530 = vmatprep.subr.bf16.mxu1 %v4546_v39  ;;  %v6628_v38 = vld [vmem:[#allocation24_spill] sm:$0xff]  ;;  %v6629_v39 = vld [vmem:[#allocation25_spill] sm:$0xff] }
 0x2f6   :  { %1519 = vmatprep.mubr.bf16.mxu0 %v6529_v44  ;;  %1560 = vmatprep.mubr.bf16.mxu1 %v6529_v44 }
 0x2f8   :  { %1490 = vmatpush1.bf16.msra.mxu0 %v4548_v40  ;;  %1531 = vmatpush1.bf16.msra.mxu1 %v4550_v41  ;;  %v6630_v40 = vld [vmem:[#allocation26_spill] sm:$0xff]  ;;  %v6631_v41 = vld [vmem:[#allocation27_spill] sm:$0xff] }
 0x2f9   :  { %1491 = vmatprep.subr.bf16.mxu0 %v6543_v1  ;;  %1532 = vmatprep.subr.bf16.mxu1 %v6544_v2  ;;  %v6632_v1 = vld [vmem:[#allocation28_spill] sm:$0xff]  ;;  %v6633_v2 = vld [vmem:[#allocation29_spill] sm:$0xff] }
 0x2fc   :  { %1492 = vmatpush1.bf16.msra.mxu0 %v6545_v3  ;;  %1533 = vmatpush1.bf16.msra.mxu1 %v6546_v4  ;;  %v6634_v3 = vld [vmem:[#allocation30_spill] sm:$0xff]  ;;  %v6635_v4 = vld [vmem:[#allocation31_spill] sm:$0xff] }
 0x2fd   :  { %1493 = vmatprep.subr.bf16.mxu0 %v6547_v5  ;;  %1534 = vmatprep.subr.bf16.mxu1 %v6548_v6  ;;  %v6636_v5 = vld [vmem:[#allocation32_spill] sm:$0xff]  ;;  %v6637_v6 = vld [vmem:[#allocation33_spill] sm:$0xff] }
 0x300   :  { %1494 = vmatpush1.bf16.msra.mxu0 %v6549_v7  ;;  %1535 = vmatpush1.bf16.msra.mxu1 %v6624_v34  ;;  %v6638_v7 = vld [vmem:[#allocation34_spill] sm:$0xff]  ;;  %v6640_v34 = vld [vmem:[#allocation36_spill] sm:$0xff] }
 0x301   :  { %1495 = vmatprep.subr.bf16.mxu0 %v6625_v35  ;;  %1536 = vmatprep.subr.bf16.mxu1 %v6626_v36  ;;  %v6641_v35 = vld [vmem:[#allocation37_spill] sm:$0xff]  ;;  %v6642_v36 = vld [vmem:[#allocation38_spill] sm:$0xff] }
 0x304   :  { %1496 = vmatpush1.bf16.msra.mxu0 %v6627_v37  ;;  %1537 = vmatpush1.bf16.msra.mxu1 %v6628_v38 }
 0x305   :  { %1497 = vmatprep.subr.bf16.mxu0 %v6629_v39  ;;  %1538 = vmatprep.subr.bf16.mxu1 %v6630_v40 }
 0x308   :  { %1498 = vmatpush1.bf16.msra.mxu0 %v6631_v41  ;;  %1539 = vmatpush1.bf16.msra.mxu1 %v6632_v1 }
 0x309   :  { %1499 = vmatprep.subr.bf16.mxu0 %v6633_v2  ;;  %1540 = vmatprep.subr.bf16.mxu1 %v6634_v3 }
 0x30c   :  { %1500 = vmatpush1.bf16.msra.mxu0 %v6635_v4  ;;  %1541 = vmatpush1.bf16.msra.mxu1 %v6636_v5 }
 0x30d   :  { %1501 = vmatprep.subr.bf16.mxu0 %v6637_v6  ;;  %1542 = vmatprep.subr.bf16.mxu1 %v6638_v7 }
 0x310   :  { %1502 = vmatpush1.bf16.msra.mxu0 %v6639_v31  ;;  %1543 = vmatpush1.bf16.msra.mxu1 %v6640_v34 }
 0x311   :  { %1569 = vmatprep.subr.bf16.mxu0 %v6641_v35  ;;  %1610 = vmatprep.subr.bf16.mxu1 %v6642_v36  ;;  %v6643_v36 = vld [vmem:[#allocation13_spill] sm:$0xff] }
 0x386   :  { %v1205_v37 = vpop.f32.mrb[16].mxu0  ;;  %v1246_v38 = vpop.f32.mrb[16].mxu1 }
 0x387   :  { %v1207_v39 = vpop.f32.mrb[17].mxu0  ;;  %v1248_v40 = vpop.f32.mrb[17].mxu1 }
 0x388   :  { %v1209_v41 = vpop.f32.mrb[18].mxu0  ;;  %v1250_v1 = vpop.f32.mrb[18].mxu1 }
 0x389   :  { %v1210_v2 = vpop.f32.mrb[19].mxu0  ;;  %v1251_v3 = vpop.f32.mrb[19].mxu1 }
 0x38a   :  { %v6645_v3 = vld [vmem:[#allocation15_spill] sm:$0xff] }
 0x3a6   :  { %v1287_v4 = vpop.f32.mrb[20].mxu0  ;;  %v1328_v5 = vpop.f32.mrb[20].mxu1 }
 0x3a7   :  { %v1288_v6 = vadd.f32 %v1287_v4, %v1205_v37  ;;  %v1329_v7 = vadd.f32 %v1328_v5, %v1246_v38  ;;  %v1289_v13 = vpop.f32.mrb[21].mxu0  ;;  %v1330_v31 = vpop.f32.mrb[21].mxu1 }
 0x3a8   :  { %v1290_v28 = vadd.f32 %v1289_v13, %v1207_v39  ;;  %v5070_v34 = vadd.f32 %v1330_v31, %v1248_v40  ;;  %v1291_v35 = vpop.f32.mrb[22].mxu0  ;;  %v1332_v27 = vpop.f32.mrb[22].mxu1  ;;  %v4295_v13 = vmov 3  }
 0x3a9   :  { %v1335_v8 = vadd.f32 %v1288_v6, %v6643_v36  ;;  %v1292_v23 = vpop.f32.mrb[23].mxu0  ;;  %v1333_v10 = vpop.f32.mrb[23].mxu1  ;;  %v1337_v37 = vadd.f32 %v1329_v7, %v6645_v3  ;;  %3582 = vset.pattern.permute.xlu1 %v4295_v13  ;;  %v5078_v27 = vld [vmem:[%s6123_s0] sm:$0xff] }
 0x3aa   :  { %v1336_v41 = vadd.f32 %v1290_v28, %v6644_v32  ;;  %6646 = vst [vmem:[#allocation20_spill] sm:$0xff] %v5078_v27  ;;  %1681 = vperm.xlu1 %3582, %v5078_v27   ;;  %v1366_v23 = vpop.permute.xlu1 %1365  ;;  %v6648_v10 = vld [vmem:[#allocation42_spill] sm:$0xff]  ;;  %v6649_v7 = vld [vmem:[#allocation44_spill] sm:$0xff] }
 0x3ab   :  { %v3484_v1 = vmul.f32 -1.442695, %v1335_v8  ;;  %v6647_v8 = vld [vmem:[#allocation41_spill] sm:$0xff]  ;;  %v1369_v40 = vmul.f32 %v1366_v23, %v6648_v10 }
 0x3ac   :  { %v3485_v2 = vmul.f32 -1.442695, %v1336_v41  ;;  %v1368_v28 = vmul.f32 %v1366_v23, %v6647_v8 }
 0x3ad   :  { %3788 = vpow2.f32 %v3484_v1  ;;  %v1373_v41 = vadd.f32 %v1369_v40, %v6578_v33 }
 0x3ae   :  { %3790 = vpow2.f32 %v3485_v2  ;;  %v1372_v31 = vadd.f32 %v1368_v28, %v6649_v7 }
 0x3af   :  { %3792 = vtanh.f32 %v1337_v37 }
 0x3b7   :  { %v3789_v38 = vpop.eup %3788 }
 0x3b8   :  { %v3791_v4 = vpop.eup %3790  ;;  %v1342_v5 = vadd.f32 1.0, %v3789_v38 }
 0x3b9   :  { %v1348_v39 = vadd.f32 1.0, %v3791_v4  ;;  %v3793_v6 = vpop.eup %3792 }
 0x3ba   :  { %3794 = vrcp.f32 %v1342_v5  ;;  %v1371_v5 = vmul.f32 %v1366_v23, %v6579_v15 }
 0x3bb   :  { %3796 = vrcp.f32 %v1348_v39 }
 0x3c4   :  { %v3795_v35 = vpop.eup %3794 }
 0x3c5   :  { %v3797_v1 = vpop.eup %3796  ;;  %v1359_v2 = vmul.f32 %v3795_v35, %v3793_v6  ;;  %v1375_v6 = vadd.f32 %v1371_v5, %v4669_v59 }
 0x3c6   :  { %v1358_v37 = vmul.f32 %v3797_v1, %v4882_v19  ;;  %v1410_v38 = vpop.f32.mrb[24].mxu0  ;;  %v1451_v4 = vpop.f32.mrb[24].mxu1  ;;  %v1370_v19 = vmul.f32 %v1366_v23, %v4673_v46 }
 0x3c7   :  { %v1458_v13 = vadd.f32 %v1410_v38, %v1372_v31  ;;  %v1412_v39 = vpop.f32.mrb[25].mxu0  ;;  %v1453_v27 = vpop.f32.mrb[25].mxu1 }
 0x3c8   :  { %v5087_v8 = vadd.f32 %v1359_v2, %v1358_v37  ;;  %v1459_v10 = vadd.f32 %v1412_v39, %v1373_v41  ;;  %v1414_v3 = vpop.f32.mrb[26].mxu0  ;;  %v1455_v32 = vpop.f32.mrb[26].mxu1  ;;  %v1461_v35 = vadd.f32 %v1453_v27, %v1375_v6  ;;  %v1374_v31 = vadd.f32 %v1370_v19, %v4677_v0 }
 0x3c9   :  { %v3487_v28 = vmul.f32 -1.442695, %v1458_v13  ;;  %v1415_v7 = vpop.f32.mrb[27].mxu0  ;;  %v1456_v36 = vpop.f32.mrb[27].mxu1 }
 0x3ca   :  { %v3488_v40 = vmul.f32 -1.442695, %v1459_v10  ;;  %v3489_v1 = vmul.f32 -1.442695, %v1461_v35  ;;  %v1460_v38 = vadd.f32 %v1451_v4, %v1374_v31  ;;  %v1338_v4 = vadd.f32 %v5070_v34, %v4893_v16  ;;  %v6675_v34 = vld [vmem:[#allocation62_spill] sm:$0xff]  ;;  %v6676_v35 = vld [vmem:[#allocation63_spill] sm:$0xff] }
 0x3cb   :  { %3798 = vpow2.f32 %v3487_v28  ;;  %v6677_v31 = vld [vmem:[#allocation64_spill] sm:$0xff] }
 0x3cc   :  { %3800 = vpow2.f32 %v3488_v40  ;;  %v3486_v28 = vmul.f32 -1.442695, %v1338_v4  ;;  %v5206_v4 = vld [vmem:[#allocation4 + $0x48] ss:$16 sps:$4 sm:$0xff]  }
 0x3cd   :  { %3802 = vpow2.f32 %v3489_v1  ;;  %v6678_v1 = vld [vmem:[#allocation65_spill] sm:$0xff]  ;;  %6691 = vst [vmem:[#allocation32_spill] sm:$0xff] %v5206_v4 }
 0x3ce   :  { %3804 = vtanh.f32 %v1460_v38  ;;  %v6679_v38 = vld [vmem:[#allocation66_spill] sm:$0xff] }
 0x3d5   :  { %v3799_v2 = vpop.eup %3798 }
 0x3d6   :  { %v3801_v37 = vpop.eup %3800  ;;  %v1465_v41 = vadd.f32 1.0, %v3799_v2  ;;  %v5169_v2 = vld [vmem:[#allocation4 + $0x4] ss:$16 sps:$4 sm:$0xff]  }
 0x3d7   :  { %v1471_v32 = vadd.f32 1.0, %v3801_v37  ;;  %v3803_v36 = vpop.eup %3802  ;;  %6680 = vst [vmem:[#allocation21_spill] sm:$0xff] %v5169_v2  ;;  %v5172_v37 = vld [vmem:[#allocation4 + $0xc] ss:$16 sps:$4 sm:$0xff]  }
 0x3d8   :  { %3806 = vrcp.f32 %v1465_v41  ;;  %v3805_v3 = vpop.eup %3804  ;;  %v1478_v23 = vadd.f32 1.0, %v3803_v36  ;;  %6681 = vst [vmem:[#allocation22_spill] sm:$0xff] %v5172_v37  ;;  %v5177_v41 = vld [vmem:[#allocation4] ss:$16 sps:$4 sm:$0xff]   ;;  %v5183_v36 = vld [vmem:[#allocation4 + $0x24] ss:$16 sps:$4 sm:$0xff]  }
 0x3d9   :  { %3808 = vrcp.f32 %v1471_v32  ;;  %6682 = vst [vmem:[#allocation23_spill] sm:$0xff] %v5177_v41  ;;  %v5180_v32 = vld [vmem:[#allocation4 + $0x8] ss:$16 sps:$4 sm:$0xff]   ;;  %6684 = vst [vmem:[#allocation25_spill] sm:$0xff] %v5183_v36 }
 0x3da   :  { %3810 = vrcp.f32 %v1478_v23  ;;  %6683 = vst [vmem:[#allocation24_spill] sm:$0xff] %v5180_v32  ;;  %v5200_v23 = vld [vmem:[#allocation4 + $0x4c] ss:$16 sps:$4 sm:$0xff]  }
 0x3db   :  { %6689 = vst [vmem:[#allocation30_spill] sm:$0xff] %v5200_v23 }
 0x3e2   :  { %v3807_v10 = vpop.eup %3806 }
 0x3e3   :  { %v3809_v7 = vpop.eup %3808  ;;  %v1482_v5 = vmul.f32 %v3807_v10, %v3805_v3  ;;  %v5186_v3 = vld [vmem:[#allocation4 + $0x2c] ss:$16 sps:$4 sm:$0xff]   ;;  %v5191_v10 = vld [vmem:[#allocation4 + $0x20] ss:$16 sps:$4 sm:$0xff]  }
 0x3e4   :  { %v1481_v27 = vmul.f32 %v3809_v7, %v4888_v21  ;;  %v3811_v39 = vpop.eup %3810  ;;  %6685 = vst [vmem:[#allocation26_spill] sm:$0xff] %v5186_v3  ;;  %6686 = vst [vmem:[#allocation27_spill] sm:$0xff] %v5191_v10  ;;  %v5194_v7 = vld [vmem:[#allocation4 + $0x28] ss:$16 sps:$4 sm:$0xff]  }
 0x3e5   :  { %6687 = vst [vmem:[#allocation28_spill] sm:$0xff] %v5194_v7 }
 0x3e6   :  { %v5093_v13 = vadd.f32 %v1482_v5, %v1481_v27  ;;  %v5197_v5 = vld [vmem:[#allocation4 + $0x44] ss:$16 sps:$4 sm:$0xff]   ;;  %v5203_v27 = vld [vmem:[#allocation4 + $0x40] ss:$16 sps:$4 sm:$0xff]  }
 0x3e7   :  { %6688 = vst [vmem:[#allocation29_spill] sm:$0xff] %v5197_v5  ;;  %6690 = vst [vmem:[#allocation31_spill] sm:$0xff] %v5203_v27 }
 0x3e8   :  { %3812 = vtanh.f32 %v5093_v13 }
 0x3e9   :  { %3814 = vpow2.f32 %v3486_v28  ;;  %v5212_v28 = vld [vmem:[#allocation4 + $0x6c] ss:$16 sps:$4 sm:$0xff]  }
 0x3ea   :  { %3816 = vtanh.f32 %v5087_v8  ;;  %6693 = vst [vmem:[#allocation34_spill] sm:$0xff] %v5212_v28 }
 0x3f2   :  { %v3813_v40 = vpop.eup %3812 }
 0x3f3   :  { %v1485_v6 = vmul.f32 %v3813_v40, %v3811_v39  ;;  %v3815_v21 = vpop.eup %3814  ;;  %v5209_v39 = vld [vmem:[#allocation4 + $0x64] ss:$16 sps:$4 sm:$0xff]   ;;  %v5215_v40 = vld [vmem:[#allocation4 + $0x60] ss:$16 sps:$4 sm:$0xff]  }
 0x3f4   :  { %6692 = vst [vmem:[#allocation33_spill] sm:$0xff] %v5209_v39  ;;  %6694 = vst [vmem:[#allocation35_spill] sm:$0xff] %v5215_v40 }
 0x3f5   :  { %v5098_v19 = vpack.c.bf16 %v1485_v6, %v1485_v6  ;;  %v5218_v6 = vld [vmem:[#allocation4 + $0x68] ss:$16 sps:$4 sm:$0xff]  }
 0x3f6   :  { %6695 = vst [vmem:[#allocation36_spill] sm:$0xff] %v5218_v6 }
 0x3f7   :  { %1520 = vmatmul.mubr.bf16.vlgmr.msra.gmra.mrb[28].mxu0 %v5098_v19  ;;  %1561 = vmatmul.mubr.bf16.vlgmr.msra.gmra.mrb[28].mxu1 %v5098_v19 }
 0x3f8   :  { %1570 = vmatpush1.bf16.msra.mxu0 %v4684_v52  ;;  %1611 = vmatpush1.bf16.msra.mxu1 %v4686_v48  ;;  %v1355_v52 = vadd.f32 1.0, %v3815_v21  ;;  %v3817_v48 = vpop.eup %3816  ;;  %v5224_v21 = vld [vmem:[#allocation4 + $0x8c] ss:$16 sps:$4 sm:$0xff]  }
 0x3f9   :  { %1571 = vmatprep.subr.bf16.mxu0 %v4690_v62  ;;  %1612 = vmatprep.subr.bf16.mxu1 %v4692_v49  ;;  %6697 = vst [vmem:[#allocation38_spill] sm:$0xff] %v5224_v21 }
 0x3fa   :  { %1601 = vmatprep.mubr.bf16.mxu0 %v6529_v44  ;;  %1642 = vmatprep.mubr.bf16.mxu1 %v6529_v44  ;;  %3818 = vrcp.f32 %v1355_v52  ;;  %v5227_v52 = vld [vmem:[#allocation4 + $0x80] ss:$16 sps:$4 sm:$0xff]  }
 0x3fc   :  { %1572 = vmatpush1.bf16.msra.mxu0 %v4698_v43  ;;  %1613 = vmatpush1.bf16.msra.mxu1 %v4700_v58  ;;  %v6650_v58 = vld [vmem:[#allocation16_spill] sm:$0xff] }
 0x3fd   :  { %1573 = vmatprep.subr.bf16.mxu0 %v4704_v55  ;;  %1614 = vmatprep.subr.bf16.mxu1 %v4706_v42  ;;  %v6651_v55 = vld [vmem:[#allocation17_spill] sm:$0xff]  ;;  %v6652_v42 = vld [vmem:[#allocation18_spill] sm:$0xff]  ;;  %6698 = vst [vmem:[#allocation16_spill] sm:$0xff] %v5227_v52 }
 0x400   :  { %1574 = vmatpush1.bf16.msra.mxu0 %v6581_v17  ;;  %1615 = vmatpush1.bf16.msra.mxu1 %v6582_v22  ;;  %v6662_v17 = vld [vmem:[#allocation49_spill] sm:$0xff]  ;;  %v6663_v22 = vld [vmem:[#allocation50_spill] sm:$0xff] }
 0x401   :  { %1575 = vmatprep.subr.bf16.mxu0 %v6583_v20  ;;  %1616 = vmatprep.subr.bf16.mxu1 %v6584_v25  ;;  %v6664_v20 = vld [vmem:[#allocation51_spill] sm:$0xff]  ;;  %v6665_v25 = vld [vmem:[#allocation52_spill] sm:$0xff] }
 0x404   :  { %1576 = vmatpush1.bf16.msra.mxu0 %v6585_v26  ;;  %1617 = vmatpush1.bf16.msra.mxu1 %v6586_v51  ;;  %v3819_v62 = vpop.eup %3818  ;;  %v6666_v26 = vld [vmem:[#allocation53_spill] sm:$0xff]  ;;  %v6667_v51 = vld [vmem:[#allocation54_spill] sm:$0xff] }
 0x405   :  { %1577 = vmatprep.subr.bf16.mxu0 %v6587_v24  ;;  %1618 = vmatprep.subr.bf16.mxu1 %v6588_v11  ;;  %v1362_v49 = vmul.f32 %v3819_v62, %v3817_v48  ;;  %v6668_v24 = vld [vmem:[#allocation55_spill] sm:$0xff]  ;;  %v6669_v11 = vld [vmem:[#allocation56_spill] sm:$0xff] }
 0x406   :  { %v5230_v48 = vld [vmem:[#allocation4 + $0x88] ss:$16 sps:$4 sm:$0xff]   ;;  %v5233_v62 = vld [vmem:[#allocation4 + $0xa4] ss:$16 sps:$4 sm:$0xff]  }
 0x407   :  { %v1363_v43 = vpack.c.bf16 %v1362_v49, %v1362_v49  ;;  %6699 = vst [vmem:[#allocation17_spill] sm:$0xff] %v5230_v48  ;;  %6700 = vst [vmem:[#allocation18_spill] sm:$0xff] %v5233_v62  ;;  %v5236_v49 = vld [vmem:[#allocation4 + $0xac] ss:$16 sps:$4 sm:$0xff]  }
 0x408   :  { %1578 = vmatpush1.bf16.msra.mxu0 %v6589_v14  ;;  %1619 = vmatpush1.bf16.msra.mxu1 %v6590_v30  ;;  %v6670_v14 = vld [vmem:[#allocation57_spill] sm:$0xff]  ;;  %v6671_v30 = vld [vmem:[#allocation58_spill] sm:$0xff] }
 0x409   :  { %1579 = vmatprep.subr.bf16.mxu0 %v6591_v9  ;;  %1620 = vmatprep.subr.bf16.mxu1 %v6592_v18  ;;  %v6672_v9 = vld [vmem:[#allocation59_spill] sm:$0xff]  ;;  %v6673_v18 = vld [vmem:[#allocation60_spill] sm:$0xff] }
 0x40c   :  { %1580 = vmatpush1.bf16.msra.mxu0 %v6593_v12  ;;  %1621 = vmatpush1.bf16.msra.mxu1 %v4750_v57  ;;  %v6657_v57 = vld [vmem:[#allocation45_spill] sm:$0xff] }
 0x40d   :  { %1581 = vmatprep.subr.bf16.mxu0 %v4754_v61  ;;  %1622 = vmatprep.subr.bf16.mxu1 %v4756_v45  ;;  %v6658_v61 = vld [vmem:[#allocation46_spill] sm:$0xff]  ;;  %v6659_v45 = vld [vmem:[#allocation43_spill] sm:$0xff]  ;;  %v6674_v12 = vld [vmem:[#allocation61_spill] sm:$0xff] }
 0x410   :  { %1582 = vmatpush1.bf16.msra.mxu0 %v4760_v47  ;;  %1623 = vmatpush1.bf16.msra.mxu1 %v4762_v53  ;;  %v6660_v47 = vld [vmem:[#allocation47_spill] sm:$0xff]  ;;  %v6661_v53 = vld [vmem:[#allocation48_spill] sm:$0xff] }
 0x411   :  { %1583 = vmatprep.subr.bf16.mxu0 %v4766_v54  ;;  %1624 = vmatprep.subr.bf16.mxu1 %v4768_v56  ;;  %v6653_v54 = vld [vmem:[#allocation19_spill] sm:$0xff] }
 0x412   :  { %v6654_v56 = vld [vmem:[#allocation39_spill] sm:$0xff]  ;;  %6701 = vst [vmem:[#allocation19_spill] sm:$0xff] %v5236_v49 }
 0x414   :  { %1584 = vmatpush1.bf16.msra.mxu0 %v4772_v60  ;;  %1625 = vmatpush1.bf16.msra.mxu1 %v4774_v63  ;;  %v6655_v60 = vld [vmem:[#allocation40_spill] sm:$0xff] }
 0x415   :  { %1692 = vmatprep.subr.bf16.mxu0 %v4934_v29  ;;  %1733 = vmatprep.subr.bf16.mxu1 %v4937_v50  ;;  %v6656_v63 = vld [vmem:[#allocation12_spill] sm:$0xff] }
 0x417   :  { %1602 = vmatmul.mubr.bf16.vlgmr.msra.gmra.mrb[32].mxu0 %v1363_v43  ;;  %1643 = vmatmul.mubr.bf16.vlgmr.msra.gmra.mrb[32].mxu1 %v1363_v43  ;;  %v5239_v43 = vld [vmem:[#allocation4 + $0xa0] ss:$16 sps:$4 sm:$0xff]  }
 0x418   :  { %1693 = vmatpush1.bf16.msra.mxu0 %v6650_v58  ;;  %1734 = vmatpush1.bf16.msra.mxu1 %v6651_v55  ;;  %6702 = vst [vmem:[#allocation39_spill] sm:$0xff] %v5239_v43 }
 0x419   :  { %1694 = vmatprep.subr.bf16.mxu0 %v6652_v42  ;;  %1735 = vmatprep.subr.bf16.mxu1 %v6653_v54 }
 0x41a   :  { %1724 = vmatprep.mubr.bf16.mxu0 %v6529_v44  ;;  %1765 = vmatprep.mubr.bf16.mxu1 %v6529_v44 }
 0x41c   :  { %1695 = vmatpush1.bf16.msra.mxu0 %v6654_v56  ;;  %1736 = vmatpush1.bf16.msra.mxu1 %v6655_v60 }
 0x41d   :  { %1696 = vmatprep.subr.bf16.mxu0 %v6656_v63  ;;  %1737 = vmatprep.subr.bf16.mxu1 %v6657_v57 }
 0x420   :  { %1697 = vmatpush1.bf16.msra.mxu0 %v6658_v61  ;;  %1738 = vmatpush1.bf16.msra.mxu1 %v6659_v45 }
 0x421   :  { %1698 = vmatprep.subr.bf16.mxu0 %v6660_v47  ;;  %1739 = vmatprep.subr.bf16.mxu1 %v6661_v53 }
 0x424   :  { %1699 = vmatpush1.bf16.msra.mxu0 %v6662_v17  ;;  %1740 = vmatpush1.bf16.msra.mxu1 %v6663_v22 }
 0x425   :  { %1700 = vmatprep.subr.bf16.mxu0 %v6664_v20  ;;  %1741 = vmatprep.subr.bf16.mxu1 %v6665_v25 }
 0x428   :  { %1701 = vmatpush1.bf16.msra.mxu0 %v6666_v26  ;;  %1742 = vmatpush1.bf16.msra.mxu1 %v6667_v51 }
 0x429   :  { %1702 = vmatprep.subr.bf16.mxu0 %v6668_v24  ;;  %1743 = vmatprep.subr.bf16.mxu1 %v6669_v11 }
 0x42c   :  { %1703 = vmatpush1.bf16.msra.mxu0 %v6670_v14  ;;  %1744 = vmatpush1.bf16.msra.mxu1 %v6671_v30 }
 0x42d   :  { %1704 = vmatprep.subr.bf16.mxu0 %v6672_v9  ;;  %1745 = vmatprep.subr.bf16.mxu1 %v6673_v18 }
 0x430   :  { %1705 = vmatpush1.bf16.msra.mxu0 %v6674_v12  ;;  %1746 = vmatpush1.bf16.msra.mxu1 %v6675_v34 }
 0x431   :  { %1706 = vmatprep.subr.bf16.mxu0 %v6676_v35  ;;  %1747 = vmatprep.subr.bf16.mxu1 %v6677_v31 }
 0x434   :  { %1707 = vmatpush1.bf16.msra.mxu0 %v6678_v1  ;;  %1748 = vmatpush1.bf16.msra.mxu1 %v6679_v38 }
 0x435   :  { %1803 = vmatprep.subr.bf16.mxu0 %v5169_v2  ;;  %1844 = vmatprep.subr.bf16.mxu1 %v5172_v37  ;;  %v6715_v2 = vld [vmem:[#allocation14_spill] sm:$0xff] }
 0x437   :  { %1725 = vmatmul.mubr.bf16.vlgmr.msra.gmra.mrb[36].mxu0 %v5098_v19  ;;  %1766 = vmatmul.mubr.bf16.vlgmr.msra.gmra.mrb[36].mxu1 %v5098_v19  ;;  %v5221_v19 = vld [vmem:[#allocation4 + $0x84] ss:$16 sps:$4 sm:$0xff]  }
 0x438   :  { %1804 = vmatpush1.bf16.msra.mxu0 %v5177_v41  ;;  %1845 = vmatpush1.bf16.msra.mxu1 %v5180_v32  ;;  %6696 = vst [vmem:[#allocation37_spill] sm:$0xff] %v5221_v19 }
 0x439   :  { %1805 = vmatprep.subr.bf16.mxu0 %v5183_v36  ;;  %1846 = vmatprep.subr.bf16.mxu1 %v5186_v3 }
 0x43a   :  { %1835 = vmatprep.mubr.bf16.mxu0 %v6529_v44  ;;  %1876 = vmatprep.mubr.bf16.mxu1 %v6529_v44 }
 0x43c   :  { %1806 = vmatpush1.bf16.msra.mxu0 %v5191_v10  ;;  %1847 = vmatpush1.bf16.msra.mxu1 %v5194_v7 }
 0x43d   :  { %1807 = vmatprep.subr.bf16.mxu0 %v5197_v5  ;;  %1848 = vmatprep.subr.bf16.mxu1 %v5200_v23 }
 0x440   :  { %1808 = vmatpush1.bf16.msra.mxu0 %v5203_v27  ;;  %1849 = vmatpush1.bf16.msra.mxu1 %v5206_v4 }
 0x441   :  { %1809 = vmatprep.subr.bf16.mxu0 %v5209_v39  ;;  %1850 = vmatprep.subr.bf16.mxu1 %v5212_v28 }
 0x444   :  { %1810 = vmatpush1.bf16.msra.mxu0 %v5215_v40  ;;  %1851 = vmatpush1.bf16.msra.mxu1 %v5218_v6 }
 0x445   :  { %1811 = vmatprep.subr.bf16.mxu0 %v5221_v19  ;;  %1852 = vmatprep.subr.bf16.mxu1 %v5224_v21  ;;  %v5242_v21 = vld [vmem:[#allocation4 + $0xa8] ss:$16 sps:$4 sm:$0xff]  }
 0x446   :  { %6703 = vst [vmem:[#allocation40_spill] sm:$0xff] %v5242_v21 }
 0x448   :  { %1812 = vmatpush1.bf16.msra.mxu0 %v5227_v52  ;;  %1853 = vmatpush1.bf16.msra.mxu1 %v5230_v48  ;;  %v5245_v52 = vld [vmem:[#allocation4 + $0xc4] ss:$16 sps:$4 sm:$0xff]   ;;  %v5248_v48 = vld [vmem:[#allocation4 + $0xcc] ss:$16 sps:$4 sm:$0xff]  }
 0x449   :  { %1813 = vmatprep.subr.bf16.mxu0 %v5233_v62  ;;  %1854 = vmatprep.subr.bf16.mxu1 %v5236_v49  ;;  %6704 = vst [vmem:[#allocation12_spill] sm:$0xff] %v5245_v52  ;;  %6705 = vst [vmem:[#allocation45_spill] sm:$0xff] %v5248_v48  ;;  %v5251_v62 = vld [vmem:[#allocation4 + $0xc0] ss:$16 sps:$4 sm:$0xff]   ;;  %v5254_v49 = vld [vmem:[#allocation4 + $0xc8] ss:$16 sps:$4 sm:$0xff]  }
 0x44a   :  { %6706 = vst [vmem:[#allocation46_spill] sm:$0xff] %v5251_v62  ;;  %6707 = vst [vmem:[#allocation43_spill] sm:$0xff] %v5254_v49 }
 0x44c   :  { %1814 = vmatpush1.bf16.msra.mxu0 %v5239_v43  ;;  %1855 = vmatpush1.bf16.msra.mxu1 %v5242_v21  ;;  %v5257_v43 = vld [vmem:[#allocation4 + $0xe4] ss:$16 sps:$4 sm:$0xff]   ;;  %v5260_v21 = vld [vmem:[#allocation4 + $0xec] ss:$16 sps:$4 sm:$0xff]  }
 0x44d   :  { %1815 = vmatprep.subr.bf16.mxu0 %v5245_v52  ;;  %1856 = vmatprep.subr.bf16.mxu1 %v5248_v48  ;;  %6708 = vst [vmem:[#allocation47_spill] sm:$0xff] %v5257_v43  ;;  %6709 = vst [vmem:[#allocation48_spill] sm:$0xff] %v5260_v21  ;;  %v5263_v52 = vld [vmem:[#allocation4 + $0xe0] ss:$16 sps:$4 sm:$0xff]   ;;  %v5266_v48 = vld [vmem:[#allocation4 + $0xe8] ss:$16 sps:$4 sm:$0xff]  }
 0x44e   :  { %6710 = vst [vmem:[#allocation49_spill] sm:$0xff] %v5263_v52  ;;  %6711 = vst [vmem:[#allocation50_spill] sm:$0xff] %v5266_v48 }
 0x450   :  { %1816 = vmatpush1.bf16.msra.mxu0 %v5251_v62  ;;  %1857 = vmatpush1.bf16.msra.mxu1 %v5254_v49  ;;  %v5269_v62 = vld [vmem:[#allocation6 + $0x4] ss:$16 sps:$4 sm:$0xff]   ;;  %v5272_v49 = vld [vmem:[#allocation6 + $0xc] ss:$16 sps:$4 sm:$0xff]  }
 0x451   :  { %1817 = vmatprep.subr.bf16.mxu0 %v5257_v43  ;;  %1858 = vmatprep.subr.bf16.mxu1 %v5260_v21  ;;  %6712 = vst [vmem:[#allocation51_spill] sm:$0xff] %v5269_v62  ;;  %6713 = vst [vmem:[#allocation52_spill] sm:$0xff] %v5272_v49 }
 0x454   :  { %1818 = vmatpush1.bf16.msra.mxu0 %v5263_v52  ;;  %1859 = vmatpush1.bf16.msra.mxu1 %v5266_v48 }
 0x455   :  { %1885 = vmatprep.subr.bf16.mxu0 %v5269_v62  ;;  %1926 = vmatprep.subr.bf16.mxu1 %v5272_v49  ;;  %v6714_v49 = vld [vmem:[#allocation13_spill] sm:$0xff] }
 0x4ca   :  { %v1521_v43 = vpop.f32.mrb[28].mxu0  ;;  %v1562_v19 = vpop.f32.mrb[28].mxu1 }
 0x4cb   :  { %v1523_v6 = vpop.f32.mrb[29].mxu0  ;;  %v1564_v21 = vpop.f32.mrb[29].mxu1 }
 0x4cc   :  { %v1525_v40 = vpop.f32.mrb[30].mxu0  ;;  %v1566_v28 = vpop.f32.mrb[30].mxu1 }
 0x4cd   :  { %v1526_v39 = vpop.f32.mrb[31].mxu0  ;;  %v1567_v52 = vpop.f32.mrb[31].mxu1 }
 0x4ce   :  { %v6716_v52 = vld [vmem:[#allocation15_spill] sm:$0xff] }
 0x4ea   :  { %v1603_v4 = vpop.f32.mrb[32].mxu0  ;;  %v1644_v27 = vpop.f32.mrb[32].mxu1 }
 0x4eb   :  { %v1604_v23 = vadd.f32 %v1603_v4, %v1521_v43  ;;  %v1645_v48 = vadd.f32 %v1644_v27, %v1562_v19  ;;  %v1605_v5 = vpop.f32.mrb[33].mxu0  ;;  %v1646_v7 = vpop.f32.mrb[33].mxu1 }
 0x4ec   :  { %v1606_v10 = vadd.f32 %v1605_v5, %v1523_v6  ;;  %v5275_v62 = vadd.f32 %v1646_v7, %v1564_v21  ;;  %v1607_v3 = vpop.f32.mrb[34].mxu0  ;;  %v1648_v36 = vpop.f32.mrb[34].mxu1  ;;  %v4296_v5 = vmov 4   ;;  %v6720_v6 = vld [vmem:[#allocation44_spill] sm:$0xff] }
 0x4ed   :  { %v1651_v32 = vadd.f32 %v1604_v23, %v6714_v49  ;;  %v1608_v41 = vpop.f32.mrb[35].mxu0  ;;  %v1649_v37 = vpop.f32.mrb[35].mxu1  ;;  %v1653_v4 = vadd.f32 %v1645_v48, %v6716_v52  ;;  %3583 = vset.pattern.permute.xlu1 %v4296_v5  ;;  %v6717_v36 = vld [vmem:[#allocation20_spill] sm:$0xff] }
 0x4ee   :  { %v1652_v40 = vadd.f32 %v1606_v10, %v6715_v2  ;;  %1997 = vperm.xlu1 %3583, %v6717_v36   ;;  %v1682_v37 = vpop.permute.xlu1 %1681  ;;  %v6718_v41 = vld [vmem:[#allocation41_spill] sm:$0xff] }
 0x4ef   :  { %v3490_v28 = vmul.f32 -1.442695, %v1651_v32  ;;  %v1684_v10 = vmul.f32 %v1682_v37, %v6718_v41  ;;  %v6719_v32 = vld [vmem:[#allocation42_spill] sm:$0xff] }
 0x4f0   :  { %v3491_v39 = vmul.f32 -1.442695, %v1652_v40  ;;  %v1685_v7 = vmul.f32 %v1682_v37, %v6719_v32 }
 0x4f1   :  { %3820 = vpow2.f32 %v3490_v28  ;;  %v1688_v21 = vadd.f32 %v1684_v10, %v6720_v6 }
 0x4f2   :  { %3822 = vpow2.f32 %v3491_v39  ;;  %v1689_v40 = vadd.f32 %v1685_v7, %v6578_v33 }
 0x4f3   :  { %3824 = vtanh.f32 %v1653_v4 }
 0x4fb   :  { %v3821_v27 = vpop.eup %3820 }
 0x4fc   :  { %v3823_v19 = vpop.eup %3822  ;;  %v1658_v43 = vadd.f32 1.0, %v3821_v27 }
 0x4fd   :  { %v1664_v3 = vadd.f32 1.0, %v3823_v19  ;;  %v3825_v23 = vpop.eup %3824 }
 0x4fe   :  { %3826 = vrcp.f32 %v1658_v43  ;;  %v1687_v43 = vmul.f32 %v1682_v37, %v6579_v15 }
 0x4ff   :  { %3828 = vrcp.f32 %v1664_v3 }
 0x508   :  { %v3827_v48 = vpop.eup %3826 }
 0x509   :  { %v3829_v28 = vpop.eup %3828  ;;  %v1675_v39 = vmul.f32 %v3827_v48, %v3825_v23  ;;  %v1691_v23 = vadd.f32 %v1687_v43, %v4669_v59 }
 0x50a   :  { %v1674_v4 = vmul.f32 %v3829_v28, %v5087_v8  ;;  %v1726_v27 = vpop.f32.mrb[36].mxu0  ;;  %v1767_v19 = vpop.f32.mrb[36].mxu1  ;;  %v1686_v8 = vmul.f32 %v1682_v37, %v4673_v46 }
 0x50b   :  { %v1774_v5 = vadd.f32 %v1726_v27, %v1688_v21  ;;  %v1728_v3 = vpop.f32.mrb[37].mxu0  ;;  %v1769_v36 = vpop.f32.mrb[37].mxu1 }
 0x50c   :  { %v5287_v41 = vadd.f32 %v1675_v39, %v1674_v4  ;;  %v1775_v32 = vadd.f32 %v1728_v3, %v1689_v40  ;;  %v1730_v52 = vpop.f32.mrb[38].mxu0  ;;  %v1771_v2 = vpop.f32.mrb[38].mxu1  ;;  %v1777_v48 = vadd.f32 %v1769_v36, %v1691_v23  ;;  %v1690_v21 = vadd.f32 %v1686_v8, %v4677_v0 }
 0x50d   :  { %v3493_v10 = vmul.f32 -1.442695, %v1774_v5  ;;  %v1731_v6 = vpop.f32.mrb[39].mxu0  ;;  %v1772_v49 = vpop.f32.mrb[39].mxu1 }
 0x50e   :  { %v3494_v7 = vmul.f32 -1.442695, %v1775_v32  ;;  %v3495_v28 = vmul.f32 -1.442695, %v1777_v48  ;;  %v1776_v27 = vadd.f32 %v1767_v19, %v1690_v21  ;;  %v1654_v19 = vadd.f32 %v5275_v62, %v4893_v16  ;;  %v5305_v48 = vld [vmem:[#allocation6 + $0x8] ss:$16 sps:$4 sm:$0xff]  }
 0x50f   :  { %3830 = vpow2.f32 %v3493_v10  ;;  %v5308_v62 = vld [vmem:[#allocation6 + $0x24] ss:$16 sps:$4 sm:$0xff]   ;;  %v5311_v21 = vld [vmem:[#allocation6 + $0x2c] ss:$16 sps:$4 sm:$0xff]  }
 0x510   :  { %3832 = vpow2.f32 %v3494_v7  ;;  %v3492_v10 = vmul.f32 -1.442695, %v1654_v19  ;;  %v5350_v19 = vld [vmem:[#allocation6 + $0x8c] ss:$16 sps:$4 sm:$0xff]  }
 0x511   :  { %3834 = vpow2.f32 %v3495_v28  ;;  %v5316_v28 = vld [vmem:[#allocation6 + $0x20] ss:$16 sps:$4 sm:$0xff]   ;;  %6723 = vst [vmem:[#allocation55_spill] sm:$0xff] %v5350_v19 }
 0x512   :  { %3836 = vtanh.f32 %v1776_v27  ;;  %v5319_v27 = vld [vmem:[#allocation6 + $0x28] ss:$16 sps:$4 sm:$0xff]  }
 0x519   :  { %v3831_v39 = vpop.eup %3830 }
 0x51a   :  { %v3833_v4 = vpop.eup %3832  ;;  %v1781_v40 = vadd.f32 1.0, %v3831_v39  ;;  %v5322_v39 = vld [vmem:[#allocation6 + $0x44] ss:$16 sps:$4 sm:$0xff]  }
 0x51b   :  { %v1787_v2 = vadd.f32 1.0, %v3833_v4  ;;  %v3835_v49 = vpop.eup %3834  ;;  %v5325_v4 = vld [vmem:[#allocation6 + $0x4c] ss:$16 sps:$4 sm:$0xff]  }
 0x51c   :  { %3838 = vrcp.f32 %v1781_v40  ;;  %v3837_v52 = vpop.eup %3836  ;;  %v1794_v37 = vadd.f32 1.0, %v3835_v49  ;;  %v5331_v49 = vld [vmem:[#allocation6 + $0x48] ss:$16 sps:$4 sm:$0xff]  }
 0x51d   :  { %3840 = vrcp.f32 %v1787_v2  ;;  %v5328_v2 = vld [vmem:[#allocation6 + $0x40] ss:$16 sps:$4 sm:$0xff]  }
 0x51e   :  { %3842 = vrcp.f32 %v1794_v37  ;;  %v5343_v37 = vld [vmem:[#allocation6 + $0x68] ss:$16 sps:$4 sm:$0xff]  }
 0x51f   :  { %6721 = vst [vmem:[#allocation53_spill] sm:$0xff] %v5343_v37 }
 0x526   :  { %v3839_v32 = vpop.eup %3838 }
 0x527   :  { %v3841_v6 = vpop.eup %3840  ;;  %v1798_v43 = vmul.f32 %v3839_v32, %v3837_v52  ;;  %v5334_v52 = vld [vmem:[#allocation6 + $0x64] ss:$16 sps:$4 sm:$0xff]   ;;  %v5337_v32 = vld [vmem:[#allocation6 + $0x6c] ss:$16 sps:$4 sm:$0xff]  }
 0x528   :  { %v1797_v36 = vmul.f32 %v3841_v6, %v5093_v13  ;;  %v3843_v3 = vpop.eup %3842  ;;  %v5302_v13 = vld [vmem:[#allocation6] ss:$16 sps:$4 sm:$0xff]  }
 0x52a   :  { %v5293_v5 = vadd.f32 %v1798_v43, %v1797_v36  ;;  %v5340_v43 = vld [vmem:[#allocation6 + $0x60] ss:$16 sps:$4 sm:$0xff]   ;;  %v5347_v36 = vld [vmem:[#allocation6 + $0x84] ss:$16 sps:$4 sm:$0xff]  }
 0x52b   :  { %6722 = vst [vmem:[#allocation54_spill] sm:$0xff] %v5347_v36 }
 0x52c   :  { %3844 = vtanh.f32 %v5293_v5 }
 0x52d   :  { %3846 = vpow2.f32 %v3492_v10  ;;  %v5356_v10 = vld [vmem:[#allocation6 + $0x88] ss:$16 sps:$4 sm:$0xff]  }
 0x52e   :  { %3848 = vtanh.f32 %v5287_v41  ;;  %6725 = vst [vmem:[#allocation57_spill] sm:$0xff] %v5356_v10 }
 0x536   :  { %v3845_v7 = vpop.eup %3844 }
 0x537   :  { %v1801_v23 = vmul.f32 %v3845_v7, %v3843_v3  ;;  %v3847_v40 = vpop.eup %3846  ;;  %v5353_v3 = vld [vmem:[#allocation6 + $0x80] ss:$16 sps:$4 sm:$0xff]   ;;  %v5359_v7 = vld [vmem:[#allocation6 + $0xa4] ss:$16 sps:$4 sm:$0xff]  }
 0x538   :  { %v1671_v6 = vadd.f32 1.0, %v3847_v40  ;;  %6724 = vst [vmem:[#allocation56_spill] sm:$0xff] %v5353_v3  ;;  %6726 = vst [vmem:[#allocation58_spill] sm:$0xff] %v5359_v7  ;;  %v5365_v40 = vld [vmem:[#allocation6 + $0xa0] ss:$16 sps:$4 sm:$0xff]  }
 0x539   :  { %v5298_v8 = vpack.c.bf16 %v1801_v23, %v1801_v23  ;;  %v5362_v23 = vld [vmem:[#allocation6 + $0xac] ss:$16 sps:$4 sm:$0xff]   ;;  %6728 = vst [vmem:[#allocation60_spill] sm:$0xff] %v5365_v40 }
 0x53a   :  { %3850 = vrcp.f32 %v1671_v6  ;;  %6727 = vst [vmem:[#allocation59_spill] sm:$0xff] %v5362_v23  ;;  %v5368_v6 = vld [vmem:[#allocation6 + $0xa8] ss:$16 sps:$4 sm:$0xff]  }
 0x53b   :  { %1836 = vmatmul.mubr.bf16.vlgmr.msra.gmra.mrb[40].mxu0 %v5298_v8  ;;  %1877 = vmatmul.mubr.bf16.vlgmr.msra.gmra.mrb[40].mxu1 %v5298_v8  ;;  %6729 = vst [vmem:[#allocation61_spill] sm:$0xff] %v5368_v6 }
 0x53c   :  { %1886 = vmatpush1.bf16.msra.mxu0 %v5302_v13  ;;  %1927 = vmatpush1.bf16.msra.mxu1 %v5305_v48 }
 0x53d   :  { %1887 = vmatprep.subr.bf16.mxu0 %v5308_v62  ;;  %1928 = vmatprep.subr.bf16.mxu1 %v5311_v21 }
 0x53e   :  { %1917 = vmatprep.mubr.bf16.mxu0 %v6529_v44  ;;  %1958 = vmatprep.mubr.bf16.mxu1 %v6529_v44 }
 0x540   :  { %1888 = vmatpush1.bf16.msra.mxu0 %v5316_v28  ;;  %1929 = vmatpush1.bf16.msra.mxu1 %v5319_v27 }
 0x541   :  { %1889 = vmatprep.subr.bf16.mxu0 %v5322_v39  ;;  %1930 = vmatprep.subr.bf16.mxu1 %v5325_v4 }
 0x544   :  { %1890 = vmatpush1.bf16.msra.mxu0 %v5328_v2  ;;  %1931 = vmatpush1.bf16.msra.mxu1 %v5331_v49 }
 0x545   :  { %1891 = vmatprep.subr.bf16.mxu0 %v5334_v52  ;;  %1932 = vmatprep.subr.bf16.mxu1 %v5337_v32 }
 0x548   :  { %1892 = vmatpush1.bf16.msra.mxu0 %v5340_v43  ;;  %1933 = vmatpush1.bf16.msra.mxu1 %v5343_v37  ;;  %v5392_v37 = vld [vmem:[#allocation6 + $0xe8] ss:$16 sps:$4 sm:$0xff]  }
 0x549   :  { %1893 = vmatprep.subr.bf16.mxu0 %v5347_v36  ;;  %1934 = vmatprep.subr.bf16.mxu1 %v5350_v19  ;;  %v5377_v36 = vld [vmem:[#allocation6 + $0xc0] ss:$16 sps:$4 sm:$0xff]  }
 0x54a   :  { %6732 = vst [vmem:[#allocation64_spill] sm:$0xff] %v5377_v36 }
 0x54c   :  { %1894 = vmatpush1.bf16.msra.mxu0 %v5353_v3  ;;  %1935 = vmatpush1.bf16.msra.mxu1 %v5356_v10  ;;  %v5371_v3 = vld [vmem:[#allocation6 + $0xc4] ss:$16 sps:$4 sm:$0xff]   ;;  %v5374_v10 = vld [vmem:[#allocation6 + $0xcc] ss:$16 sps:$4 sm:$0xff]  }
 0x54d   :  { %1895 = vmatprep.subr.bf16.mxu0 %v5359_v7  ;;  %1936 = vmatprep.subr.bf16.mxu1 %v5362_v23  ;;  %6730 = vst [vmem:[#allocation62_spill] sm:$0xff] %v5371_v3  ;;  %6731 = vst [vmem:[#allocation63_spill] sm:$0xff] %v5374_v10  ;;  %v3849_v7 = vpop.eup %3848  ;;  %v5380_v23 = vld [vmem:[#allocation6 + $0xc8] ss:$16 sps:$4 sm:$0xff]  }
 0x54e   :  { %v3851_v19 = vpop.eup %3850 }
 0x550   :  { %1896 = vmatpush1.bf16.msra.mxu0 %v5365_v40  ;;  %1937 = vmatpush1.bf16.msra.mxu1 %v5368_v6  ;;  %v5383_v40 = vld [vmem:[#allocation6 + $0xe4] ss:$16 sps:$4 sm:$0xff]   ;;  %v5386_v6 = vld [vmem:[#allocation6 + $0xec] ss:$16 sps:$4 sm:$0xff]  }
 0x551   :  { %1897 = vmatprep.subr.bf16.mxu0 %v5371_v3  ;;  %1938 = vmatprep.subr.bf16.mxu1 %v5374_v10  ;;  %v1678_v3 = vmul.f32 %v3851_v19, %v3849_v7  ;;  %v5389_v10 = vld [vmem:[#allocation6 + $0xe0] ss:$16 sps:$4 sm:$0xff]  }
 0x554   :  { %1898 = vmatpush1.bf16.msra.mxu0 %v5377_v36  ;;  %1939 = vmatpush1.bf16.msra.mxu1 %v5380_v23  ;;  %v1679_v36 = vpack.c.bf16 %v1678_v3, %v1678_v3 }
 0x555   :  { %1899 = vmatprep.subr.bf16.mxu0 %v5383_v40  ;;  %1940 = vmatprep.subr.bf16.mxu1 %v5386_v6 }
 0x558   :  { %1900 = vmatpush1.bf16.msra.mxu0 %v5389_v10  ;;  %1941 = vmatpush1.bf16.msra.mxu1 %v5392_v37 }
 0x559   :  { %2008 = vmatprep.subr.bf16.mxu0 %v4934_v29  ;;  %2049 = vmatprep.subr.bf16.mxu1 %v4937_v50  ;;  %v6733_v29 = vld [vmem:[#allocation21_spill] sm:$0xff]  ;;  %v6734_v50 = vld [vmem:[#allocation22_spill] sm:$0xff] }
 0x55b   :  { %1918 = vmatmul.mubr.bf16.vlgmr.msra.gmra.mrb[44].mxu0 %v1679_v36  ;;  %1959 = vmatmul.mubr.bf16.vlgmr.msra.gmra.mrb[44].mxu1 %v1679_v36  ;;  %v6766_v36 = vld [vmem:[#allocation52_spill] sm:$0xff] }
 0x55c   :  { %2009 = vmatpush1.bf16.msra.mxu0 %v6650_v58  ;;  %2050 = vmatpush1.bf16.msra.mxu1 %v6651_v55  ;;  %v6735_v58 = vld [vmem:[#allocation23_spill] sm:$0xff]  ;;  %v6736_v55 = vld [vmem:[#allocation24_spill] sm:$0xff] }
 0x55d   :  { %2010 = vmatprep.subr.bf16.mxu0 %v6652_v42  ;;  %2051 = vmatprep.subr.bf16.mxu1 %v6653_v54  ;;  %v6737_v42 = vld [vmem:[#allocation25_spill] sm:$0xff]  ;;  %v6738_v54 = vld [vmem:[#allocation26_spill] sm:$0xff] }
 0x55e   :  { %2040 = vmatprep.mubr.bf16.mxu0 %v6529_v44  ;;  %2081 = vmatprep.mubr.bf16.mxu1 %v6529_v44 }
 0x560   :  { %2011 = vmatpush1.bf16.msra.mxu0 %v6654_v56  ;;  %2052 = vmatpush1.bf16.msra.mxu1 %v6655_v60  ;;  %v6739_v56 = vld [vmem:[#allocation27_spill] sm:$0xff]  ;;  %v6740_v60 = vld [vmem:[#allocation28_spill] sm:$0xff] }
 0x561   :  { %2012 = vmatprep.subr.bf16.mxu0 %v6656_v63  ;;  %2053 = vmatprep.subr.bf16.mxu1 %v6657_v57  ;;  %v6741_v63 = vld [vmem:[#allocation29_spill] sm:$0xff]  ;;  %v6742_v57 = vld [vmem:[#allocation30_spill] sm:$0xff] }
 0x564   :  { %2013 = vmatpush1.bf16.msra.mxu0 %v6658_v61  ;;  %2054 = vmatpush1.bf16.msra.mxu1 %v6659_v45  ;;  %v6743_v61 = vld [vmem:[#allocation31_spill] sm:$0xff]  ;;  %v6744_v45 = vld [vmem:[#allocation32_spill] sm:$0xff] }
 0x565   :  { %2014 = vmatprep.subr.bf16.mxu0 %v6660_v47  ;;  %2055 = vmatprep.subr.bf16.mxu1 %v6661_v53  ;;  %v6745_v47 = vld [vmem:[#allocation33_spill] sm:$0xff]  ;;  %v6746_v53 = vld [vmem:[#allocation34_spill] sm:$0xff] }
 0x568   :  { %2015 = vmatpush1.bf16.msra.mxu0 %v6662_v17  ;;  %2056 = vmatpush1.bf16.msra.mxu1 %v6663_v22  ;;  %v6747_v17 = vld [vmem:[#allocation35_spill] sm:$0xff]  ;;  %v6748_v22 = vld [vmem:[#allocation36_spill] sm:$0xff] }
 0x569   :  { %2016 = vmatprep.subr.bf16.mxu0 %v6664_v20  ;;  %2057 = vmatprep.subr.bf16.mxu1 %v6665_v25  ;;  %v6749_v20 = vld [vmem:[#allocation37_spill] sm:$0xff]  ;;  %v6750_v25 = vld [vmem:[#allocation38_spill] sm:$0xff] }
 0x56c   :  { %2017 = vmatpush1.bf16.msra.mxu0 %v6666_v26  ;;  %2058 = vmatpush1.bf16.msra.mxu1 %v6667_v51  ;;  %v6751_v26 = vld [vmem:[#allocation16_spill] sm:$0xff]  ;;  %v6752_v51 = vld [vmem:[#allocation17_spill] sm:$0xff] }
 0x56d   :  { %2018 = vmatprep.subr.bf16.mxu0 %v6668_v24  ;;  %2059 = vmatprep.subr.bf16.mxu1 %v6669_v11  ;;  %v6753_v24 = vld [vmem:[#allocation18_spill] sm:$0xff]  ;;  %v6754_v11 = vld [vmem:[#allocation19_spill] sm:$0xff] }
 0x570   :  { %2019 = vmatpush1.bf16.msra.mxu0 %v6670_v14  ;;  %2060 = vmatpush1.bf16.msra.mxu1 %v6671_v30  ;;  %v6755_v14 = vld [vmem:[#allocation39_spill] sm:$0xff]  ;;  %v6756_v30 = vld [vmem:[#allocation40_spill] sm:$0xff] }
 0x571   :  { %2020 = vmatprep.subr.bf16.mxu0 %v6672_v9  ;;  %2061 = vmatprep.subr.bf16.mxu1 %v6673_v18  ;;  %v6757_v9 = vld [vmem:[#allocation12_spill] sm:$0xff]  ;;  %v6758_v18 = vld [vmem:[#allocation45_spill] sm:$0xff] }
 0x574   :  { %2021 = vmatpush1.bf16.msra.mxu0 %v6674_v12  ;;  %2062 = vmatpush1.bf16.msra.mxu1 %v6675_v34  ;;  %v6759_v12 = vld [vmem:[#allocation46_spill] sm:$0xff]  ;;  %v6760_v34 = vld [vmem:[#allocation43_spill] sm:$0xff] }
 0x575   :  { %2022 = vmatprep.subr.bf16.mxu0 %v6676_v35  ;;  %2063 = vmatprep.subr.bf16.mxu1 %v6677_v31  ;;  %v6761_v35 = vld [vmem:[#allocation47_spill] sm:$0xff]  ;;  %v6762_v31 = vld [vmem:[#allocation48_spill] sm:$0xff] }
 0x578   :  { %2023 = vmatpush1.bf16.msra.mxu0 %v6678_v1  ;;  %2064 = vmatpush1.bf16.msra.mxu1 %v6679_v38  ;;  %v6763_v1 = vld [vmem:[#allocation49_spill] sm:$0xff]  ;;  %v6764_v38 = vld [vmem:[#allocation50_spill] sm:$0xff] }
 0x579   :  { %2119 = vmatprep.subr.bf16.mxu0 %v6733_v29  ;;  %2160 = vmatprep.subr.bf16.mxu1 %v6734_v50 }
 0x57b   :  { %2041 = vmatmul.mubr.bf16.vlgmr.msra.gmra.mrb[48].mxu0 %v5298_v8  ;;  %2082 = vmatmul.mubr.bf16.vlgmr.msra.gmra.mrb[48].mxu1 %v5298_v8  ;;  %v6765_v8 = vld [vmem:[#allocation51_spill] sm:$0xff] }
 0x57c   :  { %2120 = vmatpush1.bf16.msra.mxu0 %v6735_v58  ;;  %2161 = vmatpush1.bf16.msra.mxu1 %v6736_v55 }
 0x57d   :  { %2121 = vmatprep.subr.bf16.mxu0 %v6737_v42  ;;  %2162 = vmatprep.subr.bf16.mxu1 %v6738_v54 }
 0x57e   :  { %2151 = vmatprep.mubr.bf16.mxu0 %v6529_v44  ;;  %2192 = vmatprep.mubr.bf16.mxu1 %v6529_v44 }
 0x580   :  { %2122 = vmatpush1.bf16.msra.mxu0 %v6739_v56  ;;  %2163 = vmatpush1.bf16.msra.mxu1 %v6740_v60 }
 0x581   :  { %2123 = vmatprep.subr.bf16.mxu0 %v6741_v63  ;;  %2164 = vmatprep.subr.bf16.mxu1 %v6742_v57 }
 0x584   :  { %2124 = vmatpush1.bf16.msra.mxu0 %v6743_v61  ;;  %2165 = vmatpush1.bf16.msra.mxu1 %v6744_v45 }
 0x585   :  { %2125 = vmatprep.subr.bf16.mxu0 %v6745_v47  ;;  %2166 = vmatprep.subr.bf16.mxu1 %v6746_v53 }
 0x588   :  { %2126 = vmatpush1.bf16.msra.mxu0 %v6747_v17  ;;  %2167 = vmatpush1.bf16.msra.mxu1 %v6748_v22  ;;  %v6768_v17 = vld [vmem:[#allocation14_spill] sm:$0xff] }
 0x589   :  { %2127 = vmatprep.subr.bf16.mxu0 %v6749_v20  ;;  %2168 = vmatprep.subr.bf16.mxu1 %v6750_v25 }
 0x58c   :  { %2128 = vmatpush1.bf16.msra.mxu0 %v6751_v26  ;;  %2169 = vmatpush1.bf16.msra.mxu1 %v6752_v51 }
 0x58d   :  { %2129 = vmatprep.subr.bf16.mxu0 %v6753_v24  ;;  %2170 = vmatprep.subr.bf16.mxu1 %v6754_v11 }
 0x590   :  { %2130 = vmatpush1.bf16.msra.mxu0 %v6755_v14  ;;  %2171 = vmatpush1.bf16.msra.mxu1 %v6756_v30 }
 0x591   :  { %2131 = vmatprep.subr.bf16.mxu0 %v6757_v9  ;;  %2172 = vmatprep.subr.bf16.mxu1 %v6758_v18 }
 0x594   :  { %2132 = vmatpush1.bf16.msra.mxu0 %v6759_v12  ;;  %2173 = vmatpush1.bf16.msra.mxu1 %v6760_v34 }
 0x595   :  { %2133 = vmatprep.subr.bf16.mxu0 %v6761_v35  ;;  %2174 = vmatprep.subr.bf16.mxu1 %v6762_v31 }
 0x598   :  { %2134 = vmatpush1.bf16.msra.mxu0 %v6763_v1  ;;  %2175 = vmatpush1.bf16.msra.mxu1 %v6764_v38 }
 0x599   :  { %2201 = vmatprep.subr.bf16.mxu0 %v6765_v8  ;;  %2242 = vmatprep.subr.bf16.mxu1 %v6766_v36  ;;  %v6767_v36 = vld [vmem:[#allocation13_spill] sm:$0xff] }
 0x60e   :  { %v1837_v19 = vpop.f32.mrb[40].mxu0  ;;  %v1878_v3 = vpop.f32.mrb[40].mxu1 }
 0x60f   :  { %v1839_v7 = vpop.f32.mrb[41].mxu0  ;;  %v1880_v18 = vpop.f32.mrb[41].mxu1 }
 0x610   :  { %v1841_v9 = vpop.f32.mrb[42].mxu0  ;;  %v1882_v12 = vpop.f32.mrb[42].mxu1 }
 0x611   :  { %v1842_v30 = vpop.f32.mrb[43].mxu0  ;;  %v1883_v34 = vpop.f32.mrb[43].mxu1 }
 0x612   :  { %v6769_v34 = vld [vmem:[#allocation15_spill] sm:$0xff] }
 0x62e   :  { %v1919_v14 = vpop.f32.mrb[44].mxu0  ;;  %v1960_v35 = vpop.f32.mrb[44].mxu1 }
 0x62f   :  { %v1920_v11 = vadd.f32 %v1919_v14, %v1837_v19  ;;  %v1961_v31 = vadd.f32 %v1960_v35, %v1878_v3  ;;  %v1921_v24 = vpop.f32.mrb[45].mxu0  ;;  %v1962_v1 = vpop.f32.mrb[45].mxu1 }
 0x630   :  { %v1922_v51 = vadd.f32 %v1921_v24, %v1839_v7  ;;  %v5467_v38 = vadd.f32 %v1962_v1, %v1880_v18  ;;  %v1923_v8 = vpop.f32.mrb[46].mxu0  ;;  %v1964_v26 = vpop.f32.mrb[46].mxu1  ;;  %v4297_v24 = vmov 5  }
 0x631   :  { %v1967_v25 = vadd.f32 %v1920_v11, %v6767_v36  ;;  %v1924_v20 = vpop.f32.mrb[47].mxu0  ;;  %v1965_v22 = vpop.f32.mrb[47].mxu1  ;;  %v1969_v14 = vadd.f32 %v1961_v31, %v6769_v34  ;;  %3584 = vset.pattern.permute.xlu0 %v4297_v24  ;;  %v6770_v26 = vld [vmem:[#allocation20_spill] sm:$0xff] }
 0x632   :  { %v1968_v9 = vadd.f32 %v1922_v51, %v6768_v17  ;;  %2313 = vperm.xlu0 %3584, %v6770_v26   ;;  %v1998_v22 = vpop.permute.xlu1 %1997  ;;  %v6771_v20 = vld [vmem:[#allocation41_spill] sm:$0xff]  ;;  %v6773_v8 = vld [vmem:[#allocation44_spill] sm:$0xff] }
 0x633   :  { %v3496_v12 = vmul.f32 -1.442695, %v1967_v25  ;;  %v2000_v51 = vmul.f32 %v1998_v22, %v6771_v20  ;;  %v6772_v25 = vld [vmem:[#allocation42_spill] sm:$0xff] }
 0x634   :  { %v3497_v30 = vmul.f32 -1.442695, %v1968_v9  ;;  %v2001_v11 = vmul.f32 %v1998_v22, %v6772_v25 }
 0x635   :  { %3852 = vpow2.f32 %v3496_v12  ;;  %v2004_v7 = vadd.f32 %v2000_v51, %v6773_v8 }
 0x636   :  { %3854 = vpow2.f32 %v3497_v30  ;;  %v2005_v9 = vadd.f32 %v2001_v11, %v6578_v33 }
 0x637   :  { %3856 = vtanh.f32 %v1969_v14 }
 0x63f   :  { %v3853_v35 = vpop.eup %3852 }
 0x640   :  { %v3855_v19 = vpop.eup %3854  ;;  %v1974_v3 = vadd.f32 1.0, %v3853_v35 }
 0x641   :  { %v1980_v18 = vadd.f32 1.0, %v3855_v19  ;;  %v3857_v1 = vpop.eup %3856 }
 0x642   :  { %3858 = vrcp.f32 %v1974_v3  ;;  %v2003_v3 = vmul.f32 %v1998_v22, %v6579_v15 }
 0x643   :  { %3860 = vrcp.f32 %v1980_v18 }
 0x64c   :  { %v3859_v31 = vpop.eup %3858 }
 0x64d   :  { %v3861_v12 = vpop.eup %3860  ;;  %v1991_v30 = vmul.f32 %v3859_v31, %v3857_v1  ;;  %v2007_v1 = vadd.f32 %v2003_v3, %v4669_v59 }
 0x64e   :  { %v1990_v14 = vmul.f32 %v3861_v12, %v5287_v41  ;;  %v2042_v35 = vpop.f32.mrb[48].mxu0  ;;  %v2083_v19 = vpop.f32.mrb[48].mxu1  ;;  %v2002_v41 = vmul.f32 %v1998_v22, %v4673_v46 }
 0x64f   :  { %v2090_v24 = vadd.f32 %v2042_v35, %v2004_v7  ;;  %v2044_v18 = vpop.f32.mrb[49].mxu0  ;;  %v2085_v26 = vpop.f32.mrb[49].mxu1 }
 0x650   :  { %v5479_v20 = vadd.f32 %v1991_v30, %v1990_v14  ;;  %v2091_v25 = vadd.f32 %v2044_v18, %v2005_v9  ;;  %v2046_v34 = vpop.f32.mrb[50].mxu0  ;;  %v2087_v17 = vpop.f32.mrb[50].mxu1  ;;  %v2093_v31 = vadd.f32 %v2085_v26, %v2007_v1  ;;  %v2006_v7 = vadd.f32 %v2002_v41, %v4677_v0 }
 0x651   :  { %v3499_v51 = vmul.f32 -1.442695, %v2090_v24  ;;  %v2047_v8 = vpop.f32.mrb[51].mxu0  ;;  %v2088_v36 = vpop.f32.mrb[51].mxu1 }
 0x652   :  { %v3500_v11 = vmul.f32 -1.442695, %v2091_v25  ;;  %v3501_v12 = vmul.f32 -1.442695, %v2093_v31  ;;  %v2092_v35 = vadd.f32 %v2083_v19, %v2006_v7  ;;  %v1970_v19 = vadd.f32 %v5467_v38, %v4893_v16  ;;  %v6774_v31 = vld [vmem:[#allocation53_spill] sm:$0xff]  ;;  %v6775_v7 = vld [vmem:[#allocation54_spill] sm:$0xff] }
 0x653   :  { %3862 = vpow2.f32 %v3499_v51 }
 0x654   :  { %3864 = vpow2.f32 %v3500_v11  ;;  %v3498_v51 = vmul.f32 -1.442695, %v1970_v19 }
 0x655   :  { %3866 = vpow2.f32 %v3501_v12  ;;  %v6776_v12 = vld [vmem:[#allocation55_spill] sm:$0xff] }
 0x656   :  { %3868 = vtanh.f32 %v2092_v35  ;;  %v6777_v35 = vld [vmem:[#allocation56_spill] sm:$0xff] }
 0x65d   :  { %v3863_v30 = vpop.eup %3862 }
 0x65e   :  { %v3865_v14 = vpop.eup %3864  ;;  %v2097_v9 = vadd.f32 1.0, %v3863_v30  ;;  %v6778_v30 = vld [vmem:[#allocation57_spill] sm:$0xff] }
 0x65f   :  { %v2103_v17 = vadd.f32 1.0, %v3865_v14  ;;  %v3867_v36 = vpop.eup %3866  ;;  %v6779_v14 = vld [vmem:[#allocation58_spill] sm:$0xff] }
 0x660   :  { %3870 = vrcp.f32 %v2097_v9  ;;  %v3869_v34 = vpop.eup %3868  ;;  %v2110_v22 = vadd.f32 1.0, %v3867_v36  ;;  %v6780_v9 = vld [vmem:[#allocation59_spill] sm:$0xff]  ;;  %v6782_v36 = vld [vmem:[#allocation61_spill] sm:$0xff] }
 0x661   :  { %3872 = vrcp.f32 %v2103_v17  ;;  %v6781_v17 = vld [vmem:[#allocation60_spill] sm:$0xff] }
 0x662   :  { %3874 = vrcp.f32 %v2110_v22  ;;  %v6785_v22 = vld [vmem:[#allocation64_spill] sm:$0xff] }
 0x66a   :  { %v3871_v25 = vpop.eup %3870 }
 0x66b   :  { %v3873_v8 = vpop.eup %3872  ;;  %v2114_v3 = vmul.f32 %v3871_v25, %v3869_v34  ;;  %v6783_v34 = vld [vmem:[#allocation62_spill] sm:$0xff]  ;;  %v6784_v25 = vld [vmem:[#allocation63_spill] sm:$0xff] }
 0x66c   :  { %v2113_v24 = vmul.f32 %v3873_v8, %v5293_v5  ;;  %v3875_v26 = vpop.eup %3874 }
 0x66e   :  { %v5485_v18 = vadd.f32 %v2114_v3, %v2113_v24 }
 0x670   :  { %3876 = vtanh.f32 %v5485_v18 }
 0x671   :  { %3878 = vpow2.f32 %v3498_v51  ;;  %v5530_v51 = vld [vmem:[#allocation2 + $0xc] ss:$16 sps:$4 sm:$0xff]  }
 0x672   :  { %3880 = vtanh.f32 %v5479_v20 }
 0x67a   :  { %v3877_v11 = vpop.eup %3876 }
 0x67b   :  { %v2117_v1 = vmul.f32 %v3877_v11, %v3875_v26  ;;  %v3879_v5 = vpop.eup %3878  ;;  %v5527_v26 = vld [vmem:[#allocation2 + $0x4] ss:$16 sps:$4 sm:$0xff]   ;;  %v5533_v11 = vld [vmem:[#allocation2] ss:$16 sps:$4 sm:$0xff]  }
 0x67c   :  { %v1987_v38 = vadd.f32 1.0, %v3879_v5  ;;  %v3881_v8 = vpop.eup %3880  ;;  %6786 = vst [vmem:[#allocation65_spill] sm:$0xff] %v5533_v11  ;;  %v5539_v5 = vld [vmem:[#allocation2 + $0x24] ss:$16 sps:$4 sm:$0xff]  }
 0x67d   :  { %v5490_v41 = vpack.c.bf16 %v2117_v1, %v2117_v1  ;;  %v5536_v1 = vld [vmem:[#allocation2 + $0x8] ss:$16 sps:$4 sm:$0xff]   ;;  %6788 = vst [vmem:[#allocation21_spill] sm:$0xff] %v5539_v5 }
 0x67e   :  { %3882 = vrcp.f32 %v1987_v38  ;;  %6787 = vst [vmem:[#allocation66_spill] sm:$0xff] %v5536_v1  ;;  %v5542_v38 = vld [vmem:[#allocation2 + $0x2c] ss:$16 sps:$4 sm:$0xff]  }
 0x67f   :  { %2152 = vmatmul.mubr.bf16.vlgmr.msra.gmra.mrb[52].mxu0 %v5490_v41  ;;  %2193 = vmatmul.mubr.bf16.vlgmr.msra.gmra.mrb[52].mxu1 %v5490_v41  ;;  %6789 = vst [vmem:[#allocation22_spill] sm:$0xff] %v5542_v38 }
 0x680   :  { %2202 = vmatpush1.bf16.msra.mxu0 %v5302_v13  ;;  %2243 = vmatpush1.bf16.msra.mxu1 %v5305_v48 }
 0x681   :  { %2203 = vmatprep.subr.bf16.mxu0 %v5308_v62  ;;  %2244 = vmatprep.subr.bf16.mxu1 %v5311_v21 }
 0x682   :  { %2233 = vmatprep.mubr.bf16.mxu0 %v6529_v44  ;;  %2274 = vmatprep.mubr.bf16.mxu1 %v6529_v44 }
 0x684   :  { %2204 = vmatpush1.bf16.msra.mxu0 %v5316_v28  ;;  %2245 = vmatpush1.bf16.msra.mxu1 %v5319_v27 }
 0x685   :  { %2205 = vmatprep.subr.bf16.mxu0 %v5322_v39  ;;  %2246 = vmatprep.subr.bf16.mxu1 %v5325_v4 }
 0x688   :  { %2206 = vmatpush1.bf16.msra.mxu0 %v5328_v2  ;;  %2247 = vmatpush1.bf16.msra.mxu1 %v5331_v49  ;;  %v3883_v3 = vpop.eup %3882 }
 0x689   :  { %2207 = vmatprep.subr.bf16.mxu0 %v5334_v52  ;;  %2248 = vmatprep.subr.bf16.mxu1 %v5337_v32  ;;  %v1994_v24 = vmul.f32 %v3883_v3, %v3881_v8  ;;  %v5547_v8 = vld [vmem:[#allocation2 + $0x20] ss:$16 sps:$4 sm:$0xff]   ;;  %v5550_v3 = vld [vmem:[#allocation2 + $0x28] ss:$16 sps:$4 sm:$0xff]  }
 0x68a   :  { %6790 = vst [vmem:[#allocation23_spill] sm:$0xff] %v5547_v8  ;;  %6791 = vst [vmem:[#allocation24_spill] sm:$0xff] %v5550_v3 }
 0x68b   :  { %v1995_v19 = vpack.c.bf16 %v1994_v24, %v1994_v24  ;;  %v5553_v24 = vld [vmem:[#allocation2 + $0x44] ss:$16 sps:$4 sm:$0xff]  }
 0x68c   :  { %2208 = vmatpush1.bf16.msra.mxu0 %v5340_v43  ;;  %2249 = vmatpush1.bf16.msra.mxu1 %v6774_v31  ;;  %6792 = vst [vmem:[#allocation25_spill] sm:$0xff] %v5553_v24 }
 0x68d   :  { %2209 = vmatprep.subr.bf16.mxu0 %v6775_v7  ;;  %2250 = vmatprep.subr.bf16.mxu1 %v6776_v12 }
 0x690   :  { %2210 = vmatpush1.bf16.msra.mxu0 %v6777_v35  ;;  %2251 = vmatpush1.bf16.msra.mxu1 %v6778_v30 }
 0x691   :  { %2211 = vmatprep.subr.bf16.mxu0 %v6779_v14  ;;  %2252 = vmatprep.subr.bf16.mxu1 %v6780_v9 }
 0x694   :  { %2212 = vmatpush1.bf16.msra.mxu0 %v6781_v17  ;;  %2253 = vmatpush1.bf16.msra.mxu1 %v6782_v36 }
 0x695   :  { %2213 = vmatprep.subr.bf16.mxu0 %v6783_v34  ;;  %2254 = vmatprep.subr.bf16.mxu1 %v6784_v25 }
 0x698   :  { %2214 = vmatpush1.bf16.msra.mxu0 %v6785_v22  ;;  %2255 = vmatpush1.bf16.msra.mxu1 %v5380_v23 }
 0x699   :  { %2215 = vmatprep.subr.bf16.mxu0 %v5383_v40  ;;  %2256 = vmatprep.subr.bf16.mxu1 %v5386_v6 }
 0x69c   :  { %2216 = vmatpush1.bf16.msra.mxu0 %v5389_v10  ;;  %2257 = vmatpush1.bf16.msra.mxu1 %v5392_v37 }
 0x69d   :  { %2324 = vmatprep.subr.bf16.mxu0 %v5527_v26  ;;  %2365 = vmatprep.subr.bf16.mxu1 %v5530_v51 }
 0x69f   :  { %2234 = vmatmul.mubr.bf16.vlgmr.msra.gmra.mrb[56].mxu0 %v1995_v19  ;;  %2275 = vmatmul.mubr.bf16.vlgmr.msra.gmra.mrb[56].mxu1 %v1995_v19  ;;  %v5556_v19 = vld [vmem:[#allocation2 + $0x4c] ss:$16 sps:$4 sm:$0xff]  }
 0x6a0   :  { %2325 = vmatpush1.bf16.msra.mxu0 %v5533_v11  ;;  %2366 = vmatpush1.bf16.msra.mxu1 %v5536_v1  ;;  %6793 = vst [vmem:[#allocation26_spill] sm:$0xff] %v5556_v19  ;;  %v6837_v11 = vld [vmem:[#allocation14_spill] sm:$0xff] }
 0x6a1   :  { %2326 = vmatprep.subr.bf16.mxu0 %v5539_v5  ;;  %2367 = vmatprep.subr.bf16.mxu1 %v5542_v38  ;;  %v5559_v38 = vld [vmem:[#allocation2 + $0x40] ss:$16 sps:$4 sm:$0xff]   ;;  %v5562_v5 = vld [vmem:[#allocation2 + $0x48] ss:$16 sps:$4 sm:$0xff]  }
 0x6a2   :  { %2356 = vmatprep.mubr.bf16.mxu0 %v6529_v44  ;;  %2397 = vmatprep.mubr.bf16.mxu1 %v6529_v44  ;;  %6794 = vst [vmem:[#allocation27_spill] sm:$0xff] %v5559_v38  ;;  %6795 = vst [vmem:[#allocation28_spill] sm:$0xff] %v5562_v5 }
 0x6a4   :  { %2327 = vmatpush1.bf16.msra.mxu0 %v5547_v8  ;;  %2368 = vmatpush1.bf16.msra.mxu1 %v5550_v3  ;;  %v5565_v8 = vld [vmem:[#allocation2 + $0x64] ss:$16 sps:$4 sm:$0xff]   ;;  %v5568_v3 = vld [vmem:[#allocation2 + $0x6c] ss:$16 sps:$4 sm:$0xff]  }
 0x6a5   :  { %2328 = vmatprep.subr.bf16.mxu0 %v5553_v24  ;;  %2369 = vmatprep.subr.bf16.mxu1 %v5556_v19  ;;  %6796 = vst [vmem:[#allocation29_spill] sm:$0xff] %v5565_v8  ;;  %6797 = vst [vmem:[#allocation30_spill] sm:$0xff] %v5568_v3  ;;  %v5571_v24 = vld [vmem:[#allocation2 + $0x60] ss:$16 sps:$4 sm:$0xff]   ;;  %v5574_v19 = vld [vmem:[#allocation2 + $0x68] ss:$16 sps:$4 sm:$0xff]  }
 0x6a6   :  { %6798 = vst [vmem:[#allocation31_spill] sm:$0xff] %v5571_v24  ;;  %6799 = vst [vmem:[#allocation32_spill] sm:$0xff] %v5574_v19 }
 0x6a8   :  { %2329 = vmatpush1.bf16.msra.mxu0 %v5559_v38  ;;  %2370 = vmatpush1.bf16.msra.mxu1 %v5562_v5  ;;  %v5577_v38 = vld [vmem:[#allocation2 + $0x84] ss:$16 sps:$4 sm:$0xff]   ;;  %v5580_v5 = vld [vmem:[#allocation2 + $0x8c] ss:$16 sps:$4 sm:$0xff]  }
 0x6a9   :  { %2330 = vmatprep.subr.bf16.mxu0 %v5565_v8  ;;  %2371 = vmatprep.subr.bf16.mxu1 %v5568_v3  ;;  %6800 = vst [vmem:[#allocation33_spill] sm:$0xff] %v5577_v38  ;;  %6801 = vst [vmem:[#allocation34_spill] sm:$0xff] %v5580_v5  ;;  %v5583_v8 = vld [vmem:[#allocation2 + $0x80] ss:$16 sps:$4 sm:$0xff]   ;;  %v5586_v3 = vld [vmem:[#allocation2 + $0x88] ss:$16 sps:$4 sm:$0xff]  }
 0x6aa   :  { %6802 = vst [vmem:[#allocation20_spill] sm:$0xff] %v5583_v8  ;;  %6803 = vst [vmem:[#allocation53_spill] sm:$0xff] %v5586_v3 }
 0x6ac   :  { %2331 = vmatpush1.bf16.msra.mxu0 %v5571_v24  ;;  %2372 = vmatpush1.bf16.msra.mxu1 %v5574_v19  ;;  %v5589_v24 = vld [vmem:[#allocation2 + $0xa4] ss:$16 sps:$4 sm:$0xff]   ;;  %v5592_v19 = vld [vmem:[#allocation2 + $0xac] ss:$16 sps:$4 sm:$0xff]  }
 0x6ad   :  { %2332 = vmatprep.subr.bf16.mxu0 %v5577_v38  ;;  %2373 = vmatprep.subr.bf16.mxu1 %v5580_v5  ;;  %6804 = vst [vmem:[#allocation54_spill] sm:$0xff] %v5589_v24  ;;  %6805 = vst [vmem:[#allocation55_spill] sm:$0xff] %v5592_v19  ;;  %v5595_v38 = vld [vmem:[#allocation2 + $0xa0] ss:$16 sps:$4 sm:$0xff]   ;;  %v5598_v5 = vld [vmem:[#allocation2 + $0xa8] ss:$16 sps:$4 sm:$0xff]  }
 0x6ae   :  { %6806 = vst [vmem:[#allocation56_spill] sm:$0xff] %v5595_v38  ;;  %6807 = vst [vmem:[#allocation57_spill] sm:$0xff] %v5598_v5 }
 0x6b0   :  { %2333 = vmatpush1.bf16.msra.mxu0 %v5583_v8  ;;  %2374 = vmatpush1.bf16.msra.mxu1 %v5586_v3  ;;  %v5601_v8 = vld [vmem:[#allocation2 + $0xc4] ss:$16 sps:$4 sm:$0xff]   ;;  %v5604_v3 = vld [vmem:[#allocation2 + $0xcc] ss:$16 sps:$4 sm:$0xff]  }
 0x6b1   :  { %2334 = vmatprep.subr.bf16.mxu0 %v5589_v24  ;;  %2375 = vmatprep.subr.bf16.mxu1 %v5592_v19  ;;  %6808 = vst [vmem:[#allocation58_spill] sm:$0xff] %v5601_v8  ;;  %6809 = vst [vmem:[#allocation59_spill] sm:$0xff] %v5604_v3  ;;  %v5607_v24 = vld [vmem:[#allocation2 + $0xc0] ss:$16 sps:$4 sm:$0xff]   ;;  %v5610_v19 = vld [vmem:[#allocation2 + $0xc8] ss:$16 sps:$4 sm:$0xff]  }
 0x6b2   :  { %6810 = vst [vmem:[#allocation60_spill] sm:$0xff] %v5607_v24  ;;  %6811 = vst [vmem:[#allocation61_spill] sm:$0xff] %v5610_v19 }
 0x6b4   :  { %2335 = vmatpush1.bf16.msra.mxu0 %v5595_v38  ;;  %2376 = vmatpush1.bf16.msra.mxu1 %v5598_v5  ;;  %v5613_v38 = vld [vmem:[#allocation2 + $0xe4] ss:$16 sps:$4 sm:$0xff]   ;;  %v5616_v5 = vld [vmem:[#allocation2 + $0xec] ss:$16 sps:$4 sm:$0xff]  }
 0x6b5   :  { %2336 = vmatprep.subr.bf16.mxu0 %v5601_v8  ;;  %2377 = vmatprep.subr.bf16.mxu1 %v5604_v3  ;;  %6812 = vst [vmem:[#allocation62_spill] sm:$0xff] %v5613_v38  ;;  %6813 = vst [vmem:[#allocation63_spill] sm:$0xff] %v5616_v5  ;;  %v5619_v8 = vld [vmem:[#allocation2 + $0xe0] ss:$16 sps:$4 sm:$0xff]   ;;  %v5622_v3 = vld [vmem:[#allocation2 + $0xe8] ss:$16 sps:$4 sm:$0xff]  }
 0x6b6   :  { %6814 = vst [vmem:[#allocation64_spill] sm:$0xff] %v5619_v8  ;;  %6815 = vst [vmem:[#allocation67_spill] sm:$0xff] %v5622_v3 }
 0x6b8   :  { %2337 = vmatpush1.bf16.msra.mxu0 %v5607_v24  ;;  %2378 = vmatpush1.bf16.msra.mxu1 %v5610_v19 }
 0x6b9   :  { %2338 = vmatprep.subr.bf16.mxu0 %v5613_v38  ;;  %2379 = vmatprep.subr.bf16.mxu1 %v5616_v5 }
 0x6bc   :  { %2339 = vmatpush1.bf16.msra.mxu0 %v5619_v8  ;;  %2380 = vmatpush1.bf16.msra.mxu1 %v5622_v3 }
 0x6bd   :  { %2435 = vmatprep.subr.bf16.mxu0 %v6733_v29  ;;  %2476 = vmatprep.subr.bf16.mxu1 %v6734_v50  ;;  %v6816_v29 = vld [vmem:[#allocation35_spill] sm:$0xff]  ;;  %v6817_v50 = vld [vmem:[#allocation36_spill] sm:$0xff] }
 0x6bf   :  { %2357 = vmatmul.mubr.bf16.vlgmr.msra.gmra.mrb[60].mxu0 %v5490_v41  ;;  %2398 = vmatmul.mubr.bf16.vlgmr.msra.gmra.mrb[60].mxu1 %v5490_v41  ;;  %v6830_v41 = vld [vmem:[#allocation47_spill] sm:$0xff] }
 0x6c0   :  { %2436 = vmatpush1.bf16.msra.mxu0 %v6735_v58  ;;  %2477 = vmatpush1.bf16.msra.mxu1 %v6736_v55  ;;  %v6818_v58 = vld [vmem:[#allocation37_spill] sm:$0xff]  ;;  %v6819_v55 = vld [vmem:[#allocation38_spill] sm:$0xff] }
 0x6c1   :  { %2437 = vmatprep.subr.bf16.mxu0 %v6737_v42  ;;  %2478 = vmatprep.subr.bf16.mxu1 %v6738_v54  ;;  %v6820_v42 = vld [vmem:[#allocation16_spill] sm:$0xff]  ;;  %v6821_v54 = vld [vmem:[#allocation17_spill] sm:$0xff] }
 0x6c2   :  { %2467 = vmatprep.mubr.bf16.mxu0 %v6529_v44  ;;  %2508 = vmatprep.mubr.bf16.mxu1 %v6529_v44 }
 0x6c4   :  { %2438 = vmatpush1.bf16.msra.mxu0 %v6739_v56  ;;  %2479 = vmatpush1.bf16.msra.mxu1 %v6740_v60  ;;  %v6822_v56 = vld [vmem:[#allocation18_spill] sm:$0xff]  ;;  %v6823_v60 = vld [vmem:[#allocation19_spill] sm:$0xff] }
 0x6c5   :  { %2439 = vmatprep.subr.bf16.mxu0 %v6741_v63  ;;  %2480 = vmatprep.subr.bf16.mxu1 %v6742_v57  ;;  %v6824_v63 = vld [vmem:[#allocation39_spill] sm:$0xff]  ;;  %v6825_v57 = vld [vmem:[#allocation40_spill] sm:$0xff] }
 0x6c8   :  { %2440 = vmatpush1.bf16.msra.mxu0 %v6743_v61  ;;  %2481 = vmatpush1.bf16.msra.mxu1 %v6744_v45  ;;  %v6826_v61 = vld [vmem:[#allocation12_spill] sm:$0xff]  ;;  %v6827_v45 = vld [vmem:[#allocation45_spill] sm:$0xff] }
 0x6c9   :  { %2441 = vmatprep.subr.bf16.mxu0 %v6745_v47  ;;  %2482 = vmatprep.subr.bf16.mxu1 %v6746_v53  ;;  %v6828_v47 = vld [vmem:[#allocation46_spill] sm:$0xff]  ;;  %v6829_v53 = vld [vmem:[#allocation43_spill] sm:$0xff] }
 0x6cc   :  { %2442 = vmatpush1.bf16.msra.mxu0 %v6816_v29  ;;  %2483 = vmatpush1.bf16.msra.mxu1 %v6817_v50  ;;  %v6831_v29 = vld [vmem:[#allocation48_spill] sm:$0xff]  ;;  %v6832_v50 = vld [vmem:[#allocation49_spill] sm:$0xff] }
 0x6cd   :  { %2443 = vmatprep.subr.bf16.mxu0 %v6818_v58  ;;  %2484 = vmatprep.subr.bf16.mxu1 %v6819_v55  ;;  %v6833_v58 = vld [vmem:[#allocation50_spill] sm:$0xff]  ;;  %v6834_v55 = vld [vmem:[#allocation51_spill] sm:$0xff] }
 0x6d0   :  { %2444 = vmatpush1.bf16.msra.mxu0 %v6820_v42  ;;  %2485 = vmatpush1.bf16.msra.mxu1 %v6821_v54  ;;  %v6835_v42 = vld [vmem:[#allocation52_spill] sm:$0xff] }
 0x6d1   :  { %2445 = vmatprep.subr.bf16.mxu0 %v6822_v56  ;;  %2486 = vmatprep.subr.bf16.mxu1 %v6823_v60 }
 0x6d4   :  { %2446 = vmatpush1.bf16.msra.mxu0 %v6824_v63  ;;  %2487 = vmatpush1.bf16.msra.mxu1 %v6825_v57 }
 0x6d5   :  { %2447 = vmatprep.subr.bf16.mxu0 %v6826_v61  ;;  %2488 = vmatprep.subr.bf16.mxu1 %v6827_v45 }
 0x6d8   :  { %2448 = vmatpush1.bf16.msra.mxu0 %v6828_v47  ;;  %2489 = vmatpush1.bf16.msra.mxu1 %v6829_v53 }
 0x6d9   :  { %2449 = vmatprep.subr.bf16.mxu0 %v6830_v41  ;;  %2490 = vmatprep.subr.bf16.mxu1 %v6831_v29 }
 0x6dc   :  { %2450 = vmatpush1.bf16.msra.mxu0 %v6832_v50  ;;  %2491 = vmatpush1.bf16.msra.mxu1 %v6833_v58 }
 0x6dd   :  { %2517 = vmatprep.subr.bf16.mxu0 %v6834_v55  ;;  %2558 = vmatprep.subr.bf16.mxu1 %v6835_v42  ;;  %v6836_v42 = vld [vmem:[#allocation13_spill] sm:$0xff] }
 0x752   :  { %v2153_v54 = vpop.f32.mrb[52].mxu0  ;;  %v2194_v56 = vpop.f32.mrb[52].mxu1 }
 0x753   :  { %v2155_v60 = vpop.f32.mrb[53].mxu0  ;;  %v2196_v63 = vpop.f32.mrb[53].mxu1 }
 0x754   :  { %v2157_v57 = vpop.f32.mrb[54].mxu0  ;;  %v2198_v61 = vpop.f32.mrb[54].mxu1 }
 0x755   :  { %v2158_v45 = vpop.f32.mrb[55].mxu0  ;;  %v2199_v47 = vpop.f32.mrb[55].mxu1 }
 0x756   :  { %v6838_v47 = vld [vmem:[#allocation15_spill] sm:$0xff] }
 0x772   :  { %v2235_v53 = vpop.f32.mrb[56].mxu0  ;;  %v2276_v41 = vpop.f32.mrb[56].mxu1 }
 0x773   :  { %v2236_v3 = vadd.f32 %v2235_v53, %v2153_v54  ;;  %v2277_v29 = vadd.f32 %v2276_v41, %v2194_v56  ;;  %v2237_v8 = vpop.f32.mrb[57].mxu0  ;;  %v2278_v50 = vpop.f32.mrb[57].mxu1 }
 0x774   :  { %v2238_v5 = vadd.f32 %v2237_v8, %v2155_v60  ;;  %v5663_v58 = vadd.f32 %v2278_v50, %v2196_v63  ;;  %v2239_v55 = vpop.f32.mrb[58].mxu0  ;;  %v2280_v38 = vpop.f32.mrb[58].mxu1  ;;  %v4298_v8 = vmov 6  }
 0x775   :  { %v2283_v19 = vadd.f32 %v2236_v3, %v6836_v42  ;;  %v2240_v24 = vpop.f32.mrb[59].mxu0  ;;  %v2281_v1 = vpop.f32.mrb[59].mxu1  ;;  %v2285_v54 = vadd.f32 %v2277_v29, %v6838_v47  ;;  %3585 = vset.pattern.permute.xlu1 %v4298_v8  ;;  %v5671_v38 = vld [vmem:[%s6123_s0] sm:$0xff] }
 0x776   :  { %v2284_v57 = vadd.f32 %v2238_v5, %v6837_v11  ;;  %6839 = vst [vmem:[#allocation35_spill] sm:$0xff] %v5671_v38  ;;  %2629 = vperm.xlu1 %3585, %v5671_v38   ;;  %v2314_v1 = vpop.permute.xlu0 %2313  ;;  %v6840_v5 = vld [vmem:[#allocation41_spill] sm:$0xff]  ;;  %v6841_v24 = vld [vmem:[#allocation42_spill] sm:$0xff]  ;;  %v6842_v29 = vld [vmem:[#allocation44_spill] sm:$0xff] }
 0x777   :  { %v3502_v61 = vmul.f32 -1.442695, %v2283_v19  ;;  %v2316_v3 = vmul.f32 %v2314_v1, %v6840_v5  ;;  %v2317_v19 = vmul.f32 %v2314_v1, %v6841_v24 }
 0x778   :  { %v3503_v45 = vmul.f32 -1.442695, %v2284_v57 }
 0x779   :  { %3884 = vpow2.f32 %v3502_v61  ;;  %v2320_v50 = vadd.f32 %v2316_v3, %v6842_v29  ;;  %v2321_v57 = vadd.f32 %v2317_v19, %v6578_v33 }
 0x77a   :  { %3886 = vpow2.f32 %v3503_v45 }
 0x77b   :  { %3888 = vtanh.f32 %v2285_v54 }
 0x783   :  { %v3885_v56 = vpop.eup %3884 }
 0x784   :  { %v3887_v53 = vpop.eup %3886  ;;  %v2290_v41 = vadd.f32 1.0, %v3885_v56  ;;  %v2319_v56 = vmul.f32 %v2314_v1, %v6579_v15 }
 0x785   :  { %v2296_v60 = vadd.f32 1.0, %v3887_v53  ;;  %v3889_v63 = vpop.eup %3888 }
 0x786   :  { %3890 = vrcp.f32 %v2290_v41 }
 0x787   :  { %3892 = vrcp.f32 %v2296_v60 }
 0x790   :  { %v3891_v55 = vpop.eup %3890 }
 0x791   :  { %v3893_v61 = vpop.eup %3892  ;;  %v2307_v45 = vmul.f32 %v3891_v55, %v3889_v63  ;;  %v2323_v63 = vadd.f32 %v2319_v56, %v4669_v59 }
 0x792   :  { %v2306_v54 = vmul.f32 %v3893_v61, %v5479_v20  ;;  %v2358_v53 = vpop.f32.mrb[60].mxu0  ;;  %v2399_v41 = vpop.f32.mrb[60].mxu1  ;;  %v2318_v20 = vmul.f32 %v2314_v1, %v4673_v46 }
 0x793   :  { %v2406_v8 = vadd.f32 %v2358_v53, %v2320_v50  ;;  %v2360_v60 = vpop.f32.mrb[61].mxu0  ;;  %v2401_v38 = vpop.f32.mrb[61].mxu1 }
 0x794   :  { %v5680_v5 = vadd.f32 %v2307_v45, %v2306_v54  ;;  %v2407_v24 = vadd.f32 %v2360_v60, %v2321_v57  ;;  %v2362_v47 = vpop.f32.mrb[62].mxu0  ;;  %v2403_v11 = vpop.f32.mrb[62].mxu1  ;;  %v2409_v55 = vadd.f32 %v2401_v38, %v2323_v63  ;;  %v2322_v50 = vadd.f32 %v2318_v20, %v4677_v0 }
 0x795   :  { %v3505_v3 = vmul.f32 -1.442695, %v2406_v8  ;;  %v2363_v29 = vpop.f32.mrb[63].mxu0  ;;  %v2404_v42 = vpop.f32.mrb[63].mxu1 }
 0x796   :  { %v3506_v19 = vmul.f32 -1.442695, %v2407_v24  ;;  %v3507_v61 = vmul.f32 -1.442695, %v2409_v55  ;;  %v2408_v53 = vadd.f32 %v2399_v41, %v2322_v50  ;;  %v2286_v41 = vadd.f32 %v5663_v58, %v4893_v16  ;;  %v6868_v58 = vld [vmem:[#allocation61_spill] sm:$0xff]  ;;  %v6869_v55 = vld [vmem:[#allocation62_spill] sm:$0xff] }
 0x797   :  { %3894 = vpow2.f32 %v3505_v3  ;;  %v6870_v50 = vld [vmem:[#allocation63_spill] sm:$0xff] }
 0x798   :  { %3896 = vpow2.f32 %v3506_v19  ;;  %v3504_v3 = vmul.f32 -1.442695, %v2286_v41  ;;  %v5799_v41 = vld [vmem:[#allocation4 + $0x48] ss:$16 sps:$4 sm:$0xff]  }
 0x799   :  { %3898 = vpow2.f32 %v3507_v61  ;;  %v6871_v61 = vld [vmem:[#allocation64_spill] sm:$0xff]  ;;  %6884 = vst [vmem:[#allocation46_spill] sm:$0xff] %v5799_v41 }
 0x79a   :  { %3900 = vtanh.f32 %v2408_v53  ;;  %v6872_v53 = vld [vmem:[#allocation67_spill] sm:$0xff] }
 0x7a1   :  { %v3895_v45 = vpop.eup %3894 }
 0x7a2   :  { %v3897_v54 = vpop.eup %3896  ;;  %v2413_v57 = vadd.f32 1.0, %v3895_v45  ;;  %v5762_v45 = vld [vmem:[#allocation4 + $0x4] ss:$16 sps:$4 sm:$0xff]  }
 0x7a3   :  { %v2419_v11 = vadd.f32 1.0, %v3897_v54  ;;  %v3899_v42 = vpop.eup %3898  ;;  %6873 = vst [vmem:[#allocation36_spill] sm:$0xff] %v5762_v45  ;;  %v5765_v54 = vld [vmem:[#allocation4 + $0xc] ss:$16 sps:$4 sm:$0xff]  }
 0x7a4   :  { %3902 = vrcp.f32 %v2413_v57  ;;  %v3901_v47 = vpop.eup %3900  ;;  %v2426_v56 = vadd.f32 1.0, %v3899_v42  ;;  %6874 = vst [vmem:[#allocation37_spill] sm:$0xff] %v5765_v54  ;;  %v5770_v57 = vld [vmem:[#allocation4] ss:$16 sps:$4 sm:$0xff]   ;;  %v5776_v42 = vld [vmem:[#allocation4 + $0x24] ss:$16 sps:$4 sm:$0xff]  }
 0x7a5   :  { %3904 = vrcp.f32 %v2419_v11  ;;  %6875 = vst [vmem:[#allocation38_spill] sm:$0xff] %v5770_v57  ;;  %v5773_v11 = vld [vmem:[#allocation4 + $0x8] ss:$16 sps:$4 sm:$0xff]   ;;  %6877 = vst [vmem:[#allocation17_spill] sm:$0xff] %v5776_v42 }
 0x7a6   :  { %3906 = vrcp.f32 %v2426_v56  ;;  %6876 = vst [vmem:[#allocation16_spill] sm:$0xff] %v5773_v11  ;;  %v5793_v56 = vld [vmem:[#allocation4 + $0x4c] ss:$16 sps:$4 sm:$0xff]  }
 0x7a7   :  { %6882 = vst [vmem:[#allocation12_spill] sm:$0xff] %v5793_v56 }
 0x7ae   :  { %v3903_v24 = vpop.eup %3902 }
 0x7af   :  { %v3905_v29 = vpop.eup %3904  ;;  %v2430_v1 = vmul.f32 %v3903_v24, %v3901_v47  ;;  %v5779_v47 = vld [vmem:[#allocation4 + $0x2c] ss:$16 sps:$4 sm:$0xff]   ;;  %v5784_v24 = vld [vmem:[#allocation4 + $0x20] ss:$16 sps:$4 sm:$0xff]  }
 0x7b0   :  { %v2429_v38 = vmul.f32 %v3905_v29, %v5485_v18  ;;  %v3907_v60 = vpop.eup %3906  ;;  %6878 = vst [vmem:[#allocation18_spill] sm:$0xff] %v5779_v47  ;;  %6879 = vst [vmem:[#allocation19_spill] sm:$0xff] %v5784_v24  ;;  %v5787_v29 = vld [vmem:[#allocation4 + $0x28] ss:$16 sps:$4 sm:$0xff]  }
 0x7b1   :  { %6880 = vst [vmem:[#allocation39_spill] sm:$0xff] %v5787_v29 }
 0x7b2   :  { %v5686_v8 = vadd.f32 %v2430_v1, %v2429_v38  ;;  %v5790_v1 = vld [vmem:[#allocation4 + $0x44] ss:$16 sps:$4 sm:$0xff]   ;;  %v5796_v38 = vld [vmem:[#allocation4 + $0x40] ss:$16 sps:$4 sm:$0xff]  }
 0x7b3   :  { %6881 = vst [vmem:[#allocation40_spill] sm:$0xff] %v5790_v1  ;;  %6883 = vst [vmem:[#allocation45_spill] sm:$0xff] %v5796_v38 }
 0x7b4   :  { %3908 = vtanh.f32 %v5686_v8 }
 0x7b5   :  { %3910 = vpow2.f32 %v3504_v3  ;;  %v5805_v3 = vld [vmem:[#allocation4 + $0x6c] ss:$16 sps:$4 sm:$0xff]  }
 0x7b6   :  { %3912 = vtanh.f32 %v5680_v5  ;;  %6886 = vst [vmem:[#allocation47_spill] sm:$0xff] %v5805_v3 }
 0x7be   :  { %v3909_v19 = vpop.eup %3908 }
 0x7bf   :  { %v2433_v63 = vmul.f32 %v3909_v19, %v3907_v60  ;;  %v3911_v18 = vpop.eup %3910  ;;  %v5802_v60 = vld [vmem:[#allocation4 + $0x64] ss:$16 sps:$4 sm:$0xff]   ;;  %v5808_v19 = vld [vmem:[#allocation4 + $0x60] ss:$16 sps:$4 sm:$0xff]  }
 0x7c0   :  { %6885 = vst [vmem:[#allocation43_spill] sm:$0xff] %v5802_v60  ;;  %6887 = vst [vmem:[#allocation48_spill] sm:$0xff] %v5808_v19 }
 0x7c1   :  { %v5691_v20 = vpack.c.bf16 %v2433_v63, %v2433_v63  ;;  %v5811_v63 = vld [vmem:[#allocation4 + $0x68] ss:$16 sps:$4 sm:$0xff]  }
 0x7c2   :  { %6888 = vst [vmem:[#allocation49_spill] sm:$0xff] %v5811_v63 }
 0x7c3   :  { %2468 = vmatmul.mubr.bf16.vlgmr.msra.gmra.mrb[64].mxu0 %v5691_v20  ;;  %2509 = vmatmul.mubr.bf16.vlgmr.msra.gmra.mrb[64].mxu1 %v5691_v20 }
 0x7c4   :  { %2518 = vmatpush1.bf16.msra.mxu0 %v5302_v13  ;;  %2559 = vmatpush1.bf16.msra.mxu1 %v5305_v48  ;;  %v2303_v13 = vadd.f32 1.0, %v3911_v18  ;;  %v3913_v48 = vpop.eup %3912  ;;  %v5817_v18 = vld [vmem:[#allocation4 + $0x8c] ss:$16 sps:$4 sm:$0xff]  }
 0x7c5   :  { %2519 = vmatprep.subr.bf16.mxu0 %v5308_v62  ;;  %2560 = vmatprep.subr.bf16.mxu1 %v5311_v21  ;;  %6890 = vst [vmem:[#allocation51_spill] sm:$0xff] %v5817_v18 }
 0x7c6   :  { %2549 = vmatprep.mubr.bf16.mxu0 %v6529_v44  ;;  %2590 = vmatprep.mubr.bf16.mxu1 %v6529_v44  ;;  %3914 = vrcp.f32 %v2303_v13  ;;  %v5820_v13 = vld [vmem:[#allocation4 + $0x80] ss:$16 sps:$4 sm:$0xff]  }
 0x7c7   :  { %6891 = vst [vmem:[#allocation52_spill] sm:$0xff] %v5820_v13 }
 0x7c8   :  { %2520 = vmatpush1.bf16.msra.mxu0 %v5316_v28  ;;  %2561 = vmatpush1.bf16.msra.mxu1 %v5319_v27  ;;  %v6843_v27 = vld [vmem:[#allocation65_spill] sm:$0xff] }
 0x7c9   :  { %2521 = vmatprep.subr.bf16.mxu0 %v5322_v39  ;;  %2562 = vmatprep.subr.bf16.mxu1 %v5325_v4  ;;  %v6844_v39 = vld [vmem:[#allocation66_spill] sm:$0xff]  ;;  %v6845_v4 = vld [vmem:[#allocation21_spill] sm:$0xff] }
 0x7cc   :  { %2522 = vmatpush1.bf16.msra.mxu0 %v5328_v2  ;;  %2563 = vmatpush1.bf16.msra.mxu1 %v5331_v49  ;;  %v6846_v2 = vld [vmem:[#allocation22_spill] sm:$0xff]  ;;  %v6847_v49 = vld [vmem:[#allocation23_spill] sm:$0xff] }
 0x7cd   :  { %2523 = vmatprep.subr.bf16.mxu0 %v5334_v52  ;;  %2564 = vmatprep.subr.bf16.mxu1 %v5337_v32  ;;  %v6848_v52 = vld [vmem:[#allocation24_spill] sm:$0xff]  ;;  %v6849_v32 = vld [vmem:[#allocation25_spill] sm:$0xff] }
 0x7d0   :  { %2524 = vmatpush1.bf16.msra.mxu0 %v5340_v43  ;;  %2565 = vmatpush1.bf16.msra.mxu1 %v6774_v31  ;;  %v3915_v62 = vpop.eup %3914  ;;  %v6850_v43 = vld [vmem:[#allocation26_spill] sm:$0xff]  ;;  %v6856_v31 = vld [vmem:[#allocation32_spill] sm:$0xff] }
 0x7d1   :  { %2525 = vmatprep.subr.bf16.mxu0 %v6775_v7  ;;  %2566 = vmatprep.subr.bf16.mxu1 %v6776_v12  ;;  %v2310_v21 = vmul.f32 %v3915_v62, %v3913_v48  ;;  %v6857_v7 = vld [vmem:[#allocation33_spill] sm:$0xff]  ;;  %v6858_v12 = vld [vmem:[#allocation34_spill] sm:$0xff] }
 0x7d2   :  { %v5823_v48 = vld [vmem:[#allocation4 + $0x88] ss:$16 sps:$4 sm:$0xff]   ;;  %v5826_v62 = vld [vmem:[#allocation4 + $0xa4] ss:$16 sps:$4 sm:$0xff]  }
 0x7d3   :  { %v2311_v28 = vpack.c.bf16 %v2310_v21, %v2310_v21  ;;  %6892 = vst [vmem:[#allocation65_spill] sm:$0xff] %v5823_v48  ;;  %6893 = vst [vmem:[#allocation66_spill] sm:$0xff] %v5826_v62  ;;  %v5829_v21 = vld [vmem:[#allocation4 + $0xac] ss:$16 sps:$4 sm:$0xff]  }
 0x7d4   :  { %2526 = vmatpush1.bf16.msra.mxu0 %v6777_v35  ;;  %2567 = vmatpush1.bf16.msra.mxu1 %v6778_v30  ;;  %v6859_v35 = vld [vmem:[#allocation20_spill] sm:$0xff]  ;;  %v6860_v30 = vld [vmem:[#allocation53_spill] sm:$0xff]  ;;  %6894 = vst [vmem:[#allocation21_spill] sm:$0xff] %v5829_v21 }
 0x7d5   :  { %2527 = vmatprep.subr.bf16.mxu0 %v6779_v14  ;;  %2568 = vmatprep.subr.bf16.mxu1 %v6780_v9  ;;  %v6861_v14 = vld [vmem:[#allocation54_spill] sm:$0xff]  ;;  %v6862_v9 = vld [vmem:[#allocation55_spill] sm:$0xff] }
 0x7d8   :  { %2528 = vmatpush1.bf16.msra.mxu0 %v6781_v17  ;;  %2569 = vmatpush1.bf16.msra.mxu1 %v6782_v36  ;;  %v6863_v17 = vld [vmem:[#allocation56_spill] sm:$0xff]  ;;  %v6864_v36 = vld [vmem:[#allocation57_spill] sm:$0xff] }
 0x7d9   :  { %2529 = vmatprep.subr.bf16.mxu0 %v6783_v34  ;;  %2570 = vmatprep.subr.bf16.mxu1 %v6784_v25  ;;  %v6865_v34 = vld [vmem:[#allocation58_spill] sm:$0xff]  ;;  %v6866_v25 = vld [vmem:[#allocation59_spill] sm:$0xff] }
 0x7dc   :  { %2530 = vmatpush1.bf16.msra.mxu0 %v6785_v22  ;;  %2571 = vmatpush1.bf16.msra.mxu1 %v5380_v23  ;;  %v6853_v23 = vld [vmem:[#allocation29_spill] sm:$0xff]  ;;  %v6867_v22 = vld [vmem:[#allocation60_spill] sm:$0xff] }
 0x7dd   :  { %2531 = vmatprep.subr.bf16.mxu0 %v5383_v40  ;;  %2572 = vmatprep.subr.bf16.mxu1 %v5386_v6  ;;  %v6854_v40 = vld [vmem:[#allocation30_spill] sm:$0xff]  ;;  %v6855_v6 = vld [vmem:[#allocation31_spill] sm:$0xff] }
 0x7e0   :  { %2532 = vmatpush1.bf16.msra.mxu0 %v5389_v10  ;;  %2573 = vmatpush1.bf16.msra.mxu1 %v5392_v37  ;;  %v6851_v37 = vld [vmem:[#allocation27_spill] sm:$0xff]  ;;  %v6852_v10 = vld [vmem:[#allocation28_spill] sm:$0xff] }
 0x7e1   :  { %2640 = vmatprep.subr.bf16.mxu0 %v5527_v26  ;;  %2681 = vmatprep.subr.bf16.mxu1 %v5530_v51 }
 0x7e3   :  { %2550 = vmatmul.mubr.bf16.vlgmr.msra.gmra.mrb[68].mxu0 %v2311_v28  ;;  %2591 = vmatmul.mubr.bf16.vlgmr.msra.gmra.mrb[68].mxu1 %v2311_v28  ;;  %v5832_v28 = vld [vmem:[#allocation4 + $0xa0] ss:$16 sps:$4 sm:$0xff]  }
 0x7e4   :  { %2641 = vmatpush1.bf16.msra.mxu0 %v6843_v27  ;;  %2682 = vmatpush1.bf16.msra.mxu1 %v6844_v39  ;;  %6895 = vst [vmem:[#allocation22_spill] sm:$0xff] %v5832_v28 }
 0x7e5   :  { %2642 = vmatprep.subr.bf16.mxu0 %v6845_v4  ;;  %2683 = vmatprep.subr.bf16.mxu1 %v6846_v2 }
 0x7e6   :  { %2672 = vmatprep.mubr.bf16.mxu0 %v6529_v44  ;;  %2713 = vmatprep.mubr.bf16.mxu1 %v6529_v44 }
 0x7e8   :  { %2643 = vmatpush1.bf16.msra.mxu0 %v6847_v49  ;;  %2684 = vmatpush1.bf16.msra.mxu1 %v6848_v52 }
 0x7e9   :  { %2644 = vmatprep.subr.bf16.mxu0 %v6849_v32  ;;  %2685 = vmatprep.subr.bf16.mxu1 %v6850_v43 }
 0x7ec   :  { %2645 = vmatpush1.bf16.msra.mxu0 %v6851_v37  ;;  %2686 = vmatpush1.bf16.msra.mxu1 %v6852_v10 }
 0x7ed   :  { %2646 = vmatprep.subr.bf16.mxu0 %v6853_v23  ;;  %2687 = vmatprep.subr.bf16.mxu1 %v6854_v40 }
 0x7f0   :  { %2647 = vmatpush1.bf16.msra.mxu0 %v6855_v6  ;;  %2688 = vmatpush1.bf16.msra.mxu1 %v6856_v31 }
 0x7f1   :  { %2648 = vmatprep.subr.bf16.mxu0 %v6857_v7  ;;  %2689 = vmatprep.subr.bf16.mxu1 %v6858_v12 }
 0x7f4   :  { %2649 = vmatpush1.bf16.msra.mxu0 %v6859_v35  ;;  %2690 = vmatpush1.bf16.msra.mxu1 %v6860_v30 }
 0x7f5   :  { %2650 = vmatprep.subr.bf16.mxu0 %v6861_v14  ;;  %2691 = vmatprep.subr.bf16.mxu1 %v6862_v9 }
 0x7f8   :  { %2651 = vmatpush1.bf16.msra.mxu0 %v6863_v17  ;;  %2692 = vmatpush1.bf16.msra.mxu1 %v6864_v36 }
 0x7f9   :  { %2652 = vmatprep.subr.bf16.mxu0 %v6865_v34  ;;  %2693 = vmatprep.subr.bf16.mxu1 %v6866_v25 }
 0x7fc   :  { %2653 = vmatpush1.bf16.msra.mxu0 %v6867_v22  ;;  %2694 = vmatpush1.bf16.msra.mxu1 %v6868_v58 }
 0x7fd   :  { %2654 = vmatprep.subr.bf16.mxu0 %v6869_v55  ;;  %2695 = vmatprep.subr.bf16.mxu1 %v6870_v50 }
 0x800   :  { %2655 = vmatpush1.bf16.msra.mxu0 %v6871_v61  ;;  %2696 = vmatpush1.bf16.msra.mxu1 %v6872_v53 }
 0x801   :  { %2751 = vmatprep.subr.bf16.mxu0 %v5762_v45  ;;  %2792 = vmatprep.subr.bf16.mxu1 %v5765_v54  ;;  %v6908_v45 = vld [vmem:[#allocation14_spill] sm:$0xff] }
 0x803   :  { %2673 = vmatmul.mubr.bf16.vlgmr.msra.gmra.mrb[72].mxu0 %v5691_v20  ;;  %2714 = vmatmul.mubr.bf16.vlgmr.msra.gmra.mrb[72].mxu1 %v5691_v20  ;;  %v5814_v20 = vld [vmem:[#allocation4 + $0x84] ss:$16 sps:$4 sm:$0xff]  }
 0x804   :  { %2752 = vmatpush1.bf16.msra.mxu0 %v5770_v57  ;;  %2793 = vmatpush1.bf16.msra.mxu1 %v5773_v11  ;;  %6889 = vst [vmem:[#allocation50_spill] sm:$0xff] %v5814_v20 }
 0x805   :  { %2753 = vmatprep.subr.bf16.mxu0 %v5776_v42  ;;  %2794 = vmatprep.subr.bf16.mxu1 %v5779_v47 }
 0x806   :  { %2783 = vmatprep.mubr.bf16.mxu0 %v6529_v44  ;;  %2824 = vmatprep.mubr.bf16.mxu1 %v6529_v44 }
 0x808   :  { %2754 = vmatpush1.bf16.msra.mxu0 %v5784_v24  ;;  %2795 = vmatpush1.bf16.msra.mxu1 %v5787_v29 }
 0x809   :  { %2755 = vmatprep.subr.bf16.mxu0 %v5790_v1  ;;  %2796 = vmatprep.subr.bf16.mxu1 %v5793_v56 }
 0x80c   :  { %2756 = vmatpush1.bf16.msra.mxu0 %v5796_v38  ;;  %2797 = vmatpush1.bf16.msra.mxu1 %v5799_v41 }
 0x80d   :  { %2757 = vmatprep.subr.bf16.mxu0 %v5802_v60  ;;  %2798 = vmatprep.subr.bf16.mxu1 %v5805_v3 }
 0x810   :  { %2758 = vmatpush1.bf16.msra.mxu0 %v5808_v19  ;;  %2799 = vmatpush1.bf16.msra.mxu1 %v5811_v63 }
 0x811   :  { %2759 = vmatprep.subr.bf16.mxu0 %v5814_v20  ;;  %2800 = vmatprep.subr.bf16.mxu1 %v5817_v18  ;;  %v5835_v18 = vld [vmem:[#allocation4 + $0xa8] ss:$16 sps:$4 sm:$0xff]  }
 0x812   :  { %6896 = vst [vmem:[#allocation23_spill] sm:$0xff] %v5835_v18 }
 0x814   :  { %2760 = vmatpush1.bf16.msra.mxu0 %v5820_v13  ;;  %2801 = vmatpush1.bf16.msra.mxu1 %v5823_v48  ;;  %v5838_v13 = vld [vmem:[#allocation4 + $0xc4] ss:$16 sps:$4 sm:$0xff]   ;;  %v5841_v48 = vld [vmem:[#allocation4 + $0xcc] ss:$16 sps:$4 sm:$0xff]  }
 0x815   :  { %2761 = vmatprep.subr.bf16.mxu0 %v5826_v62  ;;  %2802 = vmatprep.subr.bf16.mxu1 %v5829_v21  ;;  %6897 = vst [vmem:[#allocation24_spill] sm:$0xff] %v5838_v13  ;;  %6898 = vst [vmem:[#allocation25_spill] sm:$0xff] %v5841_v48  ;;  %v5844_v62 = vld [vmem:[#allocation4 + $0xc0] ss:$16 sps:$4 sm:$0xff]   ;;  %v5847_v21 = vld [vmem:[#allocation4 + $0xc8] ss:$16 sps:$4 sm:$0xff]  }
 0x816   :  { %6899 = vst [vmem:[#allocation26_spill] sm:$0xff] %v5844_v62  ;;  %6900 = vst [vmem:[#allocation27_spill] sm:$0xff] %v5847_v21 }
 0x818   :  { %2762 = vmatpush1.bf16.msra.mxu0 %v5832_v28  ;;  %2803 = vmatpush1.bf16.msra.mxu1 %v5835_v18  ;;  %v5850_v28 = vld [vmem:[#allocation4 + $0xe4] ss:$16 sps:$4 sm:$0xff]   ;;  %v5853_v18 = vld [vmem:[#allocation4 + $0xec] ss:$16 sps:$4 sm:$0xff]  }
 0x819   :  { %2763 = vmatprep.subr.bf16.mxu0 %v5838_v13  ;;  %2804 = vmatprep.subr.bf16.mxu1 %v5841_v48  ;;  %6901 = vst [vmem:[#allocation28_spill] sm:$0xff] %v5850_v28  ;;  %6902 = vst [vmem:[#allocation29_spill] sm:$0xff] %v5853_v18  ;;  %v5856_v13 = vld [vmem:[#allocation4 + $0xe0] ss:$16 sps:$4 sm:$0xff]   ;;  %v5859_v48 = vld [vmem:[#allocation4 + $0xe8] ss:$16 sps:$4 sm:$0xff]  }
 0x81a   :  { %6903 = vst [vmem:[#allocation30_spill] sm:$0xff] %v5856_v13  ;;  %6904 = vst [vmem:[#allocation31_spill] sm:$0xff] %v5859_v48 }
 0x81c   :  { %2764 = vmatpush1.bf16.msra.mxu0 %v5844_v62  ;;  %2805 = vmatpush1.bf16.msra.mxu1 %v5847_v21  ;;  %v5862_v62 = vld [vmem:[#allocation6 + $0x4] ss:$16 sps:$4 sm:$0xff]   ;;  %v5865_v21 = vld [vmem:[#allocation6 + $0xc] ss:$16 sps:$4 sm:$0xff]  }
 0x81d   :  { %2765 = vmatprep.subr.bf16.mxu0 %v5850_v28  ;;  %2806 = vmatprep.subr.bf16.mxu1 %v5853_v18  ;;  %6905 = vst [vmem:[#allocation32_spill] sm:$0xff] %v5862_v62  ;;  %6906 = vst [vmem:[#allocation33_spill] sm:$0xff] %v5865_v21 }
 0x820   :  { %2766 = vmatpush1.bf16.msra.mxu0 %v5856_v13  ;;  %2807 = vmatpush1.bf16.msra.mxu1 %v5859_v48 }
 0x821   :  { %2833 = vmatprep.subr.bf16.mxu0 %v5862_v62  ;;  %2874 = vmatprep.subr.bf16.mxu1 %v5865_v21  ;;  %v6907_v21 = vld [vmem:[#allocation13_spill] sm:$0xff] }
 0x896   :  { %v2469_v28 = vpop.f32.mrb[64].mxu0  ;;  %v2510_v20 = vpop.f32.mrb[64].mxu1 }
 0x897   :  { %v2471_v63 = vpop.f32.mrb[65].mxu0  ;;  %v2512_v18 = vpop.f32.mrb[65].mxu1 }
 0x898   :  { %v2473_v19 = vpop.f32.mrb[66].mxu0  ;;  %v2514_v3 = vpop.f32.mrb[66].mxu1 }
 0x899   :  { %v2474_v60 = vpop.f32.mrb[67].mxu0  ;;  %v2515_v13 = vpop.f32.mrb[67].mxu1 }
 0x89a   :  { %v6909_v13 = vld [vmem:[#allocation15_spill] sm:$0xff] }
 0x8b6   :  { %v2551_v41 = vpop.f32.mrb[68].mxu0  ;;  %v2592_v38 = vpop.f32.mrb[68].mxu1 }
 0x8b7   :  { %v2552_v56 = vadd.f32 %v2551_v41, %v2469_v28  ;;  %v2593_v48 = vadd.f32 %v2592_v38, %v2510_v20  ;;  %v2553_v1 = vpop.f32.mrb[69].mxu0  ;;  %v2594_v29 = vpop.f32.mrb[69].mxu1 }
 0x8b8   :  { %v2554_v24 = vadd.f32 %v2553_v1, %v2471_v63  ;;  %v5868_v62 = vadd.f32 %v2594_v29, %v2512_v18  ;;  %v2555_v47 = vpop.f32.mrb[70].mxu0  ;;  %v2596_v42 = vpop.f32.mrb[70].mxu1  ;;  %v4299_v1 = vmov 7   ;;  %v6913_v63 = vld [vmem:[#allocation44_spill] sm:$0xff] }
 0x8b9   :  { %v2599_v11 = vadd.f32 %v2552_v56, %v6907_v21  ;;  %v2556_v57 = vpop.f32.mrb[71].mxu0  ;;  %v2597_v54 = vpop.f32.mrb[71].mxu1  ;;  %v2601_v41 = vadd.f32 %v2593_v48, %v6909_v13  ;;  %3586 = vset.pattern.permute.xlu1 %v4299_v1  ;;  %3587 = vset.pattern.permute.xlu0 %v4299_v1  ;;  %v6910_v47 = vld [vmem:[#allocation35_spill] sm:$0xff] }
 0x8ba   :  { %v2600_v19 = vadd.f32 %v2554_v24, %v6908_v45  ;;  %2945 = vperm.xlu1 %3586, %v6910_v47   ;;  %v2630_v54 = vpop.permute.xlu1 %2629  ;;  %v6911_v57 = vld [vmem:[#allocation41_spill] sm:$0xff]  ;;  %v6912_v24 = vld [vmem:[#allocation42_spill] sm:$0xff] }
 0x8bb   :  { %v3508_v3 = vmul.f32 -1.442695, %v2599_v11  ;;  %v2632_v11 = vmul.f32 %v2630_v54, %v6911_v57  ;;  %v2633_v29 = vmul.f32 %v2630_v54, %v6912_v24 }
 0x8bc   :  { %v3509_v60 = vmul.f32 -1.442695, %v2600_v19 }
 0x8bd   :  { %3916 = vpow2.f32 %v3508_v3  ;;  %v2636_v18 = vadd.f32 %v2632_v11, %v6913_v63  ;;  %v2637_v19 = vadd.f32 %v2633_v29, %v6578_v33 }
 0x8be   :  { %3918 = vpow2.f32 %v3509_v60 }
 0x8bf   :  { %3920 = vtanh.f32 %v2601_v41 }
 0x8c7   :  { %v3917_v38 = vpop.eup %3916 }
 0x8c8   :  { %v3919_v20 = vpop.eup %3918  ;;  %v2606_v28 = vadd.f32 1.0, %v3917_v38 }
 0x8c9   :  { %v2612_v42 = vadd.f32 1.0, %v3919_v20  ;;  %v3921_v56 = vpop.eup %3920 }
 0x8ca   :  { %3922 = vrcp.f32 %v2606_v28  ;;  %v2635_v28 = vmul.f32 %v2630_v54, %v6579_v15 }
 0x8cb   :  { %3924 = vrcp.f32 %v2612_v42 }
 0x8d4   :  { %v3923_v48 = vpop.eup %3922 }
 0x8d5   :  { %v3925_v3 = vpop.eup %3924  ;;  %v2623_v60 = vmul.f32 %v3923_v48, %v3921_v56  ;;  %v2639_v56 = vadd.f32 %v2635_v28, %v4669_v59 }
 0x8d6   :  { %v2622_v41 = vmul.f32 %v3925_v3, %v5680_v5  ;;  %v2674_v38 = vpop.f32.mrb[72].mxu0  ;;  %v2715_v20 = vpop.f32.mrb[72].mxu1  ;;  %v2634_v5 = vmul.f32 %v2630_v54, %v4673_v46 }
 0x8d7   :  { %v2722_v1 = vadd.f32 %v2674_v38, %v2636_v18  ;;  %v2676_v42 = vpop.f32.mrb[73].mxu0  ;;  %v2717_v47 = vpop.f32.mrb[73].mxu1 }
 0x8d8   :  { %v5880_v57 = vadd.f32 %v2623_v60, %v2622_v41  ;;  %v2723_v24 = vadd.f32 %v2676_v42, %v2637_v19  ;;  %v2678_v13 = vpop.f32.mrb[74].mxu0  ;;  %v2719_v45 = vpop.f32.mrb[74].mxu1  ;;  %v2725_v48 = vadd.f32 %v2717_v47, %v2639_v56  ;;  %v2638_v18 = vadd.f32 %v2634_v5, %v4677_v0 }
 0x8d9   :  { %v3511_v11 = vmul.f32 -1.442695, %v2722_v1  ;;  %v2679_v63 = vpop.f32.mrb[75].mxu0  ;;  %v2720_v21 = vpop.f32.mrb[75].mxu1 }
 0x8da   :  { %v3512_v29 = vmul.f32 -1.442695, %v2723_v24  ;;  %v3513_v3 = vmul.f32 -1.442695, %v2725_v48  ;;  %v2724_v38 = vadd.f32 %v2715_v20, %v2638_v18  ;;  %v2602_v20 = vadd.f32 %v5868_v62, %v4893_v16  ;;  %v5898_v48 = vld [vmem:[#allocation6 + $0x8] ss:$16 sps:$4 sm:$0xff]  }
 0x8db   :  { %3926 = vpow2.f32 %v3511_v11  ;;  %v5901_v62 = vld [vmem:[#allocation6 + $0x24] ss:$16 sps:$4 sm:$0xff]   ;;  %v5904_v18 = vld [vmem:[#allocation6 + $0x2c] ss:$16 sps:$4 sm:$0xff]  }
 0x8dc   :  { %3928 = vpow2.f32 %v3512_v29  ;;  %v3510_v11 = vmul.f32 -1.442695, %v2602_v20  ;;  %v5943_v20 = vld [vmem:[#allocation6 + $0x8c] ss:$16 sps:$4 sm:$0xff]  }
 0x8dd   :  { %3930 = vpow2.f32 %v3513_v3  ;;  %v5909_v3 = vld [vmem:[#allocation6 + $0x20] ss:$16 sps:$4 sm:$0xff]   ;;  %6916 = vst [vmem:[#allocation53_spill] sm:$0xff] %v5943_v20 }
 0x8de   :  { %3932 = vtanh.f32 %v2724_v38  ;;  %v5912_v38 = vld [vmem:[#allocation6 + $0x28] ss:$16 sps:$4 sm:$0xff]  }
 0x8e5   :  { %v3927_v60 = vpop.eup %3926 }
 0x8e6   :  { %v3929_v41 = vpop.eup %3928  ;;  %v2729_v19 = vadd.f32 1.0, %v3927_v60  ;;  %v5915_v60 = vld [vmem:[#allocation6 + $0x44] ss:$16 sps:$4 sm:$0xff]  }
 0x8e7   :  { %v2735_v45 = vadd.f32 1.0, %v3929_v41  ;;  %v3931_v21 = vpop.eup %3930  ;;  %v5918_v41 = vld [vmem:[#allocation6 + $0x4c] ss:$16 sps:$4 sm:$0xff]  }
 0x8e8   :  { %3934 = vrcp.f32 %v2729_v19  ;;  %v3933_v13 = vpop.eup %3932  ;;  %v2742_v54 = vadd.f32 1.0, %v3931_v21  ;;  %v5924_v21 = vld [vmem:[#allocation6 + $0x48] ss:$16 sps:$4 sm:$0xff]  }
 0x8e9   :  { %3936 = vrcp.f32 %v2735_v45  ;;  %v5921_v45 = vld [vmem:[#allocation6 + $0x40] ss:$16 sps:$4 sm:$0xff]  }
 0x8ea   :  { %3938 = vrcp.f32 %v2742_v54  ;;  %v5936_v54 = vld [vmem:[#allocation6 + $0x68] ss:$16 sps:$4 sm:$0xff]  }
 0x8eb   :  { %6914 = vst [vmem:[#allocation34_spill] sm:$0xff] %v5936_v54 }
 0x8f2   :  { %v3935_v24 = vpop.eup %3934 }
 0x8f3   :  { %v3937_v63 = vpop.eup %3936  ;;  %v2746_v28 = vmul.f32 %v3935_v24, %v3933_v13  ;;  %v5927_v13 = vld [vmem:[#allocation6 + $0x64] ss:$16 sps:$4 sm:$0xff]   ;;  %v5930_v24 = vld [vmem:[#allocation6 + $0x6c] ss:$16 sps:$4 sm:$0xff]  }
 0x8f4   :  { %v2745_v1 = vmul.f32 %v3937_v63, %v5686_v8  ;;  %v3939_v47 = vpop.eup %3938  ;;  %v5895_v8 = vld [vmem:[#allocation6] ss:$16 sps:$4 sm:$0xff]  }
 0x8f6   :  { %v5886_v42 = vadd.f32 %v2746_v28, %v2745_v1  ;;  %v5933_v28 = vld [vmem:[#allocation6 + $0x60] ss:$16 sps:$4 sm:$0xff]   ;;  %v5940_v1 = vld [vmem:[#allocation6 + $0x84] ss:$16 sps:$4 sm:$0xff]  }
 0x8f7   :  { %6915 = vst [vmem:[#allocation20_spill] sm:$0xff] %v5940_v1 }
 0x8f8   :  { %3940 = vtanh.f32 %v5886_v42 }
 0x8f9   :  { %3942 = vpow2.f32 %v3510_v11  ;;  %v5949_v11 = vld [vmem:[#allocation6 + $0x88] ss:$16 sps:$4 sm:$0xff]  }
 0x8fa   :  { %3944 = vtanh.f32 %v5880_v57  ;;  %6918 = vst [vmem:[#allocation55_spill] sm:$0xff] %v5949_v11 }
 0x902   :  { %v3941_v29 = vpop.eup %3940 }
 0x903   :  { %v2749_v56 = vmul.f32 %v3941_v29, %v3939_v47  ;;  %v3943_v19 = vpop.eup %3942  ;;  %v5946_v47 = vld [vmem:[#allocation6 + $0x80] ss:$16 sps:$4 sm:$0xff]   ;;  %v5952_v29 = vld [vmem:[#allocation6 + $0xa4] ss:$16 sps:$4 sm:$0xff]  }
 0x904   :  { %v2619_v63 = vadd.f32 1.0, %v3943_v19  ;;  %6917 = vst [vmem:[#allocation54_spill] sm:$0xff] %v5946_v47  ;;  %6919 = vst [vmem:[#allocation56_spill] sm:$0xff] %v5952_v29  ;;  %v5958_v19 = vld [vmem:[#allocation6 + $0xa0] ss:$16 sps:$4 sm:$0xff]  }
 0x905   :  { %v5891_v5 = vpack.c.bf16 %v2749_v56, %v2749_v56  ;;  %v5955_v56 = vld [vmem:[#allocation6 + $0xac] ss:$16 sps:$4 sm:$0xff]   ;;  %6921 = vst [vmem:[#allocation58_spill] sm:$0xff] %v5958_v19 }
 0x906   :  { %3946 = vrcp.f32 %v2619_v63  ;;  %6920 = vst [vmem:[#allocation57_spill] sm:$0xff] %v5955_v56  ;;  %v5961_v63 = vld [vmem:[#allocation6 + $0xa8] ss:$16 sps:$4 sm:$0xff]  }
 0x907   :  { %2784 = vmatmul.mubr.bf16.vlgmr.msra.gmra.mrb[76].mxu0 %v5891_v5  ;;  %2825 = vmatmul.mubr.bf16.vlgmr.msra.gmra.mrb[76].mxu1 %v5891_v5  ;;  %6922 = vst [vmem:[#allocation59_spill] sm:$0xff] %v5961_v63 }
 0x908   :  { %2834 = vmatpush1.bf16.msra.mxu0 %v5895_v8  ;;  %2875 = vmatpush1.bf16.msra.mxu1 %v5898_v48 }
 0x909   :  { %2835 = vmatprep.subr.bf16.mxu0 %v5901_v62  ;;  %2876 = vmatprep.subr.bf16.mxu1 %v5904_v18 }
 0x90a   :  { %2865 = vmatprep.mubr.bf16.mxu0 %v6529_v44  ;;  %2906 = vmatprep.mubr.bf16.mxu1 %v6529_v44 }
 0x90c   :  { %2836 = vmatpush1.bf16.msra.mxu0 %v5909_v3  ;;  %2877 = vmatpush1.bf16.msra.mxu1 %v5912_v38 }
 0x90d   :  { %2837 = vmatprep.subr.bf16.mxu0 %v5915_v60  ;;  %2878 = vmatprep.subr.bf16.mxu1 %v5918_v41 }
 0x910   :  { %2838 = vmatpush1.bf16.msra.mxu0 %v5921_v45  ;;  %2879 = vmatpush1.bf16.msra.mxu1 %v5924_v21 }
 0x911   :  { %2839 = vmatprep.subr.bf16.mxu0 %v5927_v13  ;;  %2880 = vmatprep.subr.bf16.mxu1 %v5930_v24 }
 0x914   :  { %2840 = vmatpush1.bf16.msra.mxu0 %v5933_v28  ;;  %2881 = vmatpush1.bf16.msra.mxu1 %v5936_v54  ;;  %v5985_v54 = vld [vmem:[#allocation6 + $0xe8] ss:$16 sps:$4 sm:$0xff]  }
 0x915   :  { %2841 = vmatprep.subr.bf16.mxu0 %v5940_v1  ;;  %2882 = vmatprep.subr.bf16.mxu1 %v5943_v20  ;;  %v5970_v1 = vld [vmem:[#allocation6 + $0xc0] ss:$16 sps:$4 sm:$0xff]  }
 0x916   :  { %6925 = vst [vmem:[#allocation62_spill] sm:$0xff] %v5970_v1 }
 0x918   :  { %2842 = vmatpush1.bf16.msra.mxu0 %v5946_v47  ;;  %2883 = vmatpush1.bf16.msra.mxu1 %v5949_v11  ;;  %v5964_v47 = vld [vmem:[#allocation6 + $0xc4] ss:$16 sps:$4 sm:$0xff]   ;;  %v5967_v11 = vld [vmem:[#allocation6 + $0xcc] ss:$16 sps:$4 sm:$0xff]  }
 0x919   :  { %2843 = vmatprep.subr.bf16.mxu0 %v5952_v29  ;;  %2884 = vmatprep.subr.bf16.mxu1 %v5955_v56  ;;  %6923 = vst [vmem:[#allocation60_spill] sm:$0xff] %v5964_v47  ;;  %6924 = vst [vmem:[#allocation61_spill] sm:$0xff] %v5967_v11  ;;  %v3945_v29 = vpop.eup %3944  ;;  %v5973_v56 = vld [vmem:[#allocation6 + $0xc8] ss:$16 sps:$4 sm:$0xff]  }
 0x91a   :  { %v3947_v20 = vpop.eup %3946 }
 0x91c   :  { %2844 = vmatpush1.bf16.msra.mxu0 %v5958_v19  ;;  %2885 = vmatpush1.bf16.msra.mxu1 %v5961_v63  ;;  %v5976_v19 = vld [vmem:[#allocation6 + $0xe4] ss:$16 sps:$4 sm:$0xff]   ;;  %v5979_v63 = vld [vmem:[#allocation6 + $0xec] ss:$16 sps:$4 sm:$0xff]  }
 0x91d   :  { %2845 = vmatprep.subr.bf16.mxu0 %v5964_v47  ;;  %2886 = vmatprep.subr.bf16.mxu1 %v5967_v11  ;;  %v2626_v47 = vmul.f32 %v3947_v20, %v3945_v29  ;;  %v5982_v11 = vld [vmem:[#allocation6 + $0xe0] ss:$16 sps:$4 sm:$0xff]  }
 0x920   :  { %2846 = vmatpush1.bf16.msra.mxu0 %v5970_v1  ;;  %2887 = vmatpush1.bf16.msra.mxu1 %v5973_v56  ;;  %v2627_v1 = vpack.c.bf16 %v2626_v47, %v2626_v47 }
 0x921   :  { %2847 = vmatprep.subr.bf16.mxu0 %v5976_v19  ;;  %2888 = vmatprep.subr.bf16.mxu1 %v5979_v63 }
 0x924   :  { %2848 = vmatpush1.bf16.msra.mxu0 %v5982_v11  ;;  %2889 = vmatpush1.bf16.msra.mxu1 %v5985_v54 }
 0x925   :  { %2956 = vmatprep.subr.bf16.mxu0 %v5527_v26  ;;  %2997 = vmatprep.subr.bf16.mxu1 %v5530_v51  ;;  %v6926_v26 = vld [vmem:[#allocation36_spill] sm:$0xff]  ;;  %v6927_v51 = vld [vmem:[#allocation37_spill] sm:$0xff] }
 0x927   :  { %2866 = vmatmul.mubr.bf16.vlgmr.msra.gmra.mrb[80].mxu0 %v2627_v1  ;;  %2907 = vmatmul.mubr.bf16.vlgmr.msra.gmra.mrb[80].mxu1 %v2627_v1  ;;  %v6959_v1 = vld [vmem:[#allocation33_spill] sm:$0xff] }
 0x928   :  { %2957 = vmatpush1.bf16.msra.mxu0 %v6843_v27  ;;  %2998 = vmatpush1.bf16.msra.mxu1 %v6844_v39  ;;  %v6928_v27 = vld [vmem:[#allocation38_spill] sm:$0xff]  ;;  %v6929_v39 = vld [vmem:[#allocation16_spill] sm:$0xff] }
 0x929   :  { %2958 = vmatprep.subr.bf16.mxu0 %v6845_v4  ;;  %2999 = vmatprep.subr.bf16.mxu1 %v6846_v2  ;;  %v6930_v4 = vld [vmem:[#allocation17_spill] sm:$0xff]  ;;  %v6931_v2 = vld [vmem:[#allocation18_spill] sm:$0xff] }
 0x92a   :  { %2988 = vmatprep.mubr.bf16.mxu0 %v6529_v44  ;;  %3029 = vmatprep.mubr.bf16.mxu1 %v6529_v44 }
 0x92c   :  { %2959 = vmatpush1.bf16.msra.mxu0 %v6847_v49  ;;  %3000 = vmatpush1.bf16.msra.mxu1 %v6848_v52  ;;  %v6932_v49 = vld [vmem:[#allocation19_spill] sm:$0xff] }
 0x92d   :  { %2960 = vmatprep.subr.bf16.mxu0 %v6849_v32  ;;  %3001 = vmatprep.subr.bf16.mxu1 %v6850_v43  ;;  %v6933_v52 = vld [vmem:[#allocation39_spill] sm:$0xff]  ;;  %v6934_v32 = vld [vmem:[#allocation40_spill] sm:$0xff] }
 0x92e   :  { %v6935_v43 = vld [vmem:[#allocation12_spill] sm:$0xff] }
 0x930   :  { %2961 = vmatpush1.bf16.msra.mxu0 %v6851_v37  ;;  %3002 = vmatpush1.bf16.msra.mxu1 %v6852_v10  ;;  %v6936_v37 = vld [vmem:[#allocation45_spill] sm:$0xff]  ;;  %v6937_v10 = vld [vmem:[#allocation46_spill] sm:$0xff] }
 0x931   :  { %2962 = vmatprep.subr.bf16.mxu0 %v6853_v23  ;;  %3003 = vmatprep.subr.bf16.mxu1 %v6854_v40  ;;  %v6938_v23 = vld [vmem:[#allocation43_spill] sm:$0xff] }
 0x932   :  { %v6939_v40 = vld [vmem:[#allocation47_spill] sm:$0xff] }
 0x934   :  { %2963 = vmatpush1.bf16.msra.mxu0 %v6855_v6  ;;  %3004 = vmatpush1.bf16.msra.mxu1 %v6856_v31  ;;  %v6940_v6 = vld [vmem:[#allocation48_spill] sm:$0xff]  ;;  %v6941_v31 = vld [vmem:[#allocation49_spill] sm:$0xff] }
 0x935   :  { %2964 = vmatprep.subr.bf16.mxu0 %v6857_v7  ;;  %3005 = vmatprep.subr.bf16.mxu1 %v6858_v12  ;;  %v6942_v7 = vld [vmem:[#allocation50_spill] sm:$0xff]  ;;  %v6943_v12 = vld [vmem:[#allocation51_spill] sm:$0xff] }
 0x938   :  { %2965 = vmatpush1.bf16.msra.mxu0 %v6859_v35  ;;  %3006 = vmatpush1.bf16.msra.mxu1 %v6860_v30  ;;  %v6944_v35 = vld [vmem:[#allocation52_spill] sm:$0xff]  ;;  %v6945_v30 = vld [vmem:[#allocation65_spill] sm:$0xff] }
 0x939   :  { %2966 = vmatprep.subr.bf16.mxu0 %v6861_v14  ;;  %3007 = vmatprep.subr.bf16.mxu1 %v6862_v9  ;;  %v6946_v14 = vld [vmem:[#allocation66_spill] sm:$0xff]  ;;  %v6947_v9 = vld [vmem:[#allocation21_spill] sm:$0xff] }
 0x93c   :  { %2967 = vmatpush1.bf16.msra.mxu0 %v6863_v17  ;;  %3008 = vmatpush1.bf16.msra.mxu1 %v6864_v36  ;;  %v6948_v17 = vld [vmem:[#allocation22_spill] sm:$0xff]  ;;  %v6949_v36 = vld [vmem:[#allocation23_spill] sm:$0xff] }
 0x93d   :  { %2968 = vmatprep.subr.bf16.mxu0 %v6865_v34  ;;  %3009 = vmatprep.subr.bf16.mxu1 %v6866_v25  ;;  %v6950_v34 = vld [vmem:[#allocation24_spill] sm:$0xff]  ;;  %v6951_v25 = vld [vmem:[#allocation25_spill] sm:$0xff] }
 0x940   :  { %2969 = vmatpush1.bf16.msra.mxu0 %v6867_v22  ;;  %3010 = vmatpush1.bf16.msra.mxu1 %v6868_v58  ;;  %v6952_v22 = vld [vmem:[#allocation26_spill] sm:$0xff]  ;;  %v6953_v58 = vld [vmem:[#allocation27_spill] sm:$0xff] }
 0x941   :  { %2970 = vmatprep.subr.bf16.mxu0 %v6869_v55  ;;  %3011 = vmatprep.subr.bf16.mxu1 %v6870_v50  ;;  %v6954_v55 = vld [vmem:[#allocation28_spill] sm:$0xff]  ;;  %v6955_v50 = vld [vmem:[#allocation29_spill] sm:$0xff] }
 0x944   :  { %2971 = vmatpush1.bf16.msra.mxu0 %v6871_v61  ;;  %3012 = vmatpush1.bf16.msra.mxu1 %v6872_v53  ;;  %v6956_v61 = vld [vmem:[#allocation30_spill] sm:$0xff]  ;;  %v6957_v53 = vld [vmem:[#allocation31_spill] sm:$0xff] }
 0x945   :  { %3067 = vmatprep.subr.bf16.mxu0 %v6926_v26  ;;  %3108 = vmatprep.subr.bf16.mxu1 %v6927_v51 }
 0x947   :  { %2989 = vmatmul.mubr.bf16.vlgmr.msra.gmra.mrb[84].mxu0 %v5891_v5  ;;  %3030 = vmatmul.mubr.bf16.vlgmr.msra.gmra.mrb[84].mxu1 %v5891_v5  ;;  %v6958_v5 = vld [vmem:[#allocation32_spill] sm:$0xff] }
 0x948   :  { %3068 = vmatpush1.bf16.msra.mxu0 %v6928_v27  ;;  %3109 = vmatpush1.bf16.msra.mxu1 %v6929_v39 }
 0x949   :  { %3069 = vmatprep.subr.bf16.mxu0 %v6930_v4  ;;  %3110 = vmatprep.subr.bf16.mxu1 %v6931_v2 }
 0x94a   :  { %3099 = vmatprep.mubr.bf16.mxu0 %v6529_v44  ;;  %3140 = vmatprep.mubr.bf16.mxu1 %v6529_v44 }
 0x94c   :  { %3070 = vmatpush1.bf16.msra.mxu0 %v6932_v49  ;;  %3111 = vmatpush1.bf16.msra.mxu1 %v6933_v52 }
 0x94d   :  { %3071 = vmatprep.subr.bf16.mxu0 %v6934_v32  ;;  %3112 = vmatprep.subr.bf16.mxu1 %v6935_v43 }
 0x950   :  { %3072 = vmatpush1.bf16.msra.mxu0 %v6936_v37  ;;  %3113 = vmatpush1.bf16.msra.mxu1 %v6937_v10 }
 0x951   :  { %3073 = vmatprep.subr.bf16.mxu0 %v6938_v23  ;;  %3114 = vmatprep.subr.bf16.mxu1 %v6939_v40 }
 0x954   :  { %3074 = vmatpush1.bf16.msra.mxu0 %v6940_v6  ;;  %3115 = vmatpush1.bf16.msra.mxu1 %v6941_v31  ;;  %v6960_v31 = vld [vmem:[#allocation13_spill] sm:$0xff] }
 0x955   :  { %3075 = vmatprep.subr.bf16.mxu0 %v6942_v7  ;;  %3116 = vmatprep.subr.bf16.mxu1 %v6943_v12 }
 0x958   :  { %3076 = vmatpush1.bf16.msra.mxu0 %v6944_v35  ;;  %3117 = vmatpush1.bf16.msra.mxu1 %v6945_v30  ;;  %v6961_v30 = vld [vmem:[#allocation14_spill] sm:$0xff] }
 0x959   :  { %3077 = vmatprep.subr.bf16.mxu0 %v6946_v14  ;;  %3118 = vmatprep.subr.bf16.mxu1 %v6947_v9 }
 0x95c   :  { %3078 = vmatpush1.bf16.msra.mxu0 %v6948_v17  ;;  %3119 = vmatpush1.bf16.msra.mxu1 %v6949_v36  ;;  %v6962_v36 = vld [vmem:[#allocation15_spill] sm:$0xff] }
 0x95d   :  { %3079 = vmatprep.subr.bf16.mxu0 %v6950_v34  ;;  %3120 = vmatprep.subr.bf16.mxu1 %v6951_v25 }
 0x960   :  { %3080 = vmatpush1.bf16.msra.mxu0 %v6952_v22  ;;  %3121 = vmatpush1.bf16.msra.mxu1 %v6953_v58 }
 0x961   :  { %3081 = vmatprep.subr.bf16.mxu0 %v6954_v55  ;;  %3122 = vmatprep.subr.bf16.mxu1 %v6955_v50  ;;  %v2946_v50 = vpop.permute.xlu1 %2945 }
 0x964   :  { %3082 = vmatpush1.bf16.msra.mxu0 %v6956_v61  ;;  %3123 = vmatpush1.bf16.msra.mxu1 %v6957_v53  ;;  %v6963_v61 = vld [vmem:[#allocation41_spill] sm:$0xff] }
 0x965   :  { %3149 = vmatprep.subr.bf16.mxu0 %v6958_v5  ;;  %3190 = vmatprep.subr.bf16.mxu1 %v6959_v1  ;;  %v2948_v53 = vmul.f32 %v2946_v50, %v6963_v61  ;;  %v6964_v5 = vld [vmem:[#allocation42_spill] sm:$0xff] }
 0x966   :  { %v2949_v1 = vmul.f32 %v2946_v50, %v6964_v5 }
 0x9da   :  { %v2785_v20 = vpop.f32.mrb[76].mxu0  ;;  %v2826_v47 = vpop.f32.mrb[76].mxu1 }
 0x9db   :  { %v2787_v29 = vpop.f32.mrb[77].mxu0  ;;  %v2828_v26 = vpop.f32.mrb[77].mxu1 }
 0x9dc   :  { %v2789_v51 = vpop.f32.mrb[78].mxu0  ;;  %v2830_v27 = vpop.f32.mrb[78].mxu1 }
 0x9dd   :  { %v2790_v39 = vpop.f32.mrb[79].mxu0  ;;  %v2831_v4 = vpop.f32.mrb[79].mxu1  ;;  %v2953_v51 = vadd.f32 %v2949_v1, %v6578_v33 }
 0x9fa   :  { %v2867_v2 = vpop.f32.mrb[80].mxu0  ;;  %v2908_v49 = vpop.f32.mrb[80].mxu1 }
 0x9fb   :  { %v2868_v52 = vadd.f32 %v2867_v2, %v2785_v20  ;;  %v2909_v32 = vadd.f32 %v2908_v49, %v2826_v47  ;;  %v2869_v43 = vpop.f32.mrb[81].mxu0  ;;  %v2910_v37 = vpop.f32.mrb[81].mxu1  ;;  %v6965_v47 = vld [vmem:[#allocation44_spill] sm:$0xff]  ;;  %v2951_v2 = vmul.f32 %v2946_v50, %v6579_v15 }
 0x9fc   :  { %v2870_v10 = vadd.f32 %v2869_v43, %v2787_v29  ;;  %v6060_v23 = vadd.f32 %v2910_v37, %v2828_v26  ;;  %v2871_v40 = vpop.f32.mrb[82].mxu0  ;;  %v2912_v6 = vpop.f32.mrb[82].mxu1  ;;  %v2952_v29 = vadd.f32 %v2948_v53, %v6965_v47 }
 0x9fd   :  { %v2915_v7 = vadd.f32 %v2868_v52, %v6960_v31  ;;  %v2872_v12 = vpop.f32.mrb[83].mxu0  ;;  %v2913_v35 = vpop.f32.mrb[83].mxu1  ;;  %v2917_v34 = vadd.f32 %v2909_v32, %v6962_v36 }
 0x9fe   :  { %v2916_v14 = vadd.f32 %v2870_v10, %v6961_v30 }
 0x9ff   :  { %v3514_v9 = vmul.f32 -1.442695, %v2915_v7 }
 0xa00   :  { %v3515_v17 = vmul.f32 -1.442695, %v2916_v14 }
 0xa01   :  { %3948 = vpow2.f32 %v3514_v9  ;;  %v2955_v9 = vadd.f32 %v2951_v2, %v4669_v59 }
 0xa02   :  { %3950 = vpow2.f32 %v3515_v17 }
 0xa03   :  { %3952 = vtanh.f32 %v2917_v34 }
 0xa0b   :  { %v3949_v25 = vpop.eup %3948 }
 0xa0c   :  { %v3951_v22 = vpop.eup %3950  ;;  %v2922_v58 = vadd.f32 1.0, %v3949_v25 }
 0xa0d   :  { %v2928_v55 = vadd.f32 1.0, %v3951_v22  ;;  %v3953_v20 = vpop.eup %3952 }
 0xa0e   :  { %3954 = vrcp.f32 %v2922_v58 }
 0xa0f   :  { %3956 = vrcp.f32 %v2928_v55 }
 0xa18   :  { %v3955_v26 = vpop.eup %3954 }
 0xa19   :  { %v3957_v27 = vpop.eup %3956  ;;  %v2939_v39 = vmul.f32 %v3955_v26, %v3953_v20 }
 0xa1a   :  { %v2938_v4 = vmul.f32 %v3957_v27, %v5880_v57  ;;  %v2990_v49 = vpop.f32.mrb[84].mxu0  ;;  %v3031_v52 = vpop.f32.mrb[84].mxu1  ;;  %v2950_v57 = vmul.f32 %v2946_v50, %v4673_v46 }
 0xa1b   :  { %v3038_v32 = vadd.f32 %v2990_v49, %v2952_v29  ;;  %v2992_v43 = vpop.f32.mrb[85].mxu0  ;;  %v3033_v37 = vpop.f32.mrb[85].mxu1  ;;  %v3732_v49 = vld [vmem:[#allocation7] sm:$0xff]  }
 0xa1c   :  { %v6071_v10 = vadd.f32 %v2939_v39, %v2938_v4  ;;  %v3039_v40 = vadd.f32 %v2992_v43, %v2953_v51  ;;  %v2994_v6 = vpop.f32.mrb[86].mxu0  ;;  %v3035_v7 = vpop.f32.mrb[86].mxu1  ;;  %v3041_v15 = vadd.f32 %v3033_v37, %v2955_v9  ;;  %v2954_v17 = vadd.f32 %v2950_v57, %v4677_v0  ;;  %v3739_v43 = vld [vmem:[#allocation7 + $0x38] sm:$0xff]  }
 0xa1d   :  { %v3517_v12 = vmul.f32 -1.442695, %v3038_v32  ;;  %v2995_v35 = vpop.f32.mrb[87].mxu0  ;;  %v3036_v14 = vpop.f32.mrb[87].mxu1  ;;  %v2918_v0 = vadd.f32 %v6060_v23, %v4893_v16  ;;  %v6977_v23 = vld [vmem:[#allocation62_spill] sm:$0xff]  ;;  %v3733_v32 = vld [vmem:[#allocation7 + $0x8] sm:$0xff]  }
 0xa1e   :  { %v3518_v33 = vmul.f32 -1.442695, %v3039_v40  ;;  %v3519_v34 = vmul.f32 -1.442695, %v3041_v15  ;;  %v3040_v25 = vadd.f32 %v3031_v52, %v2954_v17  ;;  %v4300_v52 = vmov 0.0  }
 0xa1f   :  { %3958 = vpow2.f32 %v3517_v12  ;;  %v3516_v26 = vmul.f32 -1.442695, %v2918_v0 }
 0xa20   :  { %3960 = vpow2.f32 %v3518_v33 }
 0xa21   :  { %3962 = vpow2.f32 %v3519_v34 }
 0xa22   :  { %3964 = vtanh.f32 %v3040_v25 }
 0xa29   :  { %v3959_v22 = vpop.eup %3958 }
 0xa2a   :  { %v3961_v58 = vpop.eup %3960  ;;  %v3045_v55 = vadd.f32 1.0, %v3959_v22 }
 0xa2b   :  { %v3051_v61 = vadd.f32 1.0, %v3961_v58  ;;  %v3963_v53 = vpop.eup %3962 }
 0xa2c   :  { %3966 = vrcp.f32 %v3045_v55  ;;  %v3965_v5 = vpop.eup %3964  ;;  %v3058_v50 = vadd.f32 1.0, %v3963_v53 }
 0xa2d   :  { %3968 = vrcp.f32 %v3051_v61 }
 0xa2e   :  { %3970 = vrcp.f32 %v3058_v50 }
 0xa36   :  { %v3967_v59 = vpop.eup %3966 }
 0xa37   :  { %v3969_v1 = vpop.eup %3968  ;;  %v3062_v46 = vmul.f32 %v3967_v59, %v3965_v5 }
 0xa38   :  { %v3061_v20 = vmul.f32 %v3969_v1, %v5886_v42  ;;  %v3971_v29 = vpop.eup %3970 }
 0xa3a   :  { %v3063_v47 = vadd.f32 %v3062_v46, %v3061_v20 }
 0xa3c   :  { %3972 = vtanh.f32 %v3063_v47 }
 0xa3d   :  { %3974 = vpow2.f32 %v3516_v26 }
 0xa3e   :  { %3976 = vtanh.f32 %v6071_v10 }
 0xa46   :  { %v3973_v51 = vpop.eup %3972 }
 0xa47   :  { %v3065_v27 = vmul.f32 %v3973_v51, %v3971_v29  ;;  %v3975_v42 = vpop.eup %3974 }
 0xa49   :  { %v3066_v39 = vpack.c.bf16 %v3065_v27, %v3065_v27 }
 0xa4b   :  { %3100 = vmatmul.mubr.bf16.vlgmr.msra.gmra.mrb[88].mxu0 %v3066_v39  ;;  %3141 = vmatmul.mubr.bf16.vlgmr.msra.gmra.mrb[88].mxu1 %v3066_v39 }
 0xa4c   :  { %3150 = vmatpush1.bf16.msra.mxu0 %v5895_v8  ;;  %3191 = vmatpush1.bf16.msra.mxu1 %v5898_v48  ;;  %v2935_v8 = vadd.f32 1.0, %v3975_v42  ;;  %v6967_v48 = vld [vmem:[#allocation20_spill] sm:$0xff] }
 0xa4d   :  { %3151 = vmatprep.subr.bf16.mxu0 %v5901_v62  ;;  %3192 = vmatprep.subr.bf16.mxu1 %v5904_v18  ;;  %v6968_v62 = vld [vmem:[#allocation53_spill] sm:$0xff]  ;;  %v6969_v18 = vld [vmem:[#allocation54_spill] sm:$0xff] }
 0xa4e   :  { %3181 = vmatprep.mubr.bf16.mxu0 %v6529_v44  ;;  %3222 = vmatprep.mubr.bf16.mxu1 %v6529_v44  ;;  %v6966_v44 = vld [vmem:[#allocation34_spill] sm:$0xff]  ;;  %3978 = vrcp.f32 %v2935_v8 }
 0xa50   :  { %3152 = vmatpush1.bf16.msra.mxu0 %v5909_v3  ;;  %3193 = vmatpush1.bf16.msra.mxu1 %v5912_v38  ;;  %v6970_v3 = vld [vmem:[#allocation55_spill] sm:$0xff]  ;;  %v6971_v38 = vld [vmem:[#allocation56_spill] sm:$0xff] }
 0xa51   :  { %3153 = vmatprep.subr.bf16.mxu0 %v5915_v60  ;;  %3194 = vmatprep.subr.bf16.mxu1 %v5918_v41  ;;  %v6972_v60 = vld [vmem:[#allocation57_spill] sm:$0xff]  ;;  %v6973_v41 = vld [vmem:[#allocation58_spill] sm:$0xff] }
 0xa54   :  { %3154 = vmatpush1.bf16.msra.mxu0 %v5921_v45  ;;  %3195 = vmatpush1.bf16.msra.mxu1 %v5924_v21  ;;  %v6974_v45 = vld [vmem:[#allocation59_spill] sm:$0xff]  ;;  %v6975_v21 = vld [vmem:[#allocation60_spill] sm:$0xff] }
 0xa55   :  { %3155 = vmatprep.subr.bf16.mxu0 %v5927_v13  ;;  %3196 = vmatprep.subr.bf16.mxu1 %v5930_v24  ;;  %v6976_v13 = vld [vmem:[#allocation61_spill] sm:$0xff]  ;;  %v3977_v24 = vpop.eup %3976 }
 0xa58   :  { %3156 = vmatpush1.bf16.msra.mxu0 %v5933_v28  ;;  %3197 = vmatpush1.bf16.msra.mxu1 %v6966_v44  ;;  %v3979_v28 = vpop.eup %3978 }
 0xa59   :  { %3157 = vmatprep.subr.bf16.mxu0 %v6967_v48  ;;  %3198 = vmatprep.subr.bf16.mxu1 %v6968_v62  ;;  %v2942_v4 = vmul.f32 %v3979_v28, %v3977_v24 }
 0xa5b   :  { %v2943_v2 = vpack.c.bf16 %v2942_v4, %v2942_v4 }
 0xa5c   :  { %3158 = vmatpush1.bf16.msra.mxu0 %v6969_v18  ;;  %3199 = vmatpush1.bf16.msra.mxu1 %v6970_v3 }
 0xa5d   :  { %3159 = vmatprep.subr.bf16.mxu0 %v6971_v38  ;;  %3200 = vmatprep.subr.bf16.mxu1 %v6972_v60  ;;  %v3523_v38 = vld [vmem:[%s6131_s8] ss:$0 sm:$0xff] }
 0xa60   :  { %3160 = vmatpush1.bf16.msra.mxu0 %v6973_v41  ;;  %3201 = vmatpush1.bf16.msra.mxu1 %v6974_v45 }
 0xa61   :  { %3161 = vmatprep.subr.bf16.mxu0 %v6975_v21  ;;  %3202 = vmatprep.subr.bf16.mxu1 %v6976_v13 }
 0xa64   :  { %3162 = vmatpush1.bf16.msra.mxu0 %v6977_v23  ;;  %3203 = vmatpush1.bf16.msra.mxu1 %v5973_v56  ;;  %v3734_v56 = vld [vmem:[#allocation7 + $0x10] sm:$0xff]  }
 0xa65   :  { %3163 = vmatprep.subr.bf16.mxu0 %v5976_v19  ;;  %3204 = vmatprep.subr.bf16.mxu1 %v5979_v63  ;;  %v3735_v19 = vld [vmem:[#allocation7 + $0x18] sm:$0xff]   ;;  %v3736_v63 = vld [vmem:[#allocation7 + $0x20] sm:$0xff]  }
 0xa68   :  { %3164 = vmatpush1.bf16.msra.mxu0 %v5982_v11  ;;  %3205 = vmatpush1.bf16.msra.mxu1 %v5985_v54  ;;  %v3737_v54 = vld [vmem:[#allocation7 + $0x28] sm:$0xff]   ;;  %v3738_v11 = vld [vmem:[#allocation7 + $0x30] sm:$0xff]  }
 0xa69   :  { %3541 = vmatprep.subr.bf16.mxu0 %v4300_v52 }
 0xa6b   :  { %3182 = vmatmul.mubr.bf16.vlgmr.msra.gmra.mrb[92].mxu0 %v2943_v2  ;;  %3223 = vmatmul.mubr.bf16.vlgmr.msra.gmra.mrb[92].mxu1 %v2943_v2 }
 0xa6c   :  { %3542 = vmatpush3.bf16.msra.mxu0 %v3732_v49  ;;  %3557 = vmatprep.mubr.msk.bf16.mxu0 %vm4301_vm0, %v4300_v52 }
 0xa6d   :  { %3543 = vmatprep.subr.bf16.mxu0 %v4300_v52 }
 0xa70   :  { %3544 = vmatpush3.bf16.msra.mxu0 %v3733_v32 }
 0xa71   :  { %3545 = vmatprep.subr.bf16.mxu0 %v4300_v52 }
 0xa74   :  { %3546 = vmatpush3.bf16.msra.mxu0 %v3734_v56 }
 0xa75   :  { %3547 = vmatprep.subr.bf16.mxu0 %v4300_v52 }
 0xa78   :  { %3548 = vmatpush3.bf16.msra.mxu0 %v3735_v19 }
 0xa79   :  { %3549 = vmatprep.subr.bf16.mxu0 %v4300_v52 }
 0xa7c   :  { %3550 = vmatpush3.bf16.msra.mxu0 %v3736_v63 }
 0xa7d   :  { %3551 = vmatprep.subr.bf16.mxu0 %v4300_v52 }
 0xa80   :  { %3552 = vmatpush3.bf16.msra.mxu0 %v3737_v54 }
 0xa81   :  { %3553 = vmatprep.subr.bf16.mxu0 %v4300_v52 }
 0xa84   :  { %3554 = vmatpush3.bf16.msra.mxu0 %v3738_v11 }
 0xa85   :  { %3555 = vmatprep.subr.bf16.mxu0 %v4300_v52 }
 0xa88   :  { %3556 = vmatpush3.bf16.msra.mxu0 %v3739_v43 }
 0xb1e   :  { %v3101_v37 = vpop.f32.mrb[88].mxu0  ;;  %v3142_v40 = vpop.f32.mrb[88].mxu1 }
 0xb1f   :  { %v3103_v6 = vpop.f32.mrb[89].mxu0  ;;  %v3144_v7 = vpop.f32.mrb[89].mxu1 }
 0xb20   :  { %v3105_v12 = vpop.f32.mrb[90].mxu0  ;;  %v3146_v35 = vpop.f32.mrb[90].mxu1 }
 0xb21   :  { %v3106_v14 = vpop.f32.mrb[91].mxu0  ;;  %v3147_v33 = vpop.f32.mrb[91].mxu1 }
 0xb3e   :  { %v3183_v9 = vpop.f32.mrb[92].mxu0  ;;  %v3224_v57 = vpop.f32.mrb[92].mxu1 }
 0xb3f   :  { %v3184_v15 = vadd.f32 %v3183_v9, %v3101_v37  ;;  %v3225_v17 = vadd.f32 %v3224_v57, %v3142_v40  ;;  %v3185_v34 = vpop.f32.mrb[93].mxu0  ;;  %v3226_v25 = vpop.f32.mrb[93].mxu1 }
 0xb40   :  { %v3186_v22 = vadd.f32 %v3185_v34, %v3103_v6  ;;  %v3227_v58 = vadd.f32 %v3226_v25, %v3144_v7  ;;  %v3187_v55 = vpop.f32.mrb[94].mxu0  ;;  %v3228_v61 = vpop.f32.mrb[94].mxu1 }
 0xb41   :  { %v3231_v53 = vadd.f32 %v3184_v15, %v6960_v31  ;;  %v3188_v5 = vpop.f32.mrb[95].mxu0  ;;  %v3229_v59 = vpop.f32.mrb[95].mxu1  ;;  %v3233_v0 = vadd.f32 %v3225_v17, %v6962_v36 }
 0xb42   :  { %v3232_v1 = vadd.f32 %v3186_v22, %v6961_v30  ;;  %v3234_v20 = vadd.f32 %v3227_v58, %v4893_v16 }
 0xb43   :  { %v3520_v46 = vmul.f32 -1.442695, %v3231_v53 }
 0xb44   :  { %v3521_v50 = vmul.f32 -1.442695, %v3232_v1  ;;  %v3522_v47 = vmul.f32 -1.442695, %v3234_v20 }
 0xb45   :  { %3980 = vpow2.f32 %v3520_v46 }
 0xb46   :  { %3982 = vpow2.f32 %v3521_v50 }
 0xb47   :  { %3984 = vpow2.f32 %v3522_v47 }
 0xb48   :  { %3986 = vtanh.f32 %v3233_v0 }
 0xb4f   :  { %v3981_v29 = vpop.eup %3980 }
 0xb50   :  { %v3983_v26 = vpop.eup %3982  ;;  %v3238_v51 = vadd.f32 1.0, %v3981_v29 }
 0xb51   :  { %v3244_v27 = vadd.f32 1.0, %v3983_v26  ;;  %v3985_v31 = vpop.eup %3984 }
 0xb52   :  { %3988 = vrcp.f32 %v3238_v51  ;;  %v3987_v39 = vpop.eup %3986  ;;  %v3251_v44 = vadd.f32 1.0, %v3985_v31 }
 0xb53   :  { %3990 = vrcp.f32 %v3244_v27 }
 0xb54   :  { %3992 = vrcp.f32 %v3251_v44 }
 0xb5c   :  { %v3989_v30 = vpop.eup %3988 }
 0xb5d   :  { %v3991_v42 = vpop.eup %3990  ;;  %v3255_v8 = vmul.f32 %v3989_v30, %v3987_v39 }
 0xb5e   :  { %v3254_v48 = vmul.f32 %v3991_v42, %v6071_v10  ;;  %v3993_v36 = vpop.eup %3992 }
 0xb60   :  { %v3256_v16 = vadd.f32 %v3255_v8, %v3254_v48 }
 0xb62   :  { %3994 = vtanh.f32 %v3256_v16 }
 0xb6c   :  { %v3995_v62 = vpop.eup %3994 }
 0xb6d   :  { %v3258_v18 = vmul.f32 %v3995_v62, %v3993_v36 }
 0xb6f   :  { %v3259_v3 = vpack.c.bf16 %v3258_v18, %v3258_v18 }
 0xb71   :  { %3558 = vmatmul.mubr.bf16.vlgmr.msra.gmra.mrb[96].mxu0 %v3259_v3 }
 0xc44   :  { %v3365_v60 = vpop.f32.mrb[96].mxu0 }
 0xc45   :  { %v3366_v41 = vadd.f32 %v3523_v38, %v3365_v60  ;;  %v3559_v45 = vpop.f32.mrb[97].mxu0 }
 0xc46   :  { %v3368_v21 = vpop.f32.mrb[98].mxu0 }
 0xc47   :  { %3371 = vst [vmem:[%s6132_s9] sm:$0xff] %v3366_v41  ;;  %v3560_v10 = vpop.f32.mrb[99].mxu0 }
 0xc48   :  { %3376 = vsyncpa [#allocation3], 1 }
 0xc49   :  { %3377 = vsyncpa [#allocation5], 1 }
 0xc4a   :  { %3378 = vsyncpa [#allocation8], 1 }

</bundles_post_ra>
